<compile_context>
chip_gen: v6e
topology: v6e:2x2x1
jax: 0.10.0
libtpu: 0.0.40
codegen_flags: <defaults>
</compile_context>

<pallas_src>
import functools

import numpy as np
import jax
import jax.numpy as jnp
from jax import lax
from jax.experimental import pallas as pl
from jax.experimental.pallas import tpu as pltpu

LANE = 128  # lane width: packed-tap / channel padding target


# ----------------------------- small trace helpers ----------------------------


def _is_pow2(n):
    return n > 0 and (n & (n - 1)) == 0


def _idiv(x, d):
    """x // d for non-negative x (bit shift when d is a power of two)."""
    return jnp.right_shift(x, int(d).bit_length() - 1) if _is_pow2(d) else x // d


def _imod(x, d):
    """x % d for non-negative x (bitwise and when d is a power of two)."""
    return jnp.bitwise_and(x, d - 1) if _is_pow2(d) else x % d


def _row_shift(v, off):
    """out[m, :] = v[(m + off) % M, :] (circular; invalid rows masked later).

    Built from two static slices + one concatenate: unambiguous semantics and
    the sublane moves run on the XLU, with no VMEM round trip.
    """
    m = v.shape[0]
    k = (-off) % m
    if k == 0:
        return v
    return jnp.concatenate([v[m - k:, :], v[:m - k, :]], axis=0)


# --------------------------------- fused kernel -------------------------------


def _fused_cnn_kernel(x_ref, w1c_ref, b1_ref, w2c_ref, b2_ref, wcat_ref, bf_ref,
                      out_ref, *, N, G, K, C1, A, softmax):
    """Whole forward pass for the whole batch in one invocation (no grid).

    x_ref:    (M, C)   input value replicated across lanes (M = N*G*G, C = 128)
    w1c_ref:  (C, C)   conv1 taps (one row per tap at t*C1), outputs replicated
                       across every C1-lane group
    b1_ref:   (1, C)   conv1 bias, group-replicated
    w2c_ref:  (C, C)   conv2 channel-packed taps (row t*C1 + cin), cols :C2 real
    b2_ref:   (1, C)
    wcat_ref: (C, G*G*A)  fc1 weight, [c, hw*A + a] layout (CHW flatten)
    bf_ref:   (1, A)
    out_ref:  (N, A)
    """
    C = x_ref.shape[1]
    GG = G * G
    M = N * GG                       # batch folded into the matmul M dimension
    P = (K - 1) // 2
    KK = K * K
    # row offset of tap t = dh*K + dw (row index m = n*GG + h*G + w)
    offs = [(dh - P) * G + (dw - P) for dh in range(K) for dw in range(K)]

    # ----- iota-generated index helpers (no host masks, no constant DMA) ------
    rid = lax.broadcasted_iota(jnp.int32, (M, 1), 0)          # row id
    lid = lax.broadcasted_iota(jnp.int32, (1, C), 1)          # lane id
    hh = _imod(_idiv(rid, G), G)                              # (M,1) h coord
    ww = _imod(rid, G)                                        # (M,1) w coord
    t_lane = _idiv(lid, C1)                                   # (1,C) tap of lane
    tdivK = jnp.zeros_like(t_lane)
    for k in range(1, K):                                     # t // K w/o int div
        tdivK = tdivK + jnp.where(t_lane >= k * K, 1, 0)
    dh = tdivK - P                                            # (1,C)
    dw = t_lane - K * tdivK - P                               # (1,C)
    # valid(m, l): source pixel of tap t(l) lies inside the GxG grid; this also
    # zeroes the rows that wrap across sample boundaries in the circular shift.
    valid = ((hh + dh >= 0) & (hh + dh < G) & (ww + dw >= 0) & (ww + dw < G))
    tap_mask = jnp.where(valid, 1.0, 0.0)                     # (M, C) f32

    def packed_patch(src):
        # patch[:, t*C1 + c] = src[m + offs[t], t*C1 + c], zero-masked at edges.
        # src carries its C1 real channels replicated in every C1-lane group,
        # so picking the right row shift per lane group is a pure VPU select.
        patch = _row_shift(src, offs[0])
        for t in range(1, KK):
            patch = jnp.where(t_lane == t, _row_shift(src, offs[t]), patch)
        return patch * tap_mask       # lanes >= KK*C1 are killed by zero W rows

    # -------------------- conv1 + bias + ReLU: ONE MXU matmul -----------------
    a1 = jnp.maximum(
        jnp.dot(packed_patch(x_ref[...]), w1c_ref[...],
                preferred_element_type=jnp.float32) + b1_ref[...], 0.0)

    # -------------------- conv2 + bias + ReLU: ONE MXU matmul -----------------
    a2 = jnp.maximum(
        jnp.dot(packed_patch(a1), w2c_ref[...],
                preferred_element_type=jnp.float32) + b2_ref[...], 0.0)

    # ------------- fc1 + bias + ReLU (+ softmax), CHW-flatten-free ------------
    # logits[n, a] = sum_{hw, c} a2[n*GG + hw, c] * Wf[a, c*GG + hw] + bf[a].
    # U = a2 @ Wcat gives every spatial position's FC partials for every row; an
    # iota mask keeps each row's own position, a 0/1 matmul regroups columns by
    # action, and a 0/1 matmul sums the GG rows of each sample.  128-lane chunks
    # bound vreg pressure.
    GA = GG * A
    CH = C if GA % C == 0 else GA
    hw_row = _imod(rid, GG)                                   # (M,1)
    q = jnp.zeros((M, A), jnp.float32)
    for j in range(GA // CH):
        u = jnp.dot(a2, wcat_ref[:, j * CH:(j + 1) * CH],
                    preferred_element_type=jnp.float32)       # (M, CH)
        cpos = _idiv(lax.broadcasted_iota(jnp.int32, (1, CH), 1) + j * CH, A)
        keep = jnp.where(hw_row == cpos, 1.0, 0.0)            # own-position mask
        e0 = lax.broadcasted_iota(jnp.int32, (CH, 1), 0)
        e1 = lax.broadcasted_iota(jnp.int32, (1, A), 1)
        esel = jnp.where(_imod(e0 + j * CH, A) == e1, 1.0, 0.0)   # (CH, A)
        q = q + jnp.dot(u * keep, esel, preferred_element_type=jnp.float32)

    s0 = lax.broadcasted_iota(jnp.int32, (N, 1), 0)
    s1 = lax.broadcasted_iota(jnp.int32, (1, M), 1)
    ssel = jnp.where(_idiv(s1, GG) == s0, 1.0, 0.0)           # (N, M) sample sum
    logits = jnp.dot(ssel, q, preferred_element_type=jnp.float32) + bf_ref[...]
    h = jnp.maximum(logits, 0.0)                              # ReLU
    if softmax:
        mx = jnp.max(h, axis=-1, keepdims=True)
        e = jnp.exp(h - mx)
        h = e / jnp.sum(e, axis=-1, keepdims=True)            # exact division
    out_ref[...] = h


# --------------------------------- JAX wrapper ---------------------------------


@functools.partial(jax.jit, static_argnames=("dims", "softmax"))
def cnn_model_forward(x_nchw, params, dims, softmax=True):
    """Single fused pallas_call reproducing CNN_model.forward()."""
    K, G, A, C1 = dims
    N = x_nchw.shape[0]
    M = N * G * G
    # NCHW (N,1,G,G) -> (M,1) is a free reshape (Cin = 1); replicate across the
    # 128 lanes so the kernel's lane-group tap packing needs no lane movement.
    xrep = jnp.broadcast_to(x_nchw.reshape(M, 1).astype(jnp.float32), (M, LANE))

    kernel = functools.partial(_fused_cnn_kernel, N=N, G=G, K=K, C1=C1, A=A,
                               softmax=softmax)
    vmem = lambda: pl.BlockSpec(memory_space=pltpu.MemorySpace.VMEM)

    # TODO(synk): for batch >> 4 (v7x: 2 TensorCores, 64 MiB VMEM; v6e: fill the
    # 256x256 MXU with M ~ 256-512), add a leading batch-chunk grid axis with
    # dimension_semantics=("parallel",) and constant weight index_maps instead
    # of this grid-less single call.
    return pl.pallas_call(
        kernel,
        out_shape=jax.ShapeDtypeStruct((N, A), jnp.float32),
        in_specs=[vmem() for _ in range(7)],
        out_specs=vmem(),
    )(xrep, params["w1c"], params["b1"], params["w2c"], params["b2"],
      params["wcat"], params["bf"])


# ---------------------- parameter construction / conversion --------------------


def init_torch_layout_params(key, grid_size, action_size, middle_channels, K=3):
    """Parameters in PyTorch layouts: conv OIHW, fc (out, in) with CHW-flat in."""
    C1, C2, C3 = middle_channels

    def u(k, shape, fan_in):
        bound = 1.0 / jnp.sqrt(jnp.float32(fan_in))
        return jax.random.uniform(k, shape, jnp.float32, -bound, bound)

    ks = jax.random.split(key, 6)
    w1 = u(ks[0], (C1, 1, K, K), 1 * K * K)
    b1 = u(ks[1], (C1,), 1 * K * K)
    w2 = u(ks[2], (C2, C1, K, K), C1 * K * K)
    b2 = u(ks[3], (C2,), C1 * K * K)
    # NOTE: the PyTorch module sizes fc1 from middle_channels[2] (conv3's width)
    # even though forward() feeds it conv2's output; it only works because
    # C2 == C3.  Faithfully reproduced here.
    fc_in = C3 * grid_size * grid_size
    wf = u(ks[4], (action_size, fc_in), fc_in)
    bf = u(ks[5], (action_size,), fc_in)
    return w1, b1, w2, b2, wf, bf


def prepare_kernel_params(torch_params, grid_size):
    """PyTorch layouts -> lane-packed, kernel-friendly layouts (one-time prep)."""
    w1, b1, w2, b2, wf, bf = [np.asarray(p, np.float32) for p in torch_params]
    C1, _, K, _ = w1.shape
    C2 = w2.shape[0]
    A = wf.shape[0]
    G = grid_size
    GG = G * G
    KK = K * K
    C = LANE
    assert KK * C1 <= C, "lane packing needs K*K*C1 <= 128"
    assert C2 <= C and A <= C
    assert wf.shape[1] == C2 * GG, "fc1 input must match conv2 output (C3 == C2)"
    n_grp = C // C1

    # conv1 (Cin = 1): one weight row per tap at packed row t*C1; output
    # channels replicated across every C1-lane group so a1 is group-replicated.
    w1taps = w1.transpose(2, 3, 1, 0).reshape(KK, C1)          # [t, out_channel]
    w1c = np.zeros((C, C), np.float32)
    b1k = np.zeros((1, C), np.float32)
    for g in range(n_grp):
        w1c[np.arange(KK) * C1, g * C1:(g + 1) * C1] = w1taps
        b1k[0, g * C1:(g + 1) * C1] = b1

    # conv2: channel-packed taps, packed row index = t*C1 + cin.
    w2c = np.zeros((C, C), np.float32)
    w2c[:KK * C1, :C2] = w2.transpose(2, 3, 1, 0).reshape(KK * C1, C2)
    b2k = np.zeros((1, C), np.float32)
    b2k[0, :C2] = b2

    # fc1: PyTorch flattens CHW -> wf[a, c*GG + hw];  Wcat[c, hw*A + a].
    wcat = np.zeros((C, GG * A), np.float32)
    wcat[:C2] = wf.reshape(A, C2, GG).transpose(1, 2, 0).reshape(C2, GG * A)
    bfk = bf.reshape(1, A).astype(np.float32)

    params = dict(w1c=jnp.asarray(w1c), b1=jnp.asarray(b1k),
                  w2c=jnp.asarray(w2c), b2=jnp.asarray(b2k),
                  wcat=jnp.asarray(wcat), bf=jnp.asarray(bfk))
    dims = (K, G, A, C1)
    return params, dims


# ------------------------------ pure-JAX reference -----------------------------


def reference_forward(x_nchw, torch_params, softmax=True):
    w1, b1, w2, b2, wf, bf = torch_params
    dn = ("NCHW", "OIHW", "NCHW")
    h = lax.conv_general_dilated(x_nchw, w1, (1, 1), [(1, 1), (1, 1)],
                                 dimension_numbers=dn)
    h = jax.nn.relu(h + b1[None, :, None, None])
    h = lax.conv_general_dilated(h, w2, (1, 1), [(1, 1), (1, 1)],
                                 dimension_numbers=dn)
    h = jax.nn.relu(h + b2[None, :, None, None])
    h = h.reshape(h.shape[0], -1)
    h = jax.nn.relu(h @ wf.T + bf)
    return jax.nn.softmax(h, axis=1) if softmax else h


# -------------------------------------- main -----------------------------------


if __name__ == "__main__":
    grid_size = 8
    action_size = 8
    middle_channels = [8, 8, 8]
    batch = 2

    key = jax.random.PRNGKey(0)
    kx, kp = jax.random.split(key)
    x = jax.random.normal(kx, (batch, 1, grid_size, grid_size), jnp.float32)

    torch_params = init_torch_layout_params(kp, grid_size, action_size,
                                            middle_channels)
    params, dims = prepare_kernel_params(torch_params, grid_size)

    out = cnn_model_forward(x, params, dims=dims, softmax=True)
    out = jax.block_until_ready(out)

    ref = reference_forward(x, torch_params, softmax=True)
    assert out.shape == (batch, action_size)
    max_diff = float(jnp.max(jnp.abs(out - ref)))
    # Tolerance allows for possible MXU-vs-XLA f32 matmul/conv precision
    # differences; structural errors would be >= 1e-2 on softmax outputs.
    assert max_diff < 5e-3, f"mismatch, max abs diff = {max_diff}"

    print("KERNEL_OK")
</pallas_src>

<mosaic_0001>
module attributes {stable_mosaic.version = 11 : i64} {
  func.func @_fused_cnn_kernel(%arg0: memref<128x128xf32, #tpu.memory_space<vmem>>, %arg1: memref<128x128xf32, #tpu.memory_space<vmem>>, %arg2: memref<1x128xf32, #tpu.memory_space<vmem>>, %arg3: memref<128x128xf32, #tpu.memory_space<vmem>>, %arg4: memref<1x128xf32, #tpu.memory_space<vmem>>, %arg5: memref<128x512xf32, #tpu.memory_space<vmem>>, %arg6: memref<1x8xf32, #tpu.memory_space<vmem>>, %arg7: memref<2x8xf32, #tpu.memory_space<vmem>>) attributes {dimension_semantics = [], scalar_prefetch = 0 : i64, scratch_operands = 0 : i64, tpu.core_type = #tpu.core_type<tc>} {
    %0 = tpu.iota {dimensions = array<i32: 0>} : vector<128x1xi32>
    %1 = tpu.iota {dimensions = array<i32: 1>} : vector<1x128xi32>
    %c3_i32 = arith.constant 3 : i32
    %2 = vector.broadcast %c3_i32 : i32 to vector<128x1xi32>
    %3 = arith.shrsi %0, %2 : vector<128x1xi32>
    %c7_i32 = arith.constant 7 : i32
    %4 = vector.broadcast %c7_i32 : i32 to vector<128x1xi32>
    %5 = arith.andi %3, %4 : vector<128x1xi32>
    %c7_i32_0 = arith.constant 7 : i32
    %6 = vector.broadcast %c7_i32_0 : i32 to vector<128x1xi32>
    %7 = arith.andi %0, %6 : vector<128x1xi32>
    %c3_i32_1 = arith.constant 3 : i32
    %8 = vector.broadcast %c3_i32_1 : i32 to vector<1x128xi32>
    %9 = arith.shrsi %1, %8 : vector<1x128xi32>
    %c0_i32 = arith.constant 0 : i32
    %10 = vector.broadcast %c0_i32 : i32 to vector<1x128xi32>
    %c3_i32_2 = arith.constant 3 : i32
    %11 = vector.broadcast %c3_i32_2 : i32 to vector<1x128xi32>
    %12 = arith.cmpi sge, %9, %11 : vector<1x128xi32>
    %c1_i32 = arith.constant 1 : i32
    %c0_i32_3 = arith.constant 0 : i32
    %13 = vector.broadcast %c1_i32 : i32 to vector<1x128xi32>
    %14 = vector.broadcast %c0_i32_3 : i32 to vector<1x128xi32>
    %15 = arith.select %12, %13, %14 : vector<1x128xi1>, vector<1x128xi32>
    %16 = arith.addi %10, %15 : vector<1x128xi32>
    %c6_i32 = arith.constant 6 : i32
    %17 = vector.broadcast %c6_i32 : i32 to vector<1x128xi32>
    %18 = arith.cmpi sge, %9, %17 : vector<1x128xi32>
    %c1_i32_4 = arith.constant 1 : i32
    %c0_i32_5 = arith.constant 0 : i32
    %19 = vector.broadcast %c1_i32_4 : i32 to vector<1x128xi32>
    %20 = vector.broadcast %c0_i32_5 : i32 to vector<1x128xi32>
    %21 = arith.select %18, %19, %20 : vector<1x128xi1>, vector<1x128xi32>
    %22 = arith.addi %16, %21 : vector<1x128xi32>
    %c1_i32_6 = arith.constant 1 : i32
    %23 = vector.broadcast %c1_i32_6 : i32 to vector<1x128xi32>
    %24 = arith.subi %22, %23 : vector<1x128xi32>
    %c3_i32_7 = arith.constant 3 : i32
    %25 = vector.broadcast %c3_i32_7 : i32 to vector<1x128xi32>
    %26 = arith.muli %25, %22 : vector<1x128xi32>
    %27 = arith.subi %9, %26 : vector<1x128xi32>
    %c1_i32_8 = arith.constant 1 : i32
    %28 = vector.broadcast %c1_i32_8 : i32 to vector<1x128xi32>
    %29 = arith.subi %27, %28 : vector<1x128xi32>
    %30 = vector.broadcast %5 : vector<128x1xi32> to vector<128x128xi32>
    %31 = vector.broadcast %24 : vector<1x128xi32> to vector<128x128xi32>
    %32 = arith.addi %30, %31 : vector<128x128xi32>
    %c0_i32_9 = arith.constant 0 : i32
    %33 = vector.broadcast %c0_i32_9 : i32 to vector<128x128xi32>
    %34 = arith.cmpi sge, %32, %33 : vector<128x128xi32>
    %35 = vector.broadcast %5 : vector<128x1xi32> to vector<128x128xi32>
    %36 = vector.broadcast %24 : vector<1x128xi32> to vector<128x128xi32>
    %37 = arith.addi %35, %36 : vector<128x128xi32>
    %c8_i32 = arith.constant 8 : i32
    %38 = vector.broadcast %c8_i32 : i32 to vector<128x128xi32>
    %39 = arith.cmpi slt, %37, %38 : vector<128x128xi32>
    %40 = arith.andi %34, %39 : vector<128x128xi1>
    %41 = vector.broadcast %7 : vector<128x1xi32> to vector<128x128xi32>
    %42 = vector.broadcast %29 : vector<1x128xi32> to vector<128x128xi32>
    %43 = arith.addi %41, %42 : vector<128x128xi32>
    %c0_i32_10 = arith.constant 0 : i32
    %44 = vector.broadcast %c0_i32_10 : i32 to vector<128x128xi32>
    %45 = arith.cmpi sge, %43, %44 : vector<128x128xi32>
    %46 = arith.andi %40, %45 : vector<128x128xi1>
    %47 = vector.broadcast %7 : vector<128x1xi32> to vector<128x128xi32>
    %48 = vector.broadcast %29 : vector<1x128xi32> to vector<128x128xi32>
    %49 = arith.addi %47, %48 : vector<128x128xi32>
    %c8_i32_11 = arith.constant 8 : i32
    %50 = vector.broadcast %c8_i32_11 : i32 to vector<128x128xi32>
    %51 = arith.cmpi slt, %49, %50 : vector<128x128xi32>
    %52 = arith.andi %46, %51 : vector<128x128xi1>
    %cst = arith.constant 1.000000e+00 : f32
    %cst_12 = arith.constant 0.000000e+00 : f32
    %53 = vector.broadcast %cst : f32 to vector<128x128xf32>
    %54 = vector.broadcast %cst_12 : f32 to vector<128x128xf32>
    %55 = arith.select %52, %53, %54 : vector<128x128xi1>, vector<128x128xf32>
    %c0 = arith.constant 0 : index
    %c0_13 = arith.constant 0 : index
    %56 = vector.load %arg0[%c0, %c0_13] : memref<128x128xf32, #tpu.memory_space<vmem>>, vector<128x128xf32>
    %57 = vector.extract_strided_slice %56 {offsets = [119, 0], sizes = [9, 128], strides = [1, 1]} : vector<128x128xf32> to vector<9x128xf32>
    %58 = vector.extract_strided_slice %56 {offsets = [0, 0], sizes = [119, 128], strides = [1, 1]} : vector<128x128xf32> to vector<119x128xf32>
    %59 = tpu.concatenate %57, %58 in 0 : vector<9x128xf32>, vector<119x128xf32> -> vector<128x128xf32>
    %c1_i32_14 = arith.constant 1 : i32
    %60 = vector.broadcast %c1_i32_14 : i32 to vector<1x128xi32>
    %61 = arith.cmpi eq, %9, %60 : vector<1x128xi32>
    %62 = vector.extract_strided_slice %56 {offsets = [120, 0], sizes = [8, 128], strides = [1, 1]} : vector<128x128xf32> to vector<8x128xf32>
    %63 = vector.extract_strided_slice %56 {offsets = [0, 0], sizes = [120, 128], strides = [1, 1]} : vector<128x128xf32> to vector<120x128xf32>
    %64 = tpu.concatenate %62, %63 in 0 : vector<8x128xf32>, vector<120x128xf32> -> vector<128x128xf32>
    %65 = vector.shape_cast %61 : vector<1x128xi1> to vector<1x128xi1>
    %66 = vector.broadcast %65 : vector<1x128xi1> to vector<128x128xi1>
    %67 = arith.select %66, %64, %59 : vector<128x128xi1>, vector<128x128xf32>
    %c2_i32 = arith.constant 2 : i32
    %68 = vector.broadcast %c2_i32 : i32 to vector<1x128xi32>
    %69 = arith.cmpi eq, %9, %68 : vector<1x128xi32>
    %70 = vector.extract_strided_slice %56 {offsets = [121, 0], sizes = [7, 128], strides = [1, 1]} : vector<128x128xf32> to vector<7x128xf32>
    %71 = vector.extract_strided_slice %56 {offsets = [0, 0], sizes = [121, 128], strides = [1, 1]} : vector<128x128xf32> to vector<121x128xf32>
    %72 = tpu.concatenate %70, %71 in 0 : vector<7x128xf32>, vector<121x128xf32> -> vector<128x128xf32>
    %73 = vector.shape_cast %69 : vector<1x128xi1> to vector<1x128xi1>
    %74 = vector.broadcast %73 : vector<1x128xi1> to vector<128x128xi1>
    %75 = arith.select %74, %72, %67 : vector<128x128xi1>, vector<128x128xf32>
    %c3_i32_15 = arith.constant 3 : i32
    %76 = vector.broadcast %c3_i32_15 : i32 to vector<1x128xi32>
    %77 = arith.cmpi eq, %9, %76 : vector<1x128xi32>
    %78 = vector.extract_strided_slice %56 {offsets = [127, 0], sizes = [1, 128], strides = [1, 1]} : vector<128x128xf32> to vector<1x128xf32>
    %79 = vector.extract_strided_slice %56 {offsets = [0, 0], sizes = [127, 128], strides = [1, 1]} : vector<128x128xf32> to vector<127x128xf32>
    %80 = tpu.concatenate %78, %79 in 0 : vector<1x128xf32>, vector<127x128xf32> -> vector<128x128xf32>
    %81 = vector.shape_cast %77 : vector<1x128xi1> to vector<1x128xi1>
    %82 = vector.broadcast %81 : vector<1x128xi1> to vector<128x128xi1>
    %83 = arith.select %82, %80, %75 : vector<128x128xi1>, vector<128x128xf32>
    %c4_i32 = arith.constant 4 : i32
    %84 = vector.broadcast %c4_i32 : i32 to vector<1x128xi32>
    %85 = arith.cmpi eq, %9, %84 : vector<1x128xi32>
    %86 = vector.shape_cast %85 : vector<1x128xi1> to vector<1x128xi1>
    %87 = vector.broadcast %86 : vector<1x128xi1> to vector<128x128xi1>
    %88 = arith.select %87, %56, %83 : vector<128x128xi1>, vector<128x128xf32>
    %c5_i32 = arith.constant 5 : i32
    %89 = vector.broadcast %c5_i32 : i32 to vector<1x128xi32>
    %90 = arith.cmpi eq, %9, %89 : vector<1x128xi32>
    %91 = vector.extract_strided_slice %56 {offsets = [1, 0], sizes = [127, 128], strides = [1, 1]} : vector<128x128xf32> to vector<127x128xf32>
    %92 = vector.extract_strided_slice %56 {offsets = [0, 0], sizes = [1, 128], strides = [1, 1]} : vector<128x128xf32> to vector<1x128xf32>
    %93 = tpu.concatenate %91, %92 in 0 : vector<127x128xf32>, vector<1x128xf32> -> vector<128x128xf32>
    %94 = vector.shape_cast %90 : vector<1x128xi1> to vector<1x128xi1>
    %95 = vector.broadcast %94 : vector<1x128xi1> to vector<128x128xi1>
    %96 = arith.select %95, %93, %88 : vector<128x128xi1>, vector<128x128xf32>
    %c6_i32_16 = arith.constant 6 : i32
    %97 = vector.broadcast %c6_i32_16 : i32 to vector<1x128xi32>
    %98 = arith.cmpi eq, %9, %97 : vector<1x128xi32>
    %99 = vector.extract_strided_slice %56 {offsets = [7, 0], sizes = [121, 128], strides = [1, 1]} : vector<128x128xf32> to vector<121x128xf32>
    %100 = vector.extract_strided_slice %56 {offsets = [0, 0], sizes = [7, 128], strides = [1, 1]} : vector<128x128xf32> to vector<7x128xf32>
    %101 = tpu.concatenate %99, %100 in 0 : vector<121x128xf32>, vector<7x128xf32> -> vector<128x128xf32>
    %102 = vector.shape_cast %98 : vector<1x128xi1> to vector<1x128xi1>
    %103 = vector.broadcast %102 : vector<1x128xi1> to vector<128x128xi1>
    %104 = arith.select %103, %101, %96 : vector<128x128xi1>, vector<128x128xf32>
    %c7_i32_17 = arith.constant 7 : i32
    %105 = vector.broadcast %c7_i32_17 : i32 to vector<1x128xi32>
    %106 = arith.cmpi eq, %9, %105 : vector<1x128xi32>
    %107 = vector.extract_strided_slice %56 {offsets = [8, 0], sizes = [120, 128], strides = [1, 1]} : vector<128x128xf32> to vector<120x128xf32>
    %108 = vector.extract_strided_slice %56 {offsets = [0, 0], sizes = [8, 128], strides = [1, 1]} : vector<128x128xf32> to vector<8x128xf32>
    %109 = tpu.concatenate %107, %108 in 0 : vector<120x128xf32>, vector<8x128xf32> -> vector<128x128xf32>
    %110 = vector.shape_cast %106 : vector<1x128xi1> to vector<1x128xi1>
    %111 = vector.broadcast %110 : vector<1x128xi1> to vector<128x128xi1>
    %112 = arith.select %111, %109, %104 : vector<128x128xi1>, vector<128x128xf32>
    %c8_i32_18 = arith.constant 8 : i32
    %113 = vector.broadcast %c8_i32_18 : i32 to vector<1x128xi32>
    %114 = arith.cmpi eq, %9, %113 : vector<1x128xi32>
    %115 = vector.extract_strided_slice %56 {offsets = [9, 0], sizes = [119, 128], strides = [1, 1]} : vector<128x128xf32> to vector<119x128xf32>
    %116 = vector.extract_strided_slice %56 {offsets = [0, 0], sizes = [9, 128], strides = [1, 1]} : vector<128x128xf32> to vector<9x128xf32>
    %117 = tpu.concatenate %115, %116 in 0 : vector<119x128xf32>, vector<9x128xf32> -> vector<128x128xf32>
    %118 = vector.shape_cast %114 : vector<1x128xi1> to vector<1x128xi1>
    %119 = vector.broadcast %118 : vector<1x128xi1> to vector<128x128xi1>
    %120 = arith.select %119, %117, %112 : vector<128x128xi1>, vector<128x128xf32>
    %121 = arith.mulf %120, %55 : vector<128x128xf32>
    %c0_19 = arith.constant 0 : index
    %c0_20 = arith.constant 0 : index
    %122 = vector.load %arg1[%c0_19, %c0_20] : memref<128x128xf32, #tpu.memory_space<vmem>>, vector<128x128xf32>
    %cst_21 = arith.constant dense<0.000000e+00> : vector<128x128xf32>
    %123 = tpu.matmul %121, %122, %cst_21 {dimension_numbers = #tpu.dot_dimension_numbers<[1], [0], [0], [1], [0, 0, 1, 1], [], []>} : vector<128x128xf32>, vector<128x128xf32>, vector<128x128xf32> -> vector<128x128xf32>
    %c0_22 = arith.constant 0 : index
    %c0_23 = arith.constant 0 : index
    %124 = vector.load %arg2[%c0_22, %c0_23] : memref<1x128xf32, #tpu.memory_space<vmem>>, vector<1x128xf32>
    %125 = vector.broadcast %124 : vector<1x128xf32> to vector<128x128xf32>
    %126 = arith.addf %123, %125 : vector<128x128xf32>
    %cst_24 = arith.constant 0.000000e+00 : f32
    %127 = vector.broadcast %cst_24 : f32 to vector<128x128xf32>
    %128 = arith.maximumf %126, %127 : vector<128x128xf32>
    %129 = vector.extract_strided_slice %128 {offsets = [119, 0], sizes = [9, 128], strides = [1, 1]} : vector<128x128xf32> to vector<9x128xf32>
    %130 = vector.extract_strided_slice %128 {offsets = [0, 0], sizes = [119, 128], strides = [1, 1]} : vector<128x128xf32> to vector<119x128xf32>
    %131 = tpu.concatenate %129, %130 in 0 : vector<9x128xf32>, vector<119x128xf32> -> vector<128x128xf32>
    %c1_i32_25 = arith.constant 1 : i32
    %132 = vector.broadcast %c1_i32_25 : i32 to vector<1x128xi32>
    %133 = arith.cmpi eq, %9, %132 : vector<1x128xi32>
    %134 = vector.extract_strided_slice %128 {offsets = [120, 0], sizes = [8, 128], strides = [1, 1]} : vector<128x128xf32> to vector<8x128xf32>
    %135 = vector.extract_strided_slice %128 {offsets = [0, 0], sizes = [120, 128], strides = [1, 1]} : vector<128x128xf32> to vector<120x128xf32>
    %136 = tpu.concatenate %134, %135 in 0 : vector<8x128xf32>, vector<120x128xf32> -> vector<128x128xf32>
    %137 = vector.shape_cast %133 : vector<1x128xi1> to vector<1x128xi1>
    %138 = vector.broadcast %137 : vector<1x128xi1> to vector<128x128xi1>
    %139 = arith.select %138, %136, %131 : vector<128x128xi1>, vector<128x128xf32>
    %c2_i32_26 = arith.constant 2 : i32
    %140 = vector.broadcast %c2_i32_26 : i32 to vector<1x128xi32>
    %141 = arith.cmpi eq, %9, %140 : vector<1x128xi32>
    %142 = vector.extract_strided_slice %128 {offsets = [121, 0], sizes = [7, 128], strides = [1, 1]} : vector<128x128xf32> to vector<7x128xf32>
    %143 = vector.extract_strided_slice %128 {offsets = [0, 0], sizes = [121, 128], strides = [1, 1]} : vector<128x128xf32> to vector<121x128xf32>
    %144 = tpu.concatenate %142, %143 in 0 : vector<7x128xf32>, vector<121x128xf32> -> vector<128x128xf32>
    %145 = vector.shape_cast %141 : vector<1x128xi1> to vector<1x128xi1>
    %146 = vector.broadcast %145 : vector<1x128xi1> to vector<128x128xi1>
    %147 = arith.select %146, %144, %139 : vector<128x128xi1>, vector<128x128xf32>
    %c3_i32_27 = arith.constant 3 : i32
    %148 = vector.broadcast %c3_i32_27 : i32 to vector<1x128xi32>
    %149 = arith.cmpi eq, %9, %148 : vector<1x128xi32>
    %150 = vector.extract_strided_slice %128 {offsets = [127, 0], sizes = [1, 128], strides = [1, 1]} : vector<128x128xf32> to vector<1x128xf32>
    %151 = vector.extract_strided_slice %128 {offsets = [0, 0], sizes = [127, 128], strides = [1, 1]} : vector<128x128xf32> to vector<127x128xf32>
    %152 = tpu.concatenate %150, %151 in 0 : vector<1x128xf32>, vector<127x128xf32> -> vector<128x128xf32>
    %153 = vector.shape_cast %149 : vector<1x128xi1> to vector<1x128xi1>
    %154 = vector.broadcast %153 : vector<1x128xi1> to vector<128x128xi1>
    %155 = arith.select %154, %152, %147 : vector<128x128xi1>, vector<128x128xf32>
    %c4_i32_28 = arith.constant 4 : i32
    %156 = vector.broadcast %c4_i32_28 : i32 to vector<1x128xi32>
    %157 = arith.cmpi eq, %9, %156 : vector<1x128xi32>
    %158 = vector.shape_cast %157 : vector<1x128xi1> to vector<1x128xi1>
    %159 = vector.broadcast %158 : vector<1x128xi1> to vector<128x128xi1>
    %160 = arith.select %159, %128, %155 : vector<128x128xi1>, vector<128x128xf32>
    %c5_i32_29 = arith.constant 5 : i32
    %161 = vector.broadcast %c5_i32_29 : i32 to vector<1x128xi32>
    %162 = arith.cmpi eq, %9, %161 : vector<1x128xi32>
    %163 = vector.extract_strided_slice %128 {offsets = [1, 0], sizes = [127, 128], strides = [1, 1]} : vector<128x128xf32> to vector<127x128xf32>
    %164 = vector.extract_strided_slice %128 {offsets = [0, 0], sizes = [1, 128], strides = [1, 1]} : vector<128x128xf32> to vector<1x128xf32>
    %165 = tpu.concatenate %163, %164 in 0 : vector<127x128xf32>, vector<1x128xf32> -> vector<128x128xf32>
    %166 = vector.shape_cast %162 : vector<1x128xi1> to vector<1x128xi1>
    %167 = vector.broadcast %166 : vector<1x128xi1> to vector<128x128xi1>
    %168 = arith.select %167, %165, %160 : vector<128x128xi1>, vector<128x128xf32>
    %c6_i32_30 = arith.constant 6 : i32
    %169 = vector.broadcast %c6_i32_30 : i32 to vector<1x128xi32>
    %170 = arith.cmpi eq, %9, %169 : vector<1x128xi32>
    %171 = vector.extract_strided_slice %128 {offsets = [7, 0], sizes = [121, 128], strides = [1, 1]} : vector<128x128xf32> to vector<121x128xf32>
    %172 = vector.extract_strided_slice %128 {offsets = [0, 0], sizes = [7, 128], strides = [1, 1]} : vector<128x128xf32> to vector<7x128xf32>
    %173 = tpu.concatenate %171, %172 in 0 : vector<121x128xf32>, vector<7x128xf32> -> vector<128x128xf32>
    %174 = vector.shape_cast %170 : vector<1x128xi1> to vector<1x128xi1>
    %175 = vector.broadcast %174 : vector<1x128xi1> to vector<128x128xi1>
    %176 = arith.select %175, %173, %168 : vector<128x128xi1>, vector<128x128xf32>
    %c7_i32_31 = arith.constant 7 : i32
    %177 = vector.broadcast %c7_i32_31 : i32 to vector<1x128xi32>
    %178 = arith.cmpi eq, %9, %177 : vector<1x128xi32>
    %179 = vector.extract_strided_slice %128 {offsets = [8, 0], sizes = [120, 128], strides = [1, 1]} : vector<128x128xf32> to vector<120x128xf32>
    %180 = vector.extract_strided_slice %128 {offsets = [0, 0], sizes = [8, 128], strides = [1, 1]} : vector<128x128xf32> to vector<8x128xf32>
    %181 = tpu.concatenate %179, %180 in 0 : vector<120x128xf32>, vector<8x128xf32> -> vector<128x128xf32>
    %182 = vector.shape_cast %178 : vector<1x128xi1> to vector<1x128xi1>
    %183 = vector.broadcast %182 : vector<1x128xi1> to vector<128x128xi1>
    %184 = arith.select %183, %181, %176 : vector<128x128xi1>, vector<128x128xf32>
    %c8_i32_32 = arith.constant 8 : i32
    %185 = vector.broadcast %c8_i32_32 : i32 to vector<1x128xi32>
    %186 = arith.cmpi eq, %9, %185 : vector<1x128xi32>
    %187 = vector.extract_strided_slice %128 {offsets = [9, 0], sizes = [119, 128], strides = [1, 1]} : vector<128x128xf32> to vector<119x128xf32>
    %188 = vector.extract_strided_slice %128 {offsets = [0, 0], sizes = [9, 128], strides = [1, 1]} : vector<128x128xf32> to vector<9x128xf32>
    %189 = tpu.concatenate %187, %188 in 0 : vector<119x128xf32>, vector<9x128xf32> -> vector<128x128xf32>
    %190 = vector.shape_cast %186 : vector<1x128xi1> to vector<1x128xi1>
    %191 = vector.broadcast %190 : vector<1x128xi1> to vector<128x128xi1>
    %192 = arith.select %191, %189, %184 : vector<128x128xi1>, vector<128x128xf32>
    %193 = arith.mulf %192, %55 : vector<128x128xf32>
    %c0_33 = arith.constant 0 : index
    %c0_34 = arith.constant 0 : index
    %194 = vector.load %arg3[%c0_33, %c0_34] : memref<128x128xf32, #tpu.memory_space<vmem>>, vector<128x128xf32>
    %cst_35 = arith.constant dense<0.000000e+00> : vector<128x128xf32>
    %195 = tpu.matmul %193, %194, %cst_35 {dimension_numbers = #tpu.dot_dimension_numbers<[1], [0], [0], [1], [0, 0, 1, 1], [], []>} : vector<128x128xf32>, vector<128x128xf32>, vector<128x128xf32> -> vector<128x128xf32>
    %c0_36 = arith.constant 0 : index
    %c0_37 = arith.constant 0 : index
    %196 = vector.load %arg4[%c0_36, %c0_37] : memref<1x128xf32, #tpu.memory_space<vmem>>, vector<1x128xf32>
    %197 = vector.broadcast %196 : vector<1x128xf32> to vector<128x128xf32>
    %198 = arith.addf %195, %197 : vector<128x128xf32>
    %cst_38 = arith.constant 0.000000e+00 : f32
    %199 = vector.broadcast %cst_38 : f32 to vector<128x128xf32>
    %200 = arith.maximumf %198, %199 : vector<128x128xf32>
    %c63_i32 = arith.constant 63 : i32
    %201 = vector.broadcast %c63_i32 : i32 to vector<128x1xi32>
    %202 = arith.andi %0, %201 : vector<128x1xi32>
    %cst_39 = arith.constant 0.000000e+00 : f32
    %203 = vector.broadcast %cst_39 : f32 to vector<128x8xf32>
    %c0_40 = arith.constant 0 : index
    %c0_41 = arith.constant 0 : index
    %204 = vector.load %arg5[%c0_40, %c0_41] : memref<128x512xf32, #tpu.memory_space<vmem>>, vector<128x128xf32>
    %cst_42 = arith.constant dense<0.000000e+00> : vector<128x128xf32>
    %205 = tpu.matmul %200, %204, %cst_42 {dimension_numbers = #tpu.dot_dimension_numbers<[1], [0], [0], [1], [0, 0, 1, 1], [], []>} : vector<128x128xf32>, vector<128x128xf32>, vector<128x128xf32> -> vector<128x128xf32>
    %206 = tpu.iota {dimensions = array<i32: 1>} : vector<1x128xi32>
    %c0_i32_43 = arith.constant 0 : i32
    %207 = vector.broadcast %c0_i32_43 : i32 to vector<1x128xi32>
    %208 = arith.addi %206, %207 : vector<1x128xi32>
    %c3_i32_44 = arith.constant 3 : i32
    %209 = vector.broadcast %c3_i32_44 : i32 to vector<1x128xi32>
    %210 = arith.shrsi %208, %209 : vector<1x128xi32>
    %211 = vector.broadcast %202 : vector<128x1xi32> to vector<128x128xi32>
    %212 = vector.broadcast %210 : vector<1x128xi32> to vector<128x128xi32>
    %213 = arith.cmpi eq, %211, %212 : vector<128x128xi32>
    %cst_45 = arith.constant 1.000000e+00 : f32
    %cst_46 = arith.constant 0.000000e+00 : f32
    %214 = vector.broadcast %cst_45 : f32 to vector<128x128xf32>
    %215 = vector.broadcast %cst_46 : f32 to vector<128x128xf32>
    %216 = arith.select %213, %214, %215 : vector<128x128xi1>, vector<128x128xf32>
    %217 = tpu.iota {dimensions = array<i32: 0>} : vector<128x1xi32>
    %218 = tpu.iota {dimensions = array<i32: 1>} : vector<1x8xi32>
    %c0_i32_47 = arith.constant 0 : i32
    %219 = vector.broadcast %c0_i32_47 : i32 to vector<128x1xi32>
    %220 = arith.addi %217, %219 : vector<128x1xi32>
    %c7_i32_48 = arith.constant 7 : i32
    %221 = vector.broadcast %c7_i32_48 : i32 to vector<128x1xi32>
    %222 = arith.andi %220, %221 : vector<128x1xi32>
    %223 = vector.broadcast %222 : vector<128x1xi32> to vector<128x8xi32>
    %224 = vector.broadcast %218 : vector<1x8xi32> to vector<128x8xi32>
    %225 = arith.cmpi eq, %223, %224 : vector<128x8xi32>
    %cst_49 = arith.constant 1.000000e+00 : f32
    %cst_50 = arith.constant 0.000000e+00 : f32
    %226 = vector.broadcast %cst_49 : f32 to vector<128x8xf32>
    %227 = vector.broadcast %cst_50 : f32 to vector<128x8xf32>
    %228 = arith.select %225, %226, %227 : vector<128x8xi1>, vector<128x8xf32>
    %229 = arith.mulf %205, %216 : vector<128x128xf32>
    %cst_51 = arith.constant dense<0.000000e+00> : vector<128x8xf32>
    %230 = tpu.matmul %229, %228, %cst_51 {dimension_numbers = #tpu.dot_dimension_numbers<[1], [0], [0], [1], [0, 0, 1, 1], [], []>} : vector<128x128xf32>, vector<128x8xf32>, vector<128x8xf32> -> vector<128x8xf32>
    %231 = arith.addf %203, %230 : vector<128x8xf32>
    %c0_52 = arith.constant 0 : index
    %c128 = arith.constant 128 : index
    %232 = vector.load %arg5[%c0_52, %c128] : memref<128x512xf32, #tpu.memory_space<vmem>>, vector<128x128xf32>
    %cst_53 = arith.constant dense<0.000000e+00> : vector<128x128xf32>
    %233 = tpu.matmul %200, %232, %cst_53 {dimension_numbers = #tpu.dot_dimension_numbers<[1], [0], [0], [1], [0, 0, 1, 1], [], []>} : vector<128x128xf32>, vector<128x128xf32>, vector<128x128xf32> -> vector<128x128xf32>
    %234 = tpu.iota {dimensions = array<i32: 1>} : vector<1x128xi32>
    %c128_i32 = arith.constant 128 : i32
    %235 = vector.broadcast %c128_i32 : i32 to vector<1x128xi32>
    %236 = arith.addi %234, %235 : vector<1x128xi32>
    %c3_i32_54 = arith.constant 3 : i32
    %237 = vector.broadcast %c3_i32_54 : i32 to vector<1x128xi32>
    %238 = arith.shrsi %236, %237 : vector<1x128xi32>
    %239 = vector.broadcast %202 : vector<128x1xi32> to vector<128x128xi32>
    %240 = vector.broadcast %238 : vector<1x128xi32> to vector<128x128xi32>
    %241 = arith.cmpi eq, %239, %240 : vector<128x128xi32>
    %cst_55 = arith.constant 1.000000e+00 : f32
    %cst_56 = arith.constant 0.000000e+00 : f32
    %242 = vector.broadcast %cst_55 : f32 to vector<128x128xf32>
    %243 = vector.broadcast %cst_56 : f32 to vector<128x128xf32>
    %244 = arith.select %241, %242, %243 : vector<128x128xi1>, vector<128x128xf32>
    %245 = tpu.iota {dimensions = array<i32: 0>} : vector<128x1xi32>
    %246 = tpu.iota {dimensions = array<i32: 1>} : vector<1x8xi32>
    %c128_i32_57 = arith.constant 128 : i32
    %247 = vector.broadcast %c128_i32_57 : i32 to vector<128x1xi32>
    %248 = arith.addi %245, %247 : vector<128x1xi32>
    %c7_i32_58 = arith.constant 7 : i32
    %249 = vector.broadcast %c7_i32_58 : i32 to vector<128x1xi32>
    %250 = arith.andi %248, %249 : vector<128x1xi32>
    %251 = vector.broadcast %250 : vector<128x1xi32> to vector<128x8xi32>
    %252 = vector.broadcast %246 : vector<1x8xi32> to vector<128x8xi32>
    %253 = arith.cmpi eq, %251, %252 : vector<128x8xi32>
    %cst_59 = arith.constant 1.000000e+00 : f32
    %cst_60 = arith.constant 0.000000e+00 : f32
    %254 = vector.broadcast %cst_59 : f32 to vector<128x8xf32>
    %255 = vector.broadcast %cst_60 : f32 to vector<128x8xf32>
    %256 = arith.select %253, %254, %255 : vector<128x8xi1>, vector<128x8xf32>
    %257 = arith.mulf %233, %244 : vector<128x128xf32>
    %cst_61 = arith.constant dense<0.000000e+00> : vector<128x8xf32>
    %258 = tpu.matmul %257, %256, %cst_61 {dimension_numbers = #tpu.dot_dimension_numbers<[1], [0], [0], [1], [0, 0, 1, 1], [], []>} : vector<128x128xf32>, vector<128x8xf32>, vector<128x8xf32> -> vector<128x8xf32>
    %259 = arith.addf %231, %258 : vector<128x8xf32>
    %c0_62 = arith.constant 0 : index
    %c256 = arith.constant 256 : index
    %260 = vector.load %arg5[%c0_62, %c256] : memref<128x512xf32, #tpu.memory_space<vmem>>, vector<128x128xf32>
    %cst_63 = arith.constant dense<0.000000e+00> : vector<128x128xf32>
    %261 = tpu.matmul %200, %260, %cst_63 {dimension_numbers = #tpu.dot_dimension_numbers<[1], [0], [0], [1], [0, 0, 1, 1], [], []>} : vector<128x128xf32>, vector<128x128xf32>, vector<128x128xf32> -> vector<128x128xf32>
    %262 = tpu.iota {dimensions = array<i32: 1>} : vector<1x128xi32>
    %c256_i32 = arith.constant 256 : i32
    %263 = vector.broadcast %c256_i32 : i32 to vector<1x128xi32>
    %264 = arith.addi %262, %263 : vector<1x128xi32>
    %c3_i32_64 = arith.constant 3 : i32
    %265 = vector.broadcast %c3_i32_64 : i32 to vector<1x128xi32>
    %266 = arith.shrsi %264, %265 : vector<1x128xi32>
    %267 = vector.broadcast %202 : vector<128x1xi32> to vector<128x128xi32>
    %268 = vector.broadcast %266 : vector<1x128xi32> to vector<128x128xi32>
    %269 = arith.cmpi eq, %267, %268 : vector<128x128xi32>
    %cst_65 = arith.constant 1.000000e+00 : f32
    %cst_66 = arith.constant 0.000000e+00 : f32
    %270 = vector.broadcast %cst_65 : f32 to vector<128x128xf32>
    %271 = vector.broadcast %cst_66 : f32 to vector<128x128xf32>
    %272 = arith.select %269, %270, %271 : vector<128x128xi1>, vector<128x128xf32>
    %273 = tpu.iota {dimensions = array<i32: 0>} : vector<128x1xi32>
    %274 = tpu.iota {dimensions = array<i32: 1>} : vector<1x8xi32>
    %c256_i32_67 = arith.constant 256 : i32
    %275 = vector.broadcast %c256_i32_67 : i32 to vector<128x1xi32>
    %276 = arith.addi %273, %275 : vector<128x1xi32>
    %c7_i32_68 = arith.constant 7 : i32
    %277 = vector.broadcast %c7_i32_68 : i32 to vector<128x1xi32>
    %278 = arith.andi %276, %277 : vector<128x1xi32>
    %279 = vector.broadcast %278 : vector<128x1xi32> to vector<128x8xi32>
    %280 = vector.broadcast %274 : vector<1x8xi32> to vector<128x8xi32>
    %281 = arith.cmpi eq, %279, %280 : vector<128x8xi32>
    %cst_69 = arith.constant 1.000000e+00 : f32
    %cst_70 = arith.constant 0.000000e+00 : f32
    %282 = vector.broadcast %cst_69 : f32 to vector<128x8xf32>
    %283 = vector.broadcast %cst_70 : f32 to vector<128x8xf32>
    %284 = arith.select %281, %282, %283 : vector<128x8xi1>, vector<128x8xf32>
    %285 = arith.mulf %261, %272 : vector<128x128xf32>
    %cst_71 = arith.constant dense<0.000000e+00> : vector<128x8xf32>
    %286 = tpu.matmul %285, %284, %cst_71 {dimension_numbers = #tpu.dot_dimension_numbers<[1], [0], [0], [1], [0, 0, 1, 1], [], []>} : vector<128x128xf32>, vector<128x8xf32>, vector<128x8xf32> -> vector<128x8xf32>
    %287 = arith.addf %259, %286 : vector<128x8xf32>
    %c0_72 = arith.constant 0 : index
    %c384 = arith.constant 384 : index
    %288 = vector.load %arg5[%c0_72, %c384] : memref<128x512xf32, #tpu.memory_space<vmem>>, vector<128x128xf32>
    %cst_73 = arith.constant dense<0.000000e+00> : vector<128x128xf32>
    %289 = tpu.matmul %200, %288, %cst_73 {dimension_numbers = #tpu.dot_dimension_numbers<[1], [0], [0], [1], [0, 0, 1, 1], [], []>} : vector<128x128xf32>, vector<128x128xf32>, vector<128x128xf32> -> vector<128x128xf32>
    %290 = tpu.iota {dimensions = array<i32: 1>} : vector<1x128xi32>
    %c384_i32 = arith.constant 384 : i32
    %291 = vector.broadcast %c384_i32 : i32 to vector<1x128xi32>
    %292 = arith.addi %290, %291 : vector<1x128xi32>
    %c3_i32_74 = arith.constant 3 : i32
    %293 = vector.broadcast %c3_i32_74 : i32 to vector<1x128xi32>
    %294 = arith.shrsi %292, %293 : vector<1x128xi32>
    %295 = vector.broadcast %202 : vector<128x1xi32> to vector<128x128xi32>
    %296 = vector.broadcast %294 : vector<1x128xi32> to vector<128x128xi32>
    %297 = arith.cmpi eq, %295, %296 : vector<128x128xi32>
    %cst_75 = arith.constant 1.000000e+00 : f32
    %cst_76 = arith.constant 0.000000e+00 : f32
    %298 = vector.broadcast %cst_75 : f32 to vector<128x128xf32>
    %299 = vector.broadcast %cst_76 : f32 to vector<128x128xf32>
    %300 = arith.select %297, %298, %299 : vector<128x128xi1>, vector<128x128xf32>
    %301 = tpu.iota {dimensions = array<i32: 0>} : vector<128x1xi32>
    %302 = tpu.iota {dimensions = array<i32: 1>} : vector<1x8xi32>
    %c384_i32_77 = arith.constant 384 : i32
    %303 = vector.broadcast %c384_i32_77 : i32 to vector<128x1xi32>
    %304 = arith.addi %301, %303 : vector<128x1xi32>
    %c7_i32_78 = arith.constant 7 : i32
    %305 = vector.broadcast %c7_i32_78 : i32 to vector<128x1xi32>
    %306 = arith.andi %304, %305 : vector<128x1xi32>
    %307 = vector.broadcast %306 : vector<128x1xi32> to vector<128x8xi32>
    %308 = vector.broadcast %302 : vector<1x8xi32> to vector<128x8xi32>
    %309 = arith.cmpi eq, %307, %308 : vector<128x8xi32>
    %cst_79 = arith.constant 1.000000e+00 : f32
    %cst_80 = arith.constant 0.000000e+00 : f32
    %310 = vector.broadcast %cst_79 : f32 to vector<128x8xf32>
    %311 = vector.broadcast %cst_80 : f32 to vector<128x8xf32>
    %312 = arith.select %309, %310, %311 : vector<128x8xi1>, vector<128x8xf32>
    %313 = arith.mulf %289, %300 : vector<128x128xf32>
    %cst_81 = arith.constant dense<0.000000e+00> : vector<128x8xf32>
    %314 = tpu.matmul %313, %312, %cst_81 {dimension_numbers = #tpu.dot_dimension_numbers<[1], [0], [0], [1], [0, 0, 1, 1], [], []>} : vector<128x128xf32>, vector<128x8xf32>, vector<128x8xf32> -> vector<128x8xf32>
    %315 = arith.addf %287, %314 : vector<128x8xf32>
    %316 = tpu.iota {dimensions = array<i32: 0>} : vector<2x1xi32>
    %317 = tpu.iota {dimensions = array<i32: 1>} : vector<1x128xi32>
    %c6_i32_82 = arith.constant 6 : i32
    %318 = vector.broadcast %c6_i32_82 : i32 to vector<1x128xi32>
    %319 = arith.shrsi %317, %318 : vector<1x128xi32>
    %320 = vector.broadcast %319 : vector<1x128xi32> to vector<2x128xi32>
    %321 = vector.broadcast %316 : vector<2x1xi32> to vector<2x128xi32>
    %322 = arith.cmpi eq, %320, %321 : vector<2x128xi32>
    %cst_83 = arith.constant 1.000000e+00 : f32
    %cst_84 = arith.constant 0.000000e+00 : f32
    %323 = vector.broadcast %cst_83 : f32 to vector<2x128xf32>
    %324 = vector.broadcast %cst_84 : f32 to vector<2x128xf32>
    %325 = arith.select %322, %323, %324 : vector<2x128xi1>, vector<2x128xf32>
    %cst_85 = arith.constant dense<0.000000e+00> : vector<2x8xf32>
    %326 = tpu.matmul %325, %315, %cst_85 {dimension_numbers = #tpu.dot_dimension_numbers<[1], [0], [0], [1], [0, 0, 1, 1], [], []>} : vector<2x128xf32>, vector<128x8xf32>, vector<2x8xf32> -> vector<2x8xf32>
    %c0_86 = arith.constant 0 : index
    %c0_87 = arith.constant 0 : index
    %327 = vector.load %arg6[%c0_86, %c0_87] : memref<1x8xf32, #tpu.memory_space<vmem>>, vector<1x8xf32>
    %328 = vector.broadcast %327 : vector<1x8xf32> to vector<2x8xf32>
    %329 = arith.addf %326, %328 : vector<2x8xf32>
    %cst_88 = arith.constant 0.000000e+00 : f32
    %330 = vector.broadcast %cst_88 : f32 to vector<2x8xf32>
    %331 = arith.maximumf %329, %330 : vector<2x8xf32>
    %cst_89 = arith.constant dense<0xFF800000> : vector<2xf32>
    %332 = vector.multi_reduction <maximumf>, %331, %cst_89 [1] : vector<2x8xf32> to vector<2xf32>
    %333 = vector.shape_cast %332 : vector<2xf32> to vector<2x1xf32>
    %334 = vector.broadcast %333 : vector<2x1xf32> to vector<2x8xf32>
    %335 = arith.subf %331, %334 : vector<2x8xf32>
    %336 = math.exp %335 : vector<2x8xf32>
    %cst_90 = arith.constant dense<0.000000e+00> : vector<2xf32>
    %337 = vector.multi_reduction <add>, %336, %cst_90 [1] : vector<2x8xf32> to vector<2xf32>
    %338 = vector.shape_cast %337 : vector<2xf32> to vector<2x1xf32>
    %339 = vector.broadcast %338 : vector<2x1xf32> to vector<2x8xf32>
    %340 = arith.divf %336, %339 : vector<2x8xf32>
    %c0_91 = arith.constant 0 : index
    %c0_92 = arith.constant 0 : index
    %341 = vector.load %arg7[%c0_91, %c0_92] : memref<2x8xf32, #tpu.memory_space<vmem>>, vector<2x8xf32>
    tpu.vector_store %arg7[%c0_91, %c0_92], %340 {strides = array<i32>} : memref<2x8xf32, #tpu.memory_space<vmem>>, vector<2x8xf32>,
    return
  }
}

</mosaic_0001>

<bundles_post_ra>
// kernel: cnn_model_forward.1
= control target key start
LH: loop header
LB: loop body
LE: loop exit
PB: predicated region body
PF: predicated region fallthrough
CT: control target
= control target key end

     0   :  { %12 = vsyncpa [#allocation3], 0  ;;  %s6573_s0 = inlined_call_operand.vmem [shape: f32[128,128], index: 0, kind: input, shape index: {}]   ;;  %s6574_s1 = inlined_call_operand.vmem [shape: f32[128,128], index: 1, kind: input, shape index: {}]   ;;  %s6575_s2 = inlined_call_operand.vmem [shape: f32[1,128], index: 2, kind: input, shape index: {}]   ;;  %s6576_s3 = inlined_call_operand.hbm [shape: f32[128,128], index: 3, kind: input, shape index: {}]   ;;  %s6577_s4 = inlined_call_operand.vmem [shape: f32[1,128], index: 4, kind: input, shape index: {}]   ;;  %s6578_s5 = inlined_call_operand.hbm [shape: f32[128,512], index: 5, kind: input, shape index: {}]   ;;  %s6579_s6 = inlined_call_operand.vmem [shape: f32[1,8], index: 6, kind: input, shape index: {}]   ;;  %s6580_s7 = inlined_call_operand.hbm [shape: f32[2,8], index: 7, kind: output, shape index: {}]  }
   0x1   :  { %13 = vsyncpa [#allocation6], 0 }
   0x2   :  { %14 = vsyncpa [#allocation4], 0  ;;  %s4105_s24 = smov [#allocation2]  }
   0x3   :  { %s26_s25 = sshll.u32 %s4105_s24, 4  ;;  %s27_s25 = int_to_ptr.vmem [resolvable:$true] %s26_s25 }
   0x4   :  { %s4047_s26 = scalar_lea.vmem %s27_s25, 2048  ;;  %p4052_p1 = scmp.lt.s32.totalorder %s27_s25, %s27_s25 }
   0x5   :  { %p4048_p0 = scmp.ne.s32.totalorder %s27_s25, %s4047_s26  ;;  %p4053_p2 = scmp.lt.s32.totalorder %s4047_s26, %s4047_s26 }
   0x7   :  { %p4054_p3 = por %p4053_p2, %p4052_p1 }
   0x9   :  { %p4055_p4 = pnand %p4054_p3, %p4048_p0 }
   0xb   :  { %4058 = shalt.err (!%p4055_p4)
}
   0xc   :  { %s4106_s27 = smov 128   ;;  %s4107_s28 = smov 8  }
   0xd   :  { %32 = dma.hbm_to_vmem [thread:$0]  %s6576_s3, 2048, %s27_s25, [#allocation3], %s4106_s27, %s4106_s27, %s4107_s28  }
   0xe   :  { %s4108_s8 = smov [#allocation5]  }
   0xf   :  { %s40_s9 = sshll.u32 %s4108_s8, 4  ;;  %s41_s9 = int_to_ptr.vmem [resolvable:$true] %s40_s9 }
  0x10   :  { %s4067_s10 = scalar_lea.vmem %s41_s9, 8192  ;;  %p4072_p6 = scmp.lt.s32.totalorder %s41_s9, %s41_s9 }
  0x11   :  { %p4068_p5 = scmp.ne.s32.totalorder %s41_s9, %s4067_s10  ;;  %p4073_p7 = scmp.lt.s32.totalorder %s4067_s10, %s4067_s10 }
  0x13   :  { %p4074_p8 = por %p4073_p7, %p4072_p6 }
  0x15   :  { %p4075_p9 = pnand %p4074_p8, %p4068_p5 }
  0x17   :  { %4078 = shalt.err (!%p4075_p9)
}
  0x18   :  { %s4109_s11 = smov 512   ;;  %s4110_s12 = smov 32  }
  0x19   :  { %46 = dma.hbm_to_vmem [thread:$0]  %s6578_s5, 8192, %s41_s9, [#allocation6], %s4109_s11, %s4109_s11, %s4110_s12  }
  0x1a   :  { %4099 = dma.done.wait [#allocation3], 2048  }
  0x1b   :  { %4100 = vsyncadd [#allocation3], 4294965248 }
  0x1c   :  { %4101 = dma.done.wait [#allocation6], 8192  }
  0x1d   :  { %4102 = vsyncadd [#allocation6], 4294959104  ;;  %v55_v0 = vlaneseq  ;;  %vm310_vm2 = vcmask 1040384   ;;  %vm396_vm3 = vcmask 1046528   ;;  %v607_v6 = vld [vmem:[%s6574_s1 + $0x78] sm:$0xff]  ;;  %v606_v7 = vld [vmem:[%s6574_s1 + $0x70] sm:$0xff] }
  0x1e   :  { %v4111_v9 = vmov 0   ;;  %3429 = vmatprep.subr.mxu0 %v607_v6  ;;  %v605_v17 = vld [vmem:[%s6574_s1 + $0x68] sm:$0xff]  ;;  %v604_v22 = vld [vmem:[%s6574_s1 + $0x60] sm:$0xff]  ;;  %v603_v26 = vld [vmem:[%s6574_s1 + $0x58] sm:$0xff]  ;;  %s4115_s29 = smov [#allocation7]  }
  0x1f   :  { %v4162_v1 = vshrl.u32 %v55_v0, 7  ;;  %v4164_v2 = vand.u32 127, %v55_v0  ;;  %3430 = vmatpush3.msra.mxu0 %v607_v6  ;;  %v4219_v29 = vld [vmem:[%s6573_s0] sm:$0xff]  ;;  %v4224_v30 = vld [vmem:[%s6573_s0 + $0x8] sm:$0xff]  ;;  %v4231_v33 = vld [vmem:[%s6573_s0 + $0x10] sm:$0xff] }
  0x20   :  { %3431 = vmatprep.subr.mxu0 %v606_v7  ;;  %v4236_v34 = vld [vmem:[%s6573_s0 + $0x70] sm:$0xff]  ;;  %v4241_v35 = vld [vmem:[%s6573_s0 + $0x78] sm:$0xff]  ;;  %v330_v36 = vrot.slane %v4219_v29, 7  ;;  %v331_v37 = vrot.slane %v4224_v30, 7  ;;  %v397_v38 = vrot.slane %v4219_v29, 1  ;;  %v333_v44 = vrot.slane %v4231_v33, 7 }
  0x21   :  { %6660 = vst [vmem:[#allocation11_spill] sm:$0xff] %v4162_v1  ;;  %6661 = vst [vmem:[#allocation12_spill] sm:$0xff] %v4164_v2  ;;  %v74_v3 = vshra.s32 %v4162_v1, 3  ;;  %v4168_v4 = vshra.s32 %v4164_v2, 3  ;;  %v4173_v5 = vadd.s32 8, %v4162_v1  ;;  %v6582_v8 = vand.u32 7, %v4162_v1  ;;  %3432 = vmatpush3.msra.mxu0 %v606_v7 }
  0x22   :  { %v4183_v12 = vadd.s32 16, %v4162_v1  ;;  %v4186_v15 = vadd.s32 24, %v4162_v1  ;;  %v4189_v16 = vadd.s32 32, %v4162_v1  ;;  %v4198_v18 = vadd.s32 40, %v4162_v1  ;;  %3433 = vmatprep.subr.mxu0 %v605_v17  ;;  %v602_v41 = vld [vmem:[%s6574_s1 + $0x50] sm:$0xff]  ;;  %v601_v51 = vld [vmem:[%s6574_s1 + $0x48] sm:$0xff] }
  0x23   :  { %vm123_vm0 = vcmp.ge.s32.totalorder %v4168_v4, 3  ;;  %vm125_vm1 = vcmp.ge.s32.totalorder %v4168_v4, 6  ;;  %6662 = vst [vmem:[#allocation13_spill] sm:$0xff] %v4173_v5  ;;  %v90_v13 = vand.u32 7, %v74_v3  ;;  %vm374_vm4 = vcmp.eq.s32.totalorder %v4168_v4, 1  ;;  %3434 = vmatpush3.msra.mxu0 %v605_v17  ;;  %v600_v58 = vld [vmem:[%s6574_s1 + $0x40] sm:$0xff] }
  0x24   :  { %v124_v10 = vsel %vm123_vm0, 1, %v4111_v9  ;;  %v126_v11 = vsel %vm125_vm1, 1, %v4111_v9  ;;  %6663 = vst [vmem:[#allocation14_spill] sm:$0xff] %v4183_v12  ;;  %6664 = vst [vmem:[#allocation15_spill] sm:$0xff] %v4186_v15  ;;  %vm6590_vm5 = vcmp.eq.s32.totalorder %v4168_v4, 2  ;;  %vm6589_vm6 = vcmp.eq.s32.totalorder %v4168_v4, 3  ;;  %3435 = vmatprep.subr.mxu0 %v604_v22 }
  0x25   :  { %v127_v14 = vadd.s32 %v126_v11, %v124_v10  ;;  %6665 = vst [vmem:[#allocation16_spill] sm:$0xff] %v4189_v16  ;;  %6666 = vst [vmem:[#allocation17_spill] sm:$0xff] %v4198_v18  ;;  %vm6581_vm7 = vcmp.eq.s32.totalorder %v4168_v4, 4  ;;  %v75_v21 = vshra.s32 %v4173_v5, 3  ;;  %vm6588_vm8 = vcmp.eq.s32.totalorder %v4168_v4, 5  ;;  %3436 = vmatpush3.msra.mxu0 %v604_v22  ;;  %v599_v7 = vld [vmem:[%s6574_s1 + $0x38] sm:$0xff] }
  0x26   :  { %v6583_v23 = vand.u32 7, %v4173_v5  ;;  %v76_v24 = vshra.s32 %v4183_v12, 3  ;;  %v6584_v25 = vand.u32 7, %v4183_v12  ;;  %vm6587_vm9 = vcmp.eq.s32.totalorder %v4168_v4, 6  ;;  %3437 = vmatprep.subr.mxu0 %v603_v26  ;;  %v4339_v17 = vld [vmem:[%s6573_s0 + $0x18] sm:$0xff] }
  0x27   :  { %v4200_v19 = vadd.s32 4294967295, %v127_v14  ;;  %v129_v20 = vmul.u32 3, %v127_v14  ;;  %v91_v31 = vand.u32 7, %v75_v21  ;;  %v77_v32 = vshra.s32 %v4186_v15, 3  ;;  %3438 = vmatpush3.msra.mxu0 %v603_v26  ;;  %v598_v26 = vld [vmem:[%s6574_s1 + $0x30] sm:$0xff] }
  0x28   :  { %vm538_vm10 = vcmp.eq.s32.totalorder %v4168_v4, 7  ;;  %v311_v40 = vrot.slane %v4236_v34, 7  ;;  %vm557_vm13 = vcmp.eq.s32.totalorder %v4168_v4, 8  ;;  %v312_v42 = vrot.slane %v4241_v35, 7  ;;  %3439 = vmatprep.subr.mxu0 %v602_v41 }
  0x29   :  { %v130_v27 = vsub.s32 %v4168_v4, %v129_v20  ;;  %v132_v28 = vadd.s32 %v4200_v19, %v90_v13  ;;  %v332_v43 = vsel %vm310_vm2, %v330_v36, %v331_v37  ;;  %v394_v45 = vrot.slane %v4241_v35, 1  ;;  %3440 = vmatpush3.msra.mxu0 %v602_v41  ;;  %v597_v41 = vld [vmem:[%s6574_s1 + $0x28] sm:$0xff] }
  0x2a   :  { %v379_v48 = vsel %vm374_vm4, %v4224_v30, %v332_v43  ;;  %v398_v49 = vrot.slane %v4224_v30, 1  ;;  %v400_v50 = vrot.slane %v4231_v33, 1  ;;  %v4276_v52 = vsel %vm310_vm2, %v311_v40, %v312_v42  ;;  %3441 = vmatprep.subr.mxu0 %v601_v51 }
  0x2b   :  { %v4247_v39 = vadd.s32 4294967295, %v130_v27  ;;  %vm148_vm11 = vcmp.ge.s32.totalorder %v132_v28, 0  ;;  %vm164_vm12 = vcmp.lt.s32.totalorder %v132_v28, 8  ;;  %v334_v53 = vsel %vm310_vm2, %v331_v37, %v333_v44  ;;  %3442 = vmatpush3.msra.mxu0 %v601_v51 }
  0x2c   :  { %vm4258_vm14 = vmand %vm148_vm11, %vm164_vm12  ;;  %v4282_v54 = vsel %vm310_vm2, %v312_v42, %v330_v36  ;;  %v4287_v55 = vsel %vm396_vm3, %v394_v45, %v397_v38  ;;  %v377_v56 = vsel %vm374_vm4, %v4241_v35, %v4276_v52  ;;  %v4303_v59 = vsel %vm396_vm3, %v397_v38, %v398_v49  ;;  %3443 = vmatprep.subr.mxu0 %v600_v58  ;;  %v4366_v38 = vld [vmem:[%s6573_s0 + $0x20] sm:$0xff] }
  0x2d   :  { %v196_v47 = vadd.s32 %v4247_v39, %v6582_v8  ;;  %v378_v57 = vsel %vm374_vm4, %v4219_v29, %v4282_v54  ;;  %v401_v60 = vsel %vm396_vm3, %v398_v49, %v400_v50  ;;  %v446_v61 = vsel %vm6590_vm5, %v4287_v55, %v377_v56  ;;  %3444 = vmatpush3.msra.mxu0 %v600_v58 }
  0x2e   :  { %v133_v62 = vadd.s32 %v4200_v19, %v91_v31  ;;  %v447_v63 = vsel %vm6590_vm5, %v4303_v59, %v378_v57  ;;  %v448_v0 = vsel %vm6590_vm5, %v401_v60, %v379_v48  ;;  %v465_v3 = vsel %vm6589_vm6, %v4282_v54, %v446_v61  ;;  %3445 = vmatprep.subr.mxu0 %v599_v7 }
  0x2f   :  { %vm212_vm15 = vcmp.ge.s32.totalorder %v196_v47, 0  ;;  %vm244_vm0 = vcmp.lt.s32.totalorder %v196_v47, 8  ;;  %v197_v6 = vadd.s32 %v4247_v39, %v6583_v23  ;;  %v6591_v9 = vmov 0.0   ;;  %3446 = vmatpush3.msra.mxu0 %v599_v7 }
  0x30   :  { %vm228_vm1 = vmand %vm4258_vm14, %vm212_vm15  ;;  %v466_v11 = vsel %vm6589_vm6, %v332_v43, %v447_v63  ;;  %v467_v13 = vsel %vm6589_vm6, %v334_v53, %v448_v0  ;;  %v484_v14 = vsel %vm6581_vm7, %v4219_v29, %v465_v3  ;;  %vm149_vm12 = vcmp.ge.s32.totalorder %v133_v62, 0  ;;  %3447 = vmatprep.subr.mxu0 %v598_v26  ;;  %v4420_v0 = vld [vmem:[%s6573_s0 + $0x28] sm:$0xff] }
  0x31   :  { %vm260_vm11 = vmand %vm228_vm1, %vm244_vm0  ;;  %v485_v20 = vsel %vm6581_vm7, %v4224_v30, %v466_v11  ;;  %v486_v21 = vsel %vm6581_vm7, %v4231_v33, %v467_v13  ;;  %v503_v22 = vsel %vm6588_vm8, %v4303_v59, %v484_v14  ;;  %vm165_vm14 = vcmp.lt.s32.totalorder %v133_v62, 8  ;;  %3448 = vmatpush3.msra.mxu0 %v598_v26  ;;  %v594_v13 = vld [vmem:[%s6574_s1 + $0x10] sm:$0xff] }
  0x32   :  { %v4327_v10 = vsel %vm260_vm11, 1.0, %v6591_v9  ;;  %v504_v27 = vsel %vm6588_vm8, %v401_v60, %v485_v20  ;;  %v522_v28 = vsel %vm6587_vm9, %v332_v43, %v503_v22  ;;  %vm213_vm15 = vcmp.ge.s32.totalorder %v197_v6, 0  ;;  %vm181_vm0 = vmand %vm149_vm12, %vm165_vm14  ;;  %3449 = vmatprep.subr.mxu0 %v597_v41 }
  0x33   :  { %v523_v31 = vsel %vm6587_vm9, %v334_v53, %v504_v27  ;;  %v541_v36 = vsel %vm538_vm10, %v4224_v30, %v522_v28  ;;  %vm245_vm1 = vcmp.lt.s32.totalorder %v197_v6, 8  ;;  %v335_v37 = vrot.slane %v4339_v17, 7  ;;  %vm229_vm11 = vmand %vm181_vm0, %vm213_vm15  ;;  %3450 = vmatpush3.msra.mxu0 %v597_v41 }
  0x34   :  { %v560_v42 = vsel %vm557_vm13, %v401_v60, %v541_v36  ;;  %v380_v30 = vsel %vm374_vm4, %v4231_v33, %v334_v53  ;;  %v402_v43 = vrot.slane %v4339_v17, 1  ;;  %v542_v46 = vsel %vm538_vm10, %v4231_v33, %v523_v31  ;;  %vm261_vm12 = vmand %vm229_vm11, %vm245_vm1  ;;  %v596_v53 = vld [vmem:[%s6574_s1 + $0x20] sm:$0xff]  ;;  %v595_v33 = vld [vmem:[%s6574_s1 + $0x18] sm:$0xff] }
  0x35   :  { %v576_v47 = vmul.f32 %v560_v42, %v4327_v10  ;;  %v336_v48 = vsel %vm310_vm2, %v333_v44, %v335_v37  ;;  %v92_v49 = vand.u32 7, %v76_v24  ;;  %v198_v51 = vadd.s32 %v4247_v39, %v6584_v25  ;;  %3451 = vmatprep.subr.mxu0 %v596_v53 }
  0x36   :  { %v4393_v56 = vsel %vm261_vm12, 1.0, %v6591_v9  ;;  %v403_v57 = vsel %vm396_vm3, %v400_v50, %v402_v43  ;;  %v337_v44 = vrot.slane %v4366_v38, 7  ;;  %v381_v24 = vsel %vm374_vm4, %v4339_v17, %v336_v48  ;;  %3452 = vmatpush3.msra.mxu0 %v596_v53 }
  0x37   :  { %3461 = vmatprep.mubr.f32.mxu0 %v576_v47  ;;  %v449_v58 = vsel %vm6590_vm5, %v403_v57, %v380_v30  ;;  %v505_v60 = vsel %vm6588_vm8, %v403_v57, %v486_v21  ;;  %v561_v61 = vsel %vm557_vm13, %v403_v57, %v542_v46  ;;  %vm214_vm14 = vcmp.ge.s32.totalorder %v198_v51, 0  ;;  %3453 = vmatprep.subr.mxu0 %v595_v33 }
  0x38   :  { %v468_v50 = vsel %vm6589_vm6, %v336_v48, %v449_v58  ;;  %v4414_v62 = vmul.f32 %v561_v61, %v4393_v56  ;;  %v134_v63 = vadd.s32 %v4200_v19, %v92_v49  ;;  %vm246_vm15 = vcmp.lt.s32.totalorder %v198_v51, 8  ;;  %3454 = vmatpush3.msra.mxu0 %v595_v33 }
  0x39   :  { %v338_v3 = vsel %vm310_vm2, %v335_v37, %v337_v44  ;;  %v404_v6 = vrot.slane %v4366_v38, 1  ;;  %v487_v7 = vsel %vm6581_vm7, %v4339_v17, %v468_v50  ;;  %v524_v11 = vsel %vm6587_vm9, %v336_v48, %v505_v60  ;;  %3455 = vmatprep.subr.mxu0 %v594_v13  ;;  %v4474_v48 = vld [vmem:[%s6573_s0 + $0x30] sm:$0xff] }
  0x3a   :  { %vm150_vm0 = vcmp.ge.s32.totalorder %v134_v63, 0  ;;  %vm166_vm1 = vcmp.lt.s32.totalorder %v134_v63, 8  ;;  %v543_v14 = vsel %vm538_vm10, %v4339_v17, %v524_v11  ;;  %v93_v20 = vand.u32 7, %v77_v32  ;;  %v593_v17 = vld [vmem:[%s6574_s1 + $0x8] sm:$0xff]  ;;  %3456 = vmatpush3.msra.mxu0 %v594_v13 }
  0x3b   :  { %vm182_vm11 = vmand %vm150_vm0, %vm166_vm1  ;;  %v405_v21 = vsel %vm396_vm3, %v402_v43, %v404_v6  ;;  %v6585_v22 = vand.u32 7, %v4186_v15  ;;  %v339_v26 = vrot.slane %v4420_v0, 7  ;;  %v382_v27 = vsel %vm374_vm4, %v4366_v38, %v338_v3  ;;  %v592_v43 = vld [vmem:[%s6574_s1] sm:$0xff]  ;;  %3457 = vmatprep.subr.mxu0 %v593_v17 }
  0x3c   :  { %vm230_vm12 = vmand %vm182_vm11, %vm214_vm14  ;;  %v450_v32 = vsel %vm6590_vm5, %v405_v21, %v381_v24  ;;  %v506_v28 = vsel %vm6588_vm8, %v405_v21, %v487_v7  ;;  %v562_v31 = vsel %vm557_vm13, %v405_v21, %v543_v14  ;;  %v135_v36 = vadd.s32 %v4200_v19, %v93_v20  ;;  %3458 = vmatpush3.msra.mxu0 %v593_v17  ;;  %v299_v17 = vld [vmem:[%s6573_s0 + $0x38] sm:$0xff] }
  0x3d   :  { %vm262_vm0 = vmand %vm230_vm12, %vm246_vm15  ;;  %v469_v37 = vsel %vm6589_vm6, %v338_v3, %v450_v32  ;;  %v199_v41 = vadd.s32 %v4247_v39, %v6585_v22  ;;  %v340_v42 = vsel %vm310_vm2, %v337_v44, %v339_v26  ;;  %v406_v30 = vrot.slane %v4420_v0, 1  ;;  %3459 = vmatprep.subr.mxu0 %v592_v43 }
  0x3e   :  { %v4466_v46 = vsel %vm262_vm0, 1.0, %v6591_v9  ;;  %vm151_vm14 = vcmp.ge.s32.totalorder %v135_v36, 0  ;;  %vm167_vm15 = vcmp.lt.s32.totalorder %v135_v36, 8  ;;  %v488_v47 = vsel %vm6581_vm7, %v4366_v38, %v469_v37  ;;  %3460 = vmatpush3.msra.mxu0 %v592_v43 }
  0x3f   :  { %v578_v49 = vmul.f32 %v562_v31, %v4466_v46  ;;  %vm183_vm1 = vmand %vm151_vm14, %vm167_vm15  ;;  %vm215_vm11 = vcmp.ge.s32.totalorder %v199_v41, 0  ;;  %vm247_vm12 = vcmp.lt.s32.totalorder %v199_v41, 8  ;;  %v407_v51 = vsel %vm396_vm3, %v404_v6, %v406_v30  ;;  %3462 = vmatmul.mubr.f32.vlgmr.msra.gmra.mxu0 %v4414_v62 }
  0x40   :  { %vm231_vm0 = vmand %vm183_vm1, %vm215_vm11  ;;  %v451_v53 = vsel %vm6590_vm5, %v407_v51, %v382_v27  ;;  %v507_v57 = vsel %vm6588_vm8, %v407_v51, %v488_v47  ;;  %v525_v44 = vsel %vm6587_vm9, %v338_v3, %v506_v28  ;;  %v78_v24 = vshra.s32 %v4189_v16, 3 }
  0x41   :  { %vm263_vm7 = vmand %vm231_vm0, %vm247_vm12  ;;  %v470_v58 = vsel %vm6589_vm6, %v340_v42, %v451_v53  ;;  %v544_v60 = vsel %vm538_vm10, %v4366_v38, %v525_v44  ;;  %v6586_v61 = vand.u32 7, %v4189_v16  ;;  %v341_v33 = vrot.slane %v4474_v48, 7  ;;  %3464 = vmatprep.mubr.f32.mxu0 %v578_v49 }
  0x42   :  { %v4493_v50 = vsel %vm263_vm7, 1.0, %v6591_v9  ;;  %v563_v63 = vsel %vm557_vm13, %v407_v51, %v544_v60  ;;  %v94_v3 = vand.u32 7, %v78_v24  ;;  %v383_v6 = vsel %vm374_vm4, %v4420_v0, %v340_v42  ;;  %v300_v60 = vld [vmem:[%s6573_s0 + $0x40] sm:$0xff] }
  0x43   :  { %v579_v38 = vmul.f32 %v563_v63, %v4493_v50  ;;  %v200_v7 = vadd.s32 %v4247_v39, %v6586_v61  ;;  %v342_v11 = vsel %vm310_vm2, %v339_v26, %v341_v33  ;;  %v408_v13 = vrot.slane %v4474_v48, 1 }
  0x44   :  { %v136_v14 = vadd.s32 %v4200_v19, %v94_v3  ;;  %vm6669_vm7 = vcmp.eq.s32.totalorder %v4168_v4, 4  ;;  %v526_v62 = vsel %vm6587_vm9, %v340_v42, %v507_v57  ;;  %v79_v21 = vshra.s32 %v4198_v18, 3 }
  0x45   :  { %v489_v20 = vsel %vm6669_vm7, %v4420_v0, %v470_v58  ;;  %vm216_vm14 = vcmp.ge.s32.totalorder %v200_v7, 0  ;;  %vm248_vm15 = vcmp.lt.s32.totalorder %v200_v7, 8  ;;  %v409_v27 = vsel %vm396_vm3, %v406_v30, %v408_v13  ;;  %3465 = vmatmul.mubr.f32.gmra.mxu0 %v579_v38 }
  0x46   :  { %v545_v26 = vsel %vm538_vm10, %v4420_v0, %v526_v62  ;;  %vm152_vm1 = vcmp.ge.s32.totalorder %v136_v14, 0  ;;  %vm168_vm11 = vcmp.lt.s32.totalorder %v136_v14, 8  ;;  %v452_v32 = vsel %vm6590_vm5, %v409_v27, %v383_v6 }
  0x47   :  { %v508_v28 = vsel %vm6588_vm8, %v409_v27, %v489_v20  ;;  %vm184_vm12 = vmand %vm152_vm1, %vm168_vm11  ;;  %v471_v31 = vsel %vm6589_vm6, %v342_v11, %v452_v32  ;;  %v564_v0 = vsel %vm557_vm13, %v409_v27, %v545_v26  ;;  %v95_v36 = vand.u32 7, %v79_v21 }
  0x48   :  { %v6593_v37 = vand.u32 7, %v4198_v18  ;;  %vm232_vm0 = vmand %vm184_vm12, %vm216_vm14  ;;  %v343_v41 = vrot.slane %v299_v17, 7  ;;  %v384_v42 = vsel %vm374_vm4, %v4474_v48, %v342_v11  ;;  %v410_v30 = vrot.slane %v299_v17, 1 }
  0x49   :  { %v490_v43 = vsel %vm6669_vm7, %v4474_v48, %v471_v31  ;;  %vm264_vm1 = vmand %vm232_vm0, %vm248_vm15  ;;  %v137_v47 = vadd.s32 %v4200_v19, %v95_v36  ;;  %v527_v51 = vsel %vm6587_vm9, %v342_v11, %v508_v28  ;;  %v4545_v53 = vadd.s32 48, %v4162_v1 }
  0x4a   :  { %v201_v49 = vadd.s32 %v4247_v39, %v6593_v37  ;;  %v4548_v57 = vsel %vm264_vm1, 1.0, %v6591_v9  ;;  %v344_v44 = vsel %vm310_vm2, %v341_v33, %v343_v41  ;;  %v411_v24 = vsel %vm396_vm3, %v408_v13, %v410_v30 }
  0x4b   :  { %6670 = vst [vmem:[#allocation18_spill] sm:$0xff] %v4545_v53  ;;  %v546_v58 = vsel %vm538_vm10, %v4474_v48, %v527_v51  ;;  %v580_v63 = vmul.f32 %v564_v0, %v4548_v57  ;;  %vm153_vm14 = vcmp.ge.s32.totalorder %v137_v47, 0  ;;  %vm169_vm15 = vcmp.lt.s32.totalorder %v137_v47, 8 }
  0x4c   :  { %vm217_vm11 = vcmp.ge.s32.totalorder %v201_v49, 0  ;;  %vm185_vm12 = vmand %vm153_vm14, %vm169_vm15  ;;  %vm249_vm0 = vcmp.lt.s32.totalorder %v201_v49, 8  ;;  %v453_v33 = vsel %vm6590_vm5, %v411_v24, %v384_v42  ;;  %v509_v3 = vsel %vm6588_vm8, %v411_v24, %v490_v43  ;;  %v301_v42 = vld [vmem:[%s6573_s0 + $0x48] sm:$0xff] }
  0x4d   :  { %v565_v48 = vsel %vm557_vm13, %v411_v24, %v546_v58  ;;  %3467 = vmatprep.mubr.f32.mxu0 %v580_v63  ;;  %vm233_vm7 = vmand %vm185_vm12, %vm217_vm11  ;;  %v472_v6 = vsel %vm6589_vm6, %v344_v44, %v453_v33  ;;  %v80_v38 = vshra.s32 %v4545_v53, 3  ;;  %v6594_v7 = vand.u32 7, %v4545_v53  ;;  %v4606_v24 = vld [vmem:[%s6573_s0 + $0x50] sm:$0xff] }
  0x4e   :  { %v345_v11 = vrot.slane %v300_v60, 7  ;;  %vm265_vm1 = vmand %vm233_vm7, %vm249_vm0  ;;  %v385_v13 = vsel %vm374_vm4, %v299_v17, %v344_v44  ;;  %v412_v14 = vrot.slane %v300_v60, 1  ;;  %vm6671_vm14 = vcmp.eq.s32.totalorder %v4168_v4, 4 }
  0x4f   :  { %v491_v20 = vsel %vm6671_vm14, %v299_v17, %v472_v6  ;;  %v528_v62 = vsel %vm6587_vm9, %v344_v44, %v509_v3  ;;  %v4576_v21 = vsel %vm265_vm1, 1.0, %v6591_v9  ;;  %v96_v27 = vand.u32 7, %v80_v38  ;;  %vm6673_vm1 = vmmov %vm6671_vm14 }
  0x50   :  { %v202_v26 = vadd.s32 %v4247_v39, %v6594_v7  ;;  %v346_v32 = vsel %vm310_vm2, %v343_v41, %v345_v11  ;;  %v581_v28 = vmul.f32 %v565_v48, %v4576_v21  ;;  %v413_v31 = vsel %vm396_vm3, %v410_v30, %v412_v14 }
  0x51   :  { %v547_v0 = vsel %vm538_vm10, %v299_v17, %v528_v62  ;;  %v4587_v36 = vadd.s32 56, %v4162_v1  ;;  %v138_v43 = vadd.s32 %v4200_v19, %v96_v27  ;;  %v454_v41 = vsel %vm6590_vm5, %v413_v31, %v385_v13 }
  0x52   :  { %vm218_vm15 = vcmp.ge.s32.totalorder %v202_v26, 0  ;;  %vm250_vm11 = vcmp.lt.s32.totalorder %v202_v26, 8  ;;  %3468 = vmatmul.mubr.f32.gmra.mxu0 %v581_v28  ;;  %v473_v30 = vsel %vm6589_vm6, %v346_v32, %v454_v41  ;;  %v510_v17 = vsel %vm6588_vm8, %v413_v31, %v491_v20  ;;  %v4645_v41 = vld [vmem:[%s6573_s0 + $0x58] sm:$0xff] }
  0x53   :  { %6672 = vst [vmem:[#allocation19_spill] sm:$0xff] %v4587_v36  ;;  %v566_v47 = vsel %vm557_vm13, %v413_v31, %v547_v0  ;;  %v81_v49 = vshra.s32 %v4587_v36, 3  ;;  %vm154_vm12 = vcmp.ge.s32.totalorder %v138_v43, 0  ;;  %vm170_vm0 = vcmp.lt.s32.totalorder %v138_v43, 8 }
  0x54   :  { %v6595_v51 = vand.u32 7, %v4587_v36  ;;  %v347_v44 = vrot.slane %v301_v42, 7  ;;  %vm186_vm7 = vmand %vm154_vm12, %vm170_vm0  ;;  %v386_v63 = vsel %vm374_vm4, %v300_v60, %v346_v32  ;;  %v414_v33 = vrot.slane %v301_v42, 1 }
  0x55   :  { %v97_v58 = vand.u32 7, %v81_v49  ;;  %v492_v3 = vsel %vm6673_vm1, %v300_v60, %v473_v30  ;;  %vm234_vm14 = vmand %vm186_vm7, %vm218_vm15  ;;  %v529_v38 = vsel %vm6587_vm9, %v346_v32, %v510_v17  ;;  %v4620_v13 = vadd.s32 64, %v4162_v1 }
  0x56   :  { %v203_v48 = vadd.s32 %v4247_v39, %v6595_v51  ;;  %v348_v6 = vsel %vm310_vm2, %v345_v11, %v347_v44  ;;  %vm266_vm12 = vmand %vm234_vm14, %vm250_vm11  ;;  %v415_v62 = vsel %vm396_vm3, %v412_v14, %v414_v33  ;;  %v548_v27 = vsel %vm538_vm10, %v300_v60, %v529_v38 }
  0x57   :  { %6674 = vst [vmem:[#allocation20_spill] sm:$0xff] %v4620_v13  ;;  %v139_v20 = vadd.s32 %v4200_v19, %v97_v58  ;;  %v349_v28 = vrot.slane %v4606_v24, 7  ;;  %v4629_v31 = vsel %vm266_vm12, 1.0, %v6591_v9  ;;  %v455_v11 = vsel %vm6590_vm5, %v415_v62, %v386_v63 }
  0x58   :  { %vm219_vm15 = vcmp.ge.s32.totalorder %v203_v48, 0  ;;  %vm251_vm0 = vcmp.lt.s32.totalorder %v203_v48, 8  ;;  %v582_v26 = vmul.f32 %v566_v47, %v4629_v31  ;;  %v474_v14 = vsel %vm6589_vm6, %v348_v6, %v455_v11 }
  0x59   :  { %vm155_vm11 = vcmp.ge.s32.totalorder %v139_v20, 0  ;;  %vm171_vm7 = vcmp.lt.s32.totalorder %v139_v20, 8  ;;  %v511_v60 = vsel %vm6588_vm8, %v415_v62, %v492_v3  ;;  %v567_v32 = vsel %vm557_vm13, %v415_v62, %v548_v27 }
  0x5a   :  { %vm187_vm1 = vmand %vm155_vm11, %vm171_vm7  ;;  %v82_v0 = vshra.s32 %v4620_v13, 3  ;;  %v6596_v43 = vand.u32 7, %v4620_v13  ;;  %3470 = vmatprep.mubr.f32.mxu0 %v582_v26  ;;  %v350_v30 = vsel %vm310_vm2, %v347_v44, %v349_v28  ;;  %v387_v17 = vsel %vm374_vm4, %v301_v42, %v348_v6 }
  0x5b   :  { %vm235_vm14 = vmand %vm187_vm1, %vm219_vm15  ;;  %v416_v47 = vrot.slane %v4606_v24, 1  ;;  %vm6675_vm12 = vcmp.eq.s32.totalorder %v4168_v4, 4  ;;  %v530_v3 = vsel %vm6587_vm9, %v348_v6, %v511_v60  ;;  %v4660_v44 = vadd.s32 72, %v4162_v1 }
  0x5c   :  { %v493_v49 = vsel %vm6675_vm12, %v301_v42, %v474_v14  ;;  %vm267_vm11 = vmand %vm235_vm14, %vm251_vm0  ;;  %v98_v58 = vand.u32 7, %v82_v0  ;;  %v204_v63 = vadd.s32 %v4247_v39, %v6596_v43  ;;  %v549_v48 = vsel %vm538_vm10, %v301_v42, %v530_v3 }
  0x5d   :  { %6676 = vst [vmem:[#allocation21_spill] sm:$0xff] %v4660_v44  ;;  %v4663_v38 = vsel %vm267_vm11, 1.0, %v6591_v9  ;;  %v417_v20 = vsel %vm396_vm3, %v414_v33, %v416_v47  ;;  %v351_v62 = vrot.slane %v4645_v41, 7  ;;  %v83_v14 = vshra.s32 %v4660_v44, 3 }
  0x5e   :  { %v583_v27 = vmul.f32 %v567_v32, %v4663_v38  ;;  %v140_v11 = vadd.s32 %v4200_v19, %v98_v58  ;;  %vm220_vm15 = vcmp.ge.s32.totalorder %v204_v63, 0  ;;  %vm252_vm0 = vcmp.lt.s32.totalorder %v204_v63, 8  ;;  %v4684_v32 = vld [vmem:[%s6573_s0 + $0x60] sm:$0xff] }
  0x5f   :  { %v456_v6 = vsel %vm6590_vm5, %v417_v20, %v387_v17  ;;  %v512_v26 = vsel %vm6588_vm8, %v417_v20, %v493_v49  ;;  %v568_v33 = vsel %vm557_vm13, %v417_v20, %v549_v48  ;;  %v6597_v60 = vand.u32 7, %v4660_v44 }
  0x60   :  { %3471 = vmatmul.mubr.f32.gmra.mxu0 %v583_v27  ;;  %vm156_vm7 = vcmp.ge.s32.totalorder %v140_v11, 0  ;;  %vm172_vm1 = vcmp.lt.s32.totalorder %v140_v11, 8  ;;  %v475_v42 = vsel %vm6589_vm6, %v350_v30, %v456_v6  ;;  %v99_v0 = vand.u32 7, %v83_v14 }
  0x61   :  { %vm188_vm14 = vmand %vm156_vm7, %vm172_vm1  ;;  %v352_v17 = vsel %vm310_vm2, %v349_v28, %v351_v62  ;;  %v388_v49 = vsel %vm374_vm4, %v4606_v24, %v350_v30  ;;  %v418_v58 = vrot.slane %v4645_v41, 1  ;;  %v205_v3 = vadd.s32 %v4247_v39, %v6597_v60 }
  0x62   :  { %vm236_vm12 = vmand %vm188_vm14, %vm220_vm15  ;;  %vm6677_vm11 = vcmp.eq.s32.totalorder %v4168_v4, 4  ;;  %v531_v48 = vsel %vm6587_vm9, %v350_v30, %v512_v26  ;;  %v4701_v28 = vadd.s32 80, %v4162_v1  ;;  %v141_v27 = vadd.s32 %v4200_v19, %v99_v0 }
  0x63   :  { %v494_v20 = vsel %vm6677_vm11, %v4606_v24, %v475_v42  ;;  %vm268_vm7 = vmand %vm236_vm12, %vm252_vm0  ;;  %v419_v11 = vsel %vm396_vm3, %v416_v47, %v418_v58  ;;  %v550_v6 = vsel %vm538_vm10, %v4606_v24, %v531_v48  ;;  %v353_v14 = vrot.slane %v4684_v32, 7 }
  0x64   :  { %6678 = vst [vmem:[#allocation22_spill] sm:$0xff] %v4701_v28  ;;  %v4711_v42 = vsel %vm268_vm7, 1.0, %v6591_v9  ;;  %vm221_vm15 = vcmp.ge.s32.totalorder %v205_v3, 0  ;;  %vm253_vm1 = vcmp.lt.s32.totalorder %v205_v3, 8  ;;  %v457_v30 = vsel %vm6590_vm5, %v419_v11, %v388_v49 }
  0x65   :  { %v584_v63 = vmul.f32 %v568_v33, %v4711_v42  ;;  %vm157_vm0 = vcmp.ge.s32.totalorder %v141_v27, 0  ;;  %vm173_vm14 = vcmp.lt.s32.totalorder %v141_v27, 8  ;;  %v476_v47 = vsel %vm6589_vm6, %v352_v17, %v457_v30 }
  0x66   :  { %vm189_vm12 = vmand %vm157_vm0, %vm173_vm14  ;;  %v513_v24 = vsel %vm6588_vm8, %v419_v11, %v494_v20  ;;  %v84_v26 = vshra.s32 %v4701_v28, 3  ;;  %v6598_v0 = vand.u32 7, %v4701_v28  ;;  %v569_v49 = vsel %vm557_vm13, %v419_v11, %v550_v6  ;;  %v4734_v20 = vld [vmem:[%s6573_s0 + $0x68] sm:$0xff] }
  0x67   :  { %3473 = vmatprep.mubr.f32.mxu0 %v584_v63  ;;  %vm237_vm11 = vmand %vm189_vm12, %vm221_vm15  ;;  %v389_v33 = vsel %vm374_vm4, %v4645_v41, %v352_v17  ;;  %v420_v48 = vrot.slane %v4684_v32, 1  ;;  %vm6679_vm7 = vcmp.eq.s32.totalorder %v4168_v4, 4  ;;  %v532_v6 = vsel %vm6587_vm9, %v352_v17, %v513_v24 }
  0x68   :  { %v495_v27 = vsel %vm6679_vm7, %v4645_v41, %v476_v47  ;;  %vm269_vm15 = vmand %vm237_vm11, %vm253_vm1  ;;  %v100_v30 = vand.u32 7, %v84_v26  ;;  %v206_v11 = vadd.s32 %v4247_v39, %v6598_v0  ;;  %v4743_v63 = vadd.s32 88, %v4162_v1 }
  0x69   :  { %v4746_v47 = vsel %vm269_vm15, 1.0, %v6591_v9  ;;  %v354_v8 = vsel %vm310_vm2, %v351_v62, %v353_v14  ;;  %v421_v23 = vsel %vm396_vm3, %v418_v58, %v420_v48  ;;  %v551_v3 = vsel %vm538_vm10, %v4645_v41, %v532_v6 }
  0x6a   :  { %6680 = vst [vmem:[#allocation23_spill] sm:$0xff] %v4743_v63  ;;  %v585_v26 = vmul.f32 %v569_v49, %v4746_v47  ;;  %v142_v25 = vadd.s32 %v4200_v19, %v100_v30  ;;  %vm222_vm1 = vcmp.ge.s32.totalorder %v206_v11, 0  ;;  %v355_v17 = vrot.slane %v4734_v20, 7 }
  0x6b   :  { %vm254_vm0 = vcmp.lt.s32.totalorder %v206_v11, 8  ;;  %v458_v24 = vsel %vm6590_vm5, %v421_v23, %v389_v33  ;;  %v514_v62 = vsel %vm6588_vm8, %v421_v23, %v495_v27  ;;  %v85_v58 = vshra.s32 %v4743_v63, 3 }
  0x6c   :  { %3474 = vmatmul.mubr.f32.gmra.mxu0 %v585_v26  ;;  %vm158_vm14 = vcmp.ge.s32.totalorder %v142_v25, 0  ;;  %vm174_vm12 = vcmp.lt.s32.totalorder %v142_v25, 8  ;;  %v477_v41 = vsel %vm6589_vm6, %v354_v8, %v458_v24  ;;  %v6599_v49 = vand.u32 7, %v4743_v63 }
  0x6d   :  { %vm190_vm11 = vmand %vm158_vm14, %vm174_vm12  ;;  %v570_v30 = vsel %vm557_vm13, %v421_v23, %v551_v3  ;;  %v101_v6 = vand.u32 7, %v85_v58  ;;  %v390_v33 = vsel %vm374_vm4, %v4684_v32, %v354_v8  ;;  %v422_v27 = vrot.slane %v4734_v20, 1 }
  0x6e   :  { %vm238_vm7 = vmand %vm190_vm11, %vm222_vm1  ;;  %v207_v25 = vadd.s32 %v4247_v39, %v6599_v49  ;;  %v356_v26 = vsel %vm310_vm2, %v353_v14, %v355_v17  ;;  %v533_v24 = vsel %vm6587_vm9, %v354_v8, %v514_v62  ;;  %v4778_v23 = vadd.s32 96, %v4162_v1 }
  0x6f   :  { %vm270_vm15 = vmand %vm238_vm7, %vm254_vm0  ;;  %v143_v3 = vadd.s32 %v4200_v19, %v101_v6  ;;  %v423_v58 = vsel %vm396_vm3, %v420_v48, %v422_v27  ;;  %vm6682_vm1 = vcmp.eq.s32.totalorder %v4168_v4, 4  ;;  %v552_v14 = vsel %vm538_vm10, %v4684_v32, %v533_v24 }
  0x70   :  { %6681 = vst [vmem:[#allocation24_spill] sm:$0xff] %v4778_v23  ;;  %v496_v22 = vsel %vm6682_vm1, %v4684_v32, %v477_v41  ;;  %v4790_v61 = vsel %vm270_vm15, 1.0, %v6591_v9  ;;  %vm223_vm14 = vcmp.ge.s32.totalorder %v207_v25, 0  ;;  %vm255_vm12 = vcmp.lt.s32.totalorder %v207_v25, 8 }
  0x71   :  { %v459_v8 = vsel %vm6590_vm5, %v423_v58, %v390_v33  ;;  %v586_v11 = vmul.f32 %v570_v30, %v4790_v61  ;;  %vm159_vm0 = vcmp.ge.s32.totalorder %v143_v3, 0  ;;  %vm175_vm11 = vcmp.lt.s32.totalorder %v143_v3, 8 }
  0x72   :  { %v478_v48 = vsel %vm6589_vm6, %v356_v26, %v459_v8  ;;  %vm191_vm7 = vmand %vm159_vm0, %vm175_vm11  ;;  %v515_v62 = vsel %vm6588_vm8, %v423_v58, %v496_v22  ;;  %v86_v32 = vshra.s32 %v4778_v23, 3  ;;  %v6600_v41 = vand.u32 7, %v4778_v23 }
  0x73   :  { %v357_v6 = vsel %vm310_vm2, %v355_v17, %v311_v40  ;;  %3476 = vmatprep.mubr.f32.mxu0 %v586_v11  ;;  %vm239_vm15 = vmand %vm191_vm7, %vm223_vm14  ;;  %v571_v30 = vsel %vm557_vm13, %v423_v58, %v552_v14  ;;  %v391_v33 = vsel %vm374_vm4, %v4734_v20, %v356_v26  ;;  %v424_v24 = vrot.slane %v4236_v34, 1 }
  0x74   :  { %v534_v22 = vsel %vm6587_vm9, %v356_v26, %v515_v62  ;;  %vm271_vm1 = vmand %vm239_vm15, %vm255_vm12  ;;  %v102_v3 = vand.u32 7, %v86_v32  ;;  %v208_v40 = vadd.s32 %v4247_v39, %v6600_v41  ;;  %vm6683_vm14 = vcmp.eq.s32.totalorder %v4168_v4, 4 }
  0x75   :  { %v497_v17 = vsel %vm6683_vm14, %v4734_v20, %v478_v48  ;;  %v4820_v58 = vadd.s32 104, %v4162_v1  ;;  %v4823_v14 = vsel %vm271_vm1, 1.0, %v6591_v9  ;;  %v425_v8 = vsel %vm396_vm3, %v422_v27, %v424_v24  ;;  %vm6685_vm1 = vmmov %vm6683_vm14 }
  0x76   :  { %v553_v25 = vsel %vm538_vm10, %v4734_v20, %v534_v22  ;;  %v392_v26 = vsel %vm374_vm4, %v4236_v34, %v357_v6  ;;  %v587_v11 = vmul.f32 %v571_v30, %v4823_v14  ;;  %v144_v48 = vadd.s32 %v4200_v19, %v102_v3 }
  0x77   :  { %6684 = vst [vmem:[#allocation25_spill] sm:$0xff] %v4820_v58  ;;  %vm224_vm12 = vcmp.ge.s32.totalorder %v208_v40, 0  ;;  %v426_v62 = vsel %vm396_vm3, %v424_v24, %v394_v45  ;;  %vm256_vm0 = vcmp.lt.s32.totalorder %v208_v40, 8  ;;  %v460_v27 = vsel %vm6590_vm5, %v425_v8, %v391_v33 }
  0x78   :  { %v516_v20 = vsel %vm6588_vm8, %v425_v8, %v497_v17  ;;  %v87_v32 = vshra.s32 %v4820_v58, 3  ;;  %3477 = vmatmul.mubr.f32.gmra.mxu0 %v587_v11  ;;  %vm160_vm11 = vcmp.ge.s32.totalorder %v144_v48, 0  ;;  %vm176_vm7 = vcmp.lt.s32.totalorder %v144_v48, 8 }
  0x79   :  { %v479_v30 = vsel %vm6589_vm6, %v357_v6, %v460_v27  ;;  %v6601_v22 = vand.u32 7, %v4820_v58  ;;  %vm192_vm15 = vmand %vm160_vm11, %vm176_vm7  ;;  %v461_v45 = vsel %vm6590_vm5, %v426_v62, %v392_v26  ;;  %v535_v24 = vsel %vm6587_vm9, %v357_v6, %v516_v20 }
  0x7a   :  { %v103_v3 = vand.u32 7, %v87_v32  ;;  %v498_v33 = vsel %vm6685_vm1, %v4236_v34, %v479_v30  ;;  %vm240_vm14 = vmand %vm192_vm15, %vm224_vm12  ;;  %v572_v17 = vsel %vm557_vm13, %v425_v8, %v553_v25  ;;  %v480_v48 = vsel %vm6589_vm6, %v4276_v52, %v461_v45 }
  0x7b   :  { %v209_v11 = vadd.s32 %v4247_v39, %v6601_v22  ;;  %vm272_vm11 = vmand %vm240_vm14, %vm256_vm0  ;;  %v517_v6 = vsel %vm6588_vm8, %v426_v62, %v498_v33  ;;  %v4866_v27 = vadd.s32 112, %v4162_v1  ;;  %v554_v40 = vsel %vm538_vm10, %v4236_v34, %v535_v24 }
  0x7c   :  { %v145_v26 = vadd.s32 %v4200_v19, %v103_v3  ;;  %v4869_v8 = vsel %vm272_vm11, 1.0, %v6591_v9  ;;  %v536_v30 = vsel %vm6587_vm9, %v4276_v52, %v517_v6  ;;  %v4881_v3 = vadd.s32 120, %v4162_v1 }
  0x7d   :  { %6686 = vst [vmem:[#allocation26_spill] sm:$0xff] %v4866_v27  ;;  %vm225_vm12 = vcmp.ge.s32.totalorder %v209_v11, 0  ;;  %vm257_vm7 = vcmp.lt.s32.totalorder %v209_v11, 8  ;;  %v588_v25 = vmul.f32 %v572_v17, %v4869_v8  ;;  %v88_v20 = vshra.s32 %v4866_v27, 3 }
  0x7e   :  { %vm161_vm0 = vcmp.ge.s32.totalorder %v145_v26, 0  ;;  %vm177_vm15 = vcmp.lt.s32.totalorder %v145_v26, 8  ;;  %v6602_v32 = vand.u32 7, %v4866_v27  ;;  %6687 = vst [vmem:[#allocation27_spill] sm:$0xff] %v4881_v3  ;;  %vm6688_vm14 = vcmp.eq.s32.totalorder %v4168_v4, 4 }
  0x7f   :  { %vm193_vm1 = vmand %vm161_vm0, %vm177_vm15  ;;  %v499_v34 = vsel %vm6688_vm14, %v4241_v35, %v480_v48  ;;  %3479 = vmatprep.mubr.f32.mxu0 %v588_v25  ;;  %v573_v45 = vsel %vm557_vm13, %v426_v62, %v554_v40  ;;  %v104_v33 = vand.u32 7, %v88_v20  ;;  %v89_v17 = vshra.s32 %v4881_v3, 3 }
  0x80   :  { %vm241_vm11 = vmand %vm193_vm1, %vm225_vm12  ;;  %v518_v24 = vsel %vm6588_vm8, %v4287_v55, %v499_v34  ;;  %v210_v52 = vadd.s32 %v4247_v39, %v6602_v32  ;;  %v6603_v26 = vand.u32 7, %v4881_v3  ;;  %v555_v6 = vsel %vm538_vm10, %v4241_v35, %v536_v30 }
  0x81   :  { %vm273_vm0 = vmand %vm241_vm11, %vm257_vm7  ;;  %v146_v62 = vadd.s32 %v4200_v19, %v104_v33  ;;  %v105_v40 = vand.u32 7, %v89_v17  ;;  %v537_v25 = vsel %vm6587_vm9, %v4282_v54, %v518_v24  ;;  %v574_v35 = vsel %vm557_vm13, %v4287_v55, %v555_v6  ;;  %v1048_v33 = vld [vmem:[#allocation2 + $0x70] sm:$0xff]  ;;  %v1047_v24 = vld [vmem:[#allocation2 + $0x68] sm:$0xff] }
  0x82   :  { %v4898_v48 = vsel %vm273_vm0, 1.0, %v6591_v9  ;;  %vm226_vm12 = vcmp.ge.s32.totalorder %v210_v52, 0  ;;  %vm258_vm1 = vcmp.lt.s32.totalorder %v210_v52, 8  ;;  %v211_v20 = vadd.s32 %v4247_v39, %v6603_v26  ;;  %v1046_v52 = vld [vmem:[#allocation2 + $0x60] sm:$0xff]  ;;  %v1044_v17 = vld [vmem:[#allocation2 + $0x50] sm:$0xff] }
  0x83   :  { %v589_v11 = vmul.f32 %v573_v45, %v4898_v48  ;;  %vm162_vm7 = vcmp.ge.s32.totalorder %v146_v62, 0  ;;  %vm178_vm15 = vcmp.lt.s32.totalorder %v146_v62, 8  ;;  %v147_v34 = vadd.s32 %v4200_v19, %v105_v40  ;;  %v1049_v45 = vld [vmem:[#allocation2 + $0x78] sm:$0xff]  ;;  %v1043_v62 = vld [vmem:[#allocation2 + $0x48] sm:$0xff]  ;;  %v1042_v6 = vld [vmem:[#allocation2 + $0x40] sm:$0xff] }
  0x84   :  { %vm194_vm14 = vmand %vm162_vm7, %vm178_vm15  ;;  %vm227_vm0 = vcmp.ge.s32.totalorder %v211_v20, 0  ;;  %v556_v54 = vsel %vm538_vm10, %v4219_v29, %v537_v25  ;;  %vm259_vm5 = vcmp.lt.s32.totalorder %v211_v20, 8  ;;  %3485 = vmatprep.subr.mxu1 %v1049_v45  ;;  %v1040_v40 = vld [vmem:[#allocation2 + $0x30] sm:$0xff]  ;;  %v1039_v25 = vld [vmem:[#allocation2 + $0x28] sm:$0xff] }
  0x85   :  { %3480 = vmatmul.mubr.f32.gmra.mxu0 %v589_v11  ;;  %vm242_vm11 = vmand %vm194_vm14, %vm226_vm12  ;;  %vm163_vm8 = vcmp.ge.s32.totalorder %v147_v34, 0  ;;  %vm179_vm6 = vcmp.lt.s32.totalorder %v147_v34, 8  ;;  %v575_v55 = vsel %vm557_vm13, %v4303_v59, %v556_v54  ;;  %3486 = vmatpush3.msra.mxu1 %v1049_v45  ;;  %v1045_v59 = vld [vmem:[#allocation2 + $0x58] sm:$0xff]  ;;  %v1038_v20 = vld [vmem:[#allocation2 + $0x20] sm:$0xff]  ;;  %vm6694_vm14 = vcmp.eq.s32.totalorder %v4168_v4, 4 }
  0x86   :  { %vm274_vm9 = vmand %vm242_vm11, %vm258_vm1  ;;  %3487 = vmatprep.subr.mxu1 %v1048_v33  ;;  %v1041_v11 = vld [vmem:[#allocation2 + $0x38] sm:$0xff]  ;;  %v1035_v54 = vld [vmem:[#allocation2 + $0x8] sm:$0xff] }
  0x87   :  { %v4919_v39 = vsel %vm274_vm9, 1.0, %v6591_v9  ;;  %vm195_vm7 = vmand %vm163_vm8, %vm179_vm6  ;;  %3488 = vmatpush3.msra.mxu1 %v1048_v33  ;;  %v1037_v34 = vld [vmem:[#allocation2 + $0x18] sm:$0xff]  ;;  %v1248_v45 = vld [vmem:[#allocation5 + $0x1c0] sm:$0xff]  ;;  %vm6691_vm8 = vcmp.eq.s32.totalorder %v4168_v4, 3 }
  0x88   :  { %v590_v19 = vmul.f32 %v574_v35, %v4919_v39  ;;  %vm243_vm12 = vmand %vm195_vm7, %vm227_vm0  ;;  %3489 = vmatprep.subr.mxu1 %v1047_v24  ;;  %v1036_v35 = vld [vmem:[#allocation2 + $0x10] sm:$0xff]  ;;  %v1247_v33 = vld [vmem:[#allocation5 + $0x1a0] sm:$0xff] }
  0x89   :  { %vm275_vm15 = vmand %vm243_vm12, %vm259_vm5  ;;  %3490 = vmatpush3.msra.mxu1 %v1047_v24  ;;  %v1246_v24 = vld [vmem:[#allocation5 + $0x180] sm:$0xff]  ;;  %vm6689_vm5 = vcmp.eq.s32.totalorder %v4168_v4, 2  ;;  %vm6698_vm12 = vcmp.eq.s32.totalorder %v4168_v4, 5 }
  0x8a   :  { %3482 = vmatprep.mubr.f32.mxu0 %v590_v19  ;;  %v4926_v30 = vsel %vm275_vm15, 1.0, %v6591_v9  ;;  %3491 = vmatprep.subr.mxu1 %v1046_v52  ;;  %v1034_v19 = vld [vmem:[#allocation2] sm:$0xff]  ;;  %vm6690_vm6 = vmmov %vm6689_vm5 }
  0x8b   :  { %v591_v29 = vmul.f32 %v575_v55, %v4926_v30  ;;  %3492 = vmatpush3.msra.mxu1 %v1046_v52  ;;  %v1249_v55 = vld [vmem:[#allocation5 + $0x1e0] sm:$0xff]  ;;  %vm6692_vm9 = vmmov %vm6691_vm8 }
  0x8c   :  { %3493 = vmatprep.subr.mxu1 %v1045_v59  ;;  %3541 = vmatprep.subr.mxu0 %v1249_v55  ;;  %v1245_v52 = vld [vmem:[#allocation5 + $0x160] sm:$0xff]  ;;  %vm6693_vm1 = vmmov %vm6689_vm5 }
  0x8d   :  { %3483 = vmatmul.mubr.f32.gmra.mxu0 %v591_v29  ;;  %3494 = vmatpush3.msra.mxu1 %v1045_v59  ;;  %v4929_v29 = vld [vmem:[#allocation5 + $0x1e8] sm:$0xff]  ;;  %v1244_v59 = vld [vmem:[#allocation5 + $0x140] sm:$0xff]  ;;  %vm6695_vm11 = vmmov %vm6691_vm8 }
  0x8e   :  { %3495 = vmatprep.subr.mxu1 %v1044_v17  ;;  %3542 = vmatpush3.msra.mxu0 %v1249_v55  ;;  %vm6696_vm0 = vmmov %vm6694_vm14 }
  0x8f   :  { %3496 = vmatpush3.msra.mxu1 %v1044_v17  ;;  %3543 = vmatprep.subr.mxu0 %v1248_v45  ;;  %v1243_v17 = vld [vmem:[#allocation5 + $0x120] sm:$0xff]  ;;  %vm6697_vm7 = vmmov %vm6693_vm1 }
  0x90   :  { %3497 = vmatprep.subr.mxu1 %v1043_v62  ;;  %3544 = vmatpush3.msra.mxu0 %v1248_v45  ;;  %vm6699_vm15 = vmmov %vm6698_vm12 }
  0x91   :  { %3498 = vmatpush3.msra.mxu1 %v1043_v62  ;;  %3545 = vmatprep.subr.mxu0 %v1247_v33  ;;  %v1242_v62 = vld [vmem:[#allocation5 + $0x100] sm:$0xff] }
  0x92   :  { %3499 = vmatprep.subr.mxu1 %v1042_v6  ;;  %3546 = vmatpush3.msra.mxu0 %v1247_v33 }
  0x93   :  { %3500 = vmatpush3.msra.mxu1 %v1042_v6  ;;  %3547 = vmatprep.subr.mxu0 %v1246_v24  ;;  %v1241_v6 = vld [vmem:[#allocation5 + $0xe0] sm:$0xff] }
  0x94   :  { %3501 = vmatprep.subr.mxu1 %v1041_v11  ;;  %3548 = vmatpush3.msra.mxu0 %v1246_v24 }
  0x95   :  { %3502 = vmatpush3.msra.mxu1 %v1041_v11  ;;  %3549 = vmatprep.subr.mxu0 %v1245_v52  ;;  %v1240_v11 = vld [vmem:[#allocation5 + $0xc0] sm:$0xff] }
  0x96   :  { %3503 = vmatprep.subr.mxu1 %v1040_v40  ;;  %3550 = vmatpush3.msra.mxu0 %v1245_v52 }
  0x97   :  { %3504 = vmatpush3.msra.mxu1 %v1040_v40  ;;  %3551 = vmatprep.subr.mxu0 %v1244_v59  ;;  %v1239_v40 = vld [vmem:[#allocation5 + $0xa0] sm:$0xff] }
  0x98   :  { %3505 = vmatprep.subr.mxu1 %v1039_v25  ;;  %3552 = vmatpush3.msra.mxu0 %v1244_v59 }
  0x99   :  { %3506 = vmatpush3.msra.mxu1 %v1039_v25  ;;  %3553 = vmatprep.subr.mxu0 %v1243_v17  ;;  %v1238_v25 = vld [vmem:[#allocation5 + $0x80] sm:$0xff] }
  0x9a   :  { %3507 = vmatprep.subr.mxu1 %v1038_v20  ;;  %3554 = vmatpush3.msra.mxu0 %v1243_v17 }
  0x9b   :  { %3508 = vmatpush3.msra.mxu1 %v1038_v20  ;;  %3555 = vmatprep.subr.mxu0 %v1242_v62 }
  0x9c   :  { %3509 = vmatprep.subr.mxu1 %v1037_v34  ;;  %3556 = vmatpush3.msra.mxu0 %v1242_v62 }
  0x9d   :  { %3510 = vmatpush3.msra.mxu1 %v1037_v34  ;;  %3557 = vmatprep.subr.mxu0 %v1241_v6 }
  0x9e   :  { %3511 = vmatprep.subr.mxu1 %v1036_v35  ;;  %3558 = vmatpush3.msra.mxu0 %v1241_v6 }
  0x9f   :  { %3512 = vmatpush3.msra.mxu1 %v1036_v35  ;;  %3559 = vmatprep.subr.mxu0 %v1240_v11 }
  0xa0   :  { %3513 = vmatprep.subr.mxu1 %v1035_v54  ;;  %3560 = vmatpush3.msra.mxu0 %v1240_v11 }
  0xa1   :  { %3514 = vmatpush3.msra.mxu1 %v1035_v54  ;;  %3561 = vmatprep.subr.mxu0 %v1239_v40 }
  0xa2   :  { %3515 = vmatprep.subr.mxu1 %v1034_v19  ;;  %3562 = vmatpush3.msra.mxu0 %v1239_v40 }
  0xa3   :  { %3516 = vmatpush3.msra.mxu1 %v1034_v19  ;;  %3563 = vmatprep.subr.mxu0 %v1238_v25  ;;  %v4935_v19 = vld [vmem:[%s6575_s2] ss:$0 sm:$0xff] }
  0xa4   :  { %3597 = vmatprep.subr.mxu1 %v4929_v29  ;;  %3564 = vmatpush3.msra.mxu0 %v1238_v25 }
  0xff   :  { %v3463_v20 = vpop.f32.mrf.mxu0 }
 0x100   :  { %v687_v24 = vadd.f32 %v3463_v20, %v4935_v19 }
 0x101   :  { %v681_v34 = vpop.f32.mrf.mxu0 }
 0x102   :  { %v682_v33 = vadd.f32 %v4935_v19, %v681_v34  ;;  %v4945_v6 = vmax.f32 %v687_v24, 0.0 }
 0x104   :  { %v4942_v17 = vmax.f32 %v682_v33, 0.0  ;;  %v798_v20 = vrot.slane %v4945_v6, 7  ;;  %v6712_v63 = vrot.slane %v4945_v6, 1 }
 0x105   :  { %v3466_v35 = vpop.f32.mrf.mxu0 }
 0x106   :  { %v697_v62 = vadd.f32 %v3466_v35, %v4935_v19  ;;  %v6604_v34 = vrot.slane %v4942_v17, 7 }
 0x107   :  { %v691_v54 = vpop.f32.mrf.mxu0 }
 0x108   :  { %v692_v45 = vadd.f32 %v4935_v19, %v691_v54  ;;  %v4949_v9 = vmax.f32 %v697_v62, 0.0  ;;  %v4964_v62 = vsel %vm310_vm2, %v6604_v34, %v798_v20 }
 0x109   :  { %v843_v49 = vsel %vm374_vm4, %v4945_v6, %v4964_v62 }
 0x10a   :  { %v4940_v59 = vmax.f32 %v692_v45, 0.0  ;;  %v802_v7 = vrot.slane %v4949_v9, 7 }
 0x10c   :  { %v800_v40 = vrot.slane %v4940_v59, 7  ;;  %v862_v45 = vrot.slane %v4940_v59, 1 }
 0x10e   :  { %v4958_v24 = vsel %vm310_vm2, %v798_v20, %v800_v40  ;;  %v803_v32 = vsel %vm310_vm2, %v800_v40, %v802_v7 }
 0x10f   :  { %v844_v43 = vsel %vm374_vm4, %v4940_v59, %v4958_v24 }
 0x112   :  { %v3469_v55 = vpop.f32.mrf.mxu0 }
 0x113   :  { %v707_v33 = vadd.f32 %v3469_v55, %v4935_v19 }
 0x114   :  { %v701_v52 = vpop.f32.mrf.mxu0 }
 0x115   :  { %v702_v11 = vadd.f32 %v4935_v19, %v701_v52  ;;  %v6605_v52 = vrot.slane %v4945_v6, 1  ;;  %v4982_v60 = vmax.f32 %v707_v33, 0.0 }
 0x117   :  { %v4952_v54 = vmax.f32 %v702_v11, 0.0  ;;  %v864_v11 = vrot.slane %v4949_v9, 1  ;;  %v4970_v37 = vsel %vm396_vm3, %v6605_v52, %v862_v45 }
 0x118   :  { %v908_v22 = vsel %vm6689_vm5, %v4970_v37, %v843_v49  ;;  %v868_v49 = vrot.slane %v4982_v60, 1  ;;  %vm6700_vm5 = vmmov %vm6696_vm0 }
 0x119   :  { %v866_v55 = vrot.slane %v4952_v54, 1  ;;  %v804_v51 = vrot.slane %v4952_v54, 7  ;;  %v4980_v20 = vsel %vm396_vm3, %v862_v45, %v864_v11  ;;  %v924_v52 = vsel %vm6691_vm8, %v4958_v24, %v908_v22 }
 0x11a   :  { %v909_v45 = vsel %vm6690_vm6, %v4980_v20, %v844_v43  ;;  %v940_v1 = vsel %vm6694_vm14, %v4940_v59, %v924_v52  ;;  %vm6701_vm6 = vmmov %vm6691_vm8  ;;  %vm6702_vm8 = vcmp.eq.s32.totalorder %v4168_v4, 6 }
 0x11b   :  { %v867_v33 = vsel %vm396_vm3, %v864_v11, %v866_v55  ;;  %v805_v26 = vsel %vm310_vm2, %v802_v7, %v804_v51  ;;  %v925_v43 = vsel %vm6692_vm9, %v803_v32, %v909_v45  ;;  %v869_v22 = vsel %vm396_vm3, %v866_v55, %v868_v49  ;;  %vm6703_vm9 = vmmov %vm6698_vm12 }
 0x11c   :  { %v846_v7 = vsel %vm374_vm4, %v4952_v54, %v805_v26  ;;  %v941_v45 = vsel %vm6696_vm0, %v4949_v9, %v925_v43  ;;  %vm6705_vm14 = vmmov %vm6696_vm0 }
 0x11d   :  { %v911_v15 = vsel %vm6697_vm7, %v869_v22, %v846_v7 }
 0x120   :  { %v3472_v25 = vpop.f32.mrf.mxu0 }
 0x121   :  { %v717_v5 = vadd.f32 %v3472_v25, %v4935_v19  ;;  %v956_v25 = vsel %vm6698_vm12, %v4980_v20, %v940_v1  ;;  %vm6709_vm12 = vmmov %vm6701_vm6 }
 0x122   :  { %v711_v35 = vpop.f32.mrf.mxu0  ;;  %v972_v13 = vsel %vm6702_vm8, %v803_v32, %v956_v25 }
 0x123   :  { %v712_v41 = vadd.f32 %v4935_v19, %v711_v35  ;;  %v845_v35 = vsel %vm374_vm4, %v4949_v9, %v803_v32  ;;  %v5039_v7 = vmax.f32 %v717_v5, 0.0 }
 0x124   :  { %v910_v11 = vsel %vm6693_vm1, %v867_v33, %v845_v35  ;;  %v806_v35 = vrot.slane %v4982_v60, 7  ;;  %vm6704_vm1 = vmmov %vm6702_vm8 }
 0x125   :  { %v5005_v40 = vmax.f32 %v712_v41, 0.0  ;;  %v926_v12 = vsel %vm6695_vm11, %v805_v26, %v910_v11  ;;  %v957_v11 = vsel %vm6699_vm15, %v867_v33, %v941_v45  ;;  %vm6706_vm11 = vmmov %vm6697_vm7 }
 0x126   :  { %v807_v43 = vsel %vm310_vm2, %v804_v51, %v806_v35  ;;  %v942_v18 = vsel %vm6700_vm5, %v4952_v54, %v926_v12  ;;  %v973_v45 = vsel %vm6704_vm1, %v805_v26, %v957_v11  ;;  %vm6707_vm0 = vmmov %vm6704_vm1 }
 0x127   :  { %v870_v55 = vrot.slane %v5005_v40, 1  ;;  %v808_v52 = vrot.slane %v5005_v40, 7  ;;  %v958_v51 = vsel %vm6703_vm9, %v869_v22, %v942_v18  ;;  %v847_v12 = vsel %vm374_vm4, %v4982_v60, %v807_v43  ;;  %vm6708_vm7 = vmmov %vm6703_vm9 }
 0x128   :  { %v872_v18 = vrot.slane %v5039_v7, 1  ;;  %v989_v25 = vsel %vm538_vm10, %v4952_v54, %v973_v45  ;;  %v974_v11 = vsel %vm6707_vm0, %v807_v43, %v958_v51  ;;  %vm6710_vm15 = vmmov %vm6706_vm11 }
 0x129   :  { %v871_v36 = vsel %vm396_vm3, %v868_v49, %v870_v55  ;;  %v809_v5 = vsel %vm310_vm2, %v806_v35, %v808_v52  ;;  %v988_v35 = vsel %vm538_vm10, %v4949_v9, %v972_v13  ;;  %v810_v9 = vrot.slane %v5039_v7, 7  ;;  %vm6711_vm5 = vmmov %vm6707_vm0 }
 0x12a   :  { %v912_v32 = vsel %vm6706_vm11, %v871_v36, %v847_v12  ;;  %v873_v12 = vsel %vm396_vm3, %v870_v55, %v872_v18  ;;  %v1004_v51 = vsel %vm557_vm13, %v867_v33, %v988_v35  ;;  %v990_v55 = vsel %vm538_vm10, %v4982_v60, %v974_v11  ;;  %vm6715_vm8 = vmmov %vm6709_vm12 }
 0x12b   :  { %v928_v54 = vsel %vm6709_vm12, %v809_v5, %v912_v32  ;;  %v811_v44 = vsel %vm310_vm2, %v808_v52, %v810_v9  ;;  %v6713_v33 = vrot.slane %v4942_v17, 1  ;;  %v5112_v35 = vmul.f32 %v1004_v51, %v4466_v46  ;;  %vm6716_vm9 = vmmov %vm6708_vm7 }
 0x12c   :  { %v3475_v0 = vpop.f32.mrf.mxu0  ;;  %v849_v46 = vsel %vm374_vm4, %v5039_v7, %v811_v44  ;;  %vm6717_vm1 = vmmov %vm6706_vm11 }
 0x12d   :  { %vm6719_vm11 = vmmov %vm6715_vm8 }
 0x12e   :  { %v721_v34 = vpop.f32.mrf.mxu0  ;;  %vm6721_vm12 = vmmov %vm6716_vm9 }
 0x12f   :  { %v722_v16 = vadd.f32 %v4935_v19, %v721_v34  ;;  %v927_v34 = vsel %vm6701_vm6, %v807_v43, %v911_v15  ;;  %vm6714_vm6 = vmmov %vm6705_vm14 }
 0x130   :  { %v943_v15 = vsel %vm6705_vm14, %v4982_v60, %v927_v34  ;;  %v848_v34 = vsel %vm374_vm4, %v5005_v40, %v809_v5  ;;  %v944_v60 = vsel %vm6714_vm6, %v5005_v40, %v928_v54  ;;  %vm6718_vm14 = vmmov %vm6714_vm6 }
 0x131   :  { %v5044_v1 = vmax.f32 %v722_v16, 0.0  ;;  %v727_v16 = vadd.f32 %v3475_v0, %v4935_v19  ;;  %v959_v0 = vsel %vm6708_vm7, %v871_v36, %v943_v15  ;;  %v1005_v15 = vsel %vm557_vm13, %v869_v22, %v989_v25  ;;  %vm6720_vm7 = vmmov %vm6717_vm1 }
 0x132   :  { %v913_v28 = vsel %vm6710_vm15, %v873_v12, %v848_v34  ;;  %v5103_v22 = vsel %vm396_vm3, %v6713_v33, %v6712_v63  ;;  %v960_v34 = vsel %vm6716_vm9, %v873_v12, %v944_v60  ;;  %vm6723_vm15 = vmmov %vm6715_vm8 }
 0x133   :  { %v874_v26 = vrot.slane %v5044_v1, 1  ;;  %v812_v13 = vrot.slane %v5044_v1, 7  ;;  %v5083_v45 = vmax.f32 %v727_v16, 0.0  ;;  %v975_v16 = vsel %vm6711_vm5, %v809_v5, %v959_v0  ;;  %vm6724_vm5 = vmmov %vm6714_vm6 }
 0x134   :  { %v5115_v5 = vmul.f32 %v1005_v15, %v4493_v50  ;;  %v929_v11 = vsel %vm6715_vm8, %v811_v44, %v913_v28  ;;  %vm6725_vm6 = vmmov %vm6717_vm1 }
 0x135   :  { %v5109_v52 = vsel %vm396_vm3, %v872_v18, %v874_v26  ;;  %v5120_v25 = vsel %vm310_vm2, %v810_v9, %v812_v13  ;;  %v991_v18 = vsel %vm538_vm10, %v5005_v40, %v975_v16  ;;  %v876_v50 = vrot.slane %v5083_v45, 1  ;;  %vm6728_vm9 = vmmov %vm6717_vm1 }
 0x136   :  { %v914_v28 = vsel %vm6717_vm1, %v5109_v52, %v849_v46  ;;  %v5160_v33 = vsel %vm557_vm13, %v873_v12, %v991_v18  ;;  %v6726_v12 = vrot.slane %v4942_v17, 1  ;;  %vm6729_vm1 = vmmov %vm6724_vm5 }
 0x137   :  { %v5148_v51 = vsel %vm396_vm3, %v874_v26, %v876_v50  ;;  %v930_v26 = vsel %vm6719_vm11, %v5120_v25, %v914_v28  ;;  %v6722_v28 = vrot.slane %v4942_v17, 7  ;;  %vm6731_vm11 = vmmov %vm6721_vm12 }
 0x138   :  { %v3478_v41 = vpop.f32.mrf.mxu0 }
 0x139   :  { %v737_v0 = vadd.f32 %v3478_v41, %v4935_v19  ;;  %v850_v41 = vsel %vm374_vm4, %v5044_v1, %v5120_v25 }
 0x13a   :  { %v731_v53 = vpop.f32.mrf.mxu0 }
 0x13b   :  { %v732_v32 = vadd.f32 %v4935_v19, %v731_v53  ;;  %v1006_v53 = vsel %vm557_vm13, %v871_v36, %v990_v55  ;;  %v5169_v60 = vmax.f32 %v737_v0, 0.0 }
 0x13c   :  { %v5141_v54 = vmul.f32 %v1006_v53, %v4548_v57  ;;  %v814_v57 = vrot.slane %v5083_v45, 7 }
 0x13d   :  { %v5138_v9 = vmax.f32 %v732_v32, 0.0  ;;  %v945_v32 = vsel %vm6718_vm14, %v5039_v7, %v929_v11  ;;  %v915_v11 = vsel %vm6720_vm7, %v5148_v51, %v850_v41  ;;  %vm6730_vm14 = vmmov %vm6715_vm8  ;;  %vm6733_vm7 = vcmp.eq.s32.totalorder %v4168_v4, 6 }
 0x13e   :  { %v5181_v18 = vsel %vm6721_vm12, %v5109_v52, %v945_v32  ;;  %vm6734_vm12 = vmmov %vm6731_vm11 }
 0x13f   :  { %v878_v46 = vrot.slane %v5138_v9, 1  ;;  %v816_v41 = vrot.slane %v5138_v9, 7 }
 0x145   :  { %v3481_v49 = vpop.f32.mrf.mxu0 }
 0x146   :  { %v747_v0 = vadd.f32 %v3481_v49, %v4935_v19  ;;  %v946_v49 = vsel %vm6724_vm5, %v5044_v1, %v930_v26  ;;  %vm6736_vm5 = vmmov %vm6733_vm7 }
 0x147   :  { %v741_v43 = vpop.f32.mrf.mxu0 }
 0x148   :  { %v742_v15 = vadd.f32 %v4935_v19, %v741_v43  ;;  %v5167_v43 = vsel %vm6707_vm0, %v811_v44, %v960_v34  ;;  %v5184_v44 = vsel %vm310_vm2, %v812_v13, %v814_v57  ;;  %v5232_v58 = vmax.f32 %v747_v0, 0.0  ;;  %vm6732_vm0 = vmmov %vm6729_vm1 }
 0x149   :  { %v5248_v0 = vsel %vm310_vm2, %v814_v57, %v816_v41 }
 0x14a   :  { %v822_v3 = vrot.slane %v5232_v58, 7 }
 0x14d   :  { %v3484_v63 = vpop.f32.mrf.mxu0 }
 0x14e   :  { %v757_v36 = vadd.f32 %v3484_v63, %v4935_v19 }
 0x14f   :  { %v751_v40 = vpop.f32.mrf.mxu0 }
 0x150   :  { %v5151_v55 = vmax.f32 %v757_v36, 0.0  ;;  %v752_v16 = vadd.f32 %v4935_v19, %v751_v40  ;;  %v5188_v36 = vmax.f32 %v742_v15, 0.0  ;;  %v931_v19 = vsel %vm6723_vm15, %v5184_v44, %v915_v11  ;;  %vm6735_vm15 = vmmov %vm6725_vm6 }
 0x151   :  { %v818_v15 = vrot.slane %v5169_v60, 7 }
 0x152   :  { %v779_v53 = vrot.slane %v5151_v55, 7  ;;  %v5172_v63 = vmax.f32 %v752_v16, 0.0  ;;  %v6727_v26 = vrot.slane %v5151_v55, 1  ;;  %v820_v27 = vrot.slane %v5188_v36, 7 }
 0x154   :  { %v778_v34 = vrot.slane %v5172_v63, 7  ;;  %v5194_v40 = vsel %vm310_vm2, %v779_v53, %v6722_v28  ;;  %v880_v28 = vrot.slane %v5169_v60, 1  ;;  %v5224_v23 = vsel %vm396_vm3, %v6727_v26, %v6726_v12 }
 0x155   :  { %v842_v13 = vsel %vm374_vm4, %v4942_v17, %v5194_v40 }
 0x156   :  { %v5209_v16 = vsel %vm310_vm2, %v778_v34, %v779_v53  ;;  %v907_v32 = vsel %vm6725_vm6, %v5103_v22, %v842_v13  ;;  %v5230_v13 = vsel %vm396_vm3, %v876_v50, %v878_v46  ;;  %vm6737_vm6 = vmmov %vm6731_vm11 }
 0x157   :  { %v841_v11 = vsel %vm374_vm4, %v5151_v55, %v5209_v16  ;;  %v923_v53 = vsel %vm6715_vm8, %v4964_v62, %v907_v32  ;;  %v882_v32 = vrot.slane %v5188_v36, 1 }
 0x158   :  { %v906_v2 = vsel %vm6728_vm9, %v5224_v23, %v841_v11  ;;  %v939_v12 = vsel %vm6729_vm1, %v4945_v6, %v923_v53  ;;  %vm6738_vm1 = vmmov %vm6728_vm9 }
 0x159   :  { %v922_v26 = vsel %vm6730_vm14, %v5194_v40, %v906_v2  ;;  %v955_v50 = vsel %vm6731_vm11, %v4970_v37, %v939_v12  ;;  %v851_v2 = vsel %vm374_vm4, %v5083_v45, %v5184_v44  ;;  %v5262_v12 = vsel %vm310_vm2, %v816_v41, %v818_v15  ;;  %vm6739_vm14 = vmmov %vm6732_vm0 }
 0x15a   :  { %v938_v11 = vsel %vm6732_vm0, %v4942_v17, %v922_v26  ;;  %v971_v53 = vsel %vm6733_vm7, %v4958_v24, %v955_v50  ;;  %v916_v24 = vsel %vm6735_vm15, %v5230_v13, %v851_v2  ;;  %v5274_v50 = vsel %vm396_vm3, %v878_v46, %v880_v28  ;;  %vm6740_vm11 = vmmov %vm6736_vm5 }
 0x15b   :  { %v954_v57 = vsel %vm6734_vm12, %v5103_v22, %v938_v11  ;;  %v987_v26 = vsel %vm538_vm10, %v4940_v59, %v971_v53  ;;  %v852_v11 = vsel %vm374_vm4, %v5138_v9, %v5248_v0  ;;  %v5285_v59 = vsel %vm310_vm2, %v818_v15, %v820_v27  ;;  %vm6741_vm0 = vmmov %vm6736_vm5 }
 0x15c   :  { %v970_v41 = vsel %vm6736_vm5, %v4964_v62, %v954_v57  ;;  %v1003_v46 = vsel %vm557_vm13, %v4980_v20, %v987_v26  ;;  %v5294_v2 = vsel %vm396_vm3, %v880_v28, %v882_v32  ;;  %v886_v62 = vrot.slane %v5172_v63, 1  ;;  %vm6742_vm7 = vmmov %vm6715_vm8 }
 0x15d   :  { %v986_v53 = vsel %vm538_vm10, %v4945_v6, %v970_v41  ;;  %v962_v15 = vsel %vm6737_vm6, %v5148_v51, %v946_v49  ;;  %v932_v6 = vsel %vm6715_vm8, %v5248_v0, %v916_v24  ;;  %v884_v41 = vrot.slane %v5232_v58, 1  ;;  %vm6744_vm12 = vmmov %vm6742_vm7 }
 0x15e   :  { %v1002_v57 = vsel %vm557_vm13, %v4970_v37, %v986_v53  ;;  %v917_v28 = vsel %vm6728_vm9, %v5274_v50, %v852_v11  ;;  %v853_v37 = vsel %vm374_vm4, %v5169_v60, %v5262_v12  ;;  %v5316_v26 = vsel %vm310_vm2, %v820_v27, %v822_v3  ;;  %vm6745_vm15 = vmmov %vm6738_vm1 }
 0x15f   :  { %v1018_v20 = vmul.f32 %v1002_v57, %v4327_v10  ;;  %v1019_v49 = vmul.f32 %v1003_v46, %v4393_v56  ;;  %v918_v24 = vsel %vm6738_vm1, %v5294_v2, %v853_v37  ;;  %v854_v10 = vsel %vm374_vm4, %v5188_v36, %v5285_v59  ;;  %v1489_v57 = vld [vmem:[#allocation5 + $0x1c8] sm:$0xff]  ;;  %vm6746_vm5 = vmmov %vm6737_vm6 }
 0x160   :  { %v5327_v11 = vsel %vm396_vm3, %v882_v32, %v884_v41  ;;  %v992_v27 = vsel %vm538_vm10, %v5039_v7, %v5167_v43  ;;  %v947_v56 = vsel %vm6739_vm14, %v5083_v45, %v931_v19  ;;  %v5337_v53 = vsel %vm310_vm2, %v822_v3, %v778_v34  ;;  %vm6743_vm2 = vmmov %vm6739_vm14 }
 0x161   :  { %3517 = vmatprep.mubr.f32.mxu1 %v1018_v20  ;;  %v5340_v46 = vsel %vm396_vm3, %v884_v41, %v886_v62  ;;  %v977_v32 = vsel %vm6740_vm11, %v5120_v25, %v5181_v18  ;;  %v978_v7 = vsel %vm6741_vm0, %v5184_v44, %v962_v15  ;;  %v933_v43 = vsel %vm6742_vm7, %v5262_v12, %v917_v28  ;;  %v1488_v44 = vld [vmem:[#allocation5 + $0x1a8] sm:$0xff]  ;;  %vm6747_vm6 = vmmov %vm6738_vm1 }
 0x162   :  { %3518 = vmatmul.mubr.f32.vlgmr.msra.gmra.mxu1 %v1019_v49  ;;  %v948_v3 = vsel %vm6743_vm2, %v5138_v9, %v932_v6  ;;  %v934_v34 = vsel %vm6744_vm12, %v5285_v59, %v918_v24  ;;  %v919_v25 = vsel %vm6745_vm15, %v5327_v11, %v854_v10  ;;  %v855_v18 = vsel %vm374_vm4, %v5232_v58, %v5316_v26  ;;  %vm6749_vm8 = vmmov %vm6746_vm5  ;;  %v1486_v10 = vld [vmem:[#allocation5 + $0x168] sm:$0xff] }
 0x163   :  { %3520 = vmatprep.mubr.f32.mxu1 %v5112_v35  ;;  %3598 = vmatpush3.msra.mxu1 %v4929_v29  ;;  %v963_v35 = vsel %vm6746_vm5, %v5230_v13, %v947_v56  ;;  %v920_v19 = vsel %vm6747_vm6, %v5340_v46, %v855_v18  ;;  %v856_v15 = vsel %vm374_vm4, %v5172_v63, %v5337_v53  ;;  %v6748_v6 = vrot.slane %v5151_v55, 1  ;;  %vm6750_vm4 = vmmov %vm6743_vm2 }
 0x164   :  { %3599 = vmatprep.subr.mxu1 %v1489_v57  ;;  %v1008_v29 = vsel %vm557_vm13, %v5109_v52, %v992_v27  ;;  %v993_v20 = vsel %vm538_vm10, %v5044_v1, %v977_v32  ;;  %v964_v28 = vsel %vm6749_vm8, %v5274_v50, %v948_v3  ;;  %v949_v37 = vsel %vm6750_vm4, %v5169_v60, %v933_v43  ;;  %vm6752_vm9 = vmmov %vm6743_vm2 }
 0x165   :  { %v5380_v41 = vsel %vm396_vm3, %v886_v62, %v6748_v6  ;;  %3600 = vmatpush3.msra.mxu1 %v1489_v57  ;;  %v1487_v62 = vld [vmem:[#allocation5 + $0x188] sm:$0xff]  ;;  %v994_v52 = vsel %vm538_vm10, %v5083_v45, %v978_v7  ;;  %vm6751_vm3 = vmmov %vm6742_vm7  ;;  %v950_v49 = vsel %vm6752_vm9, %v5188_v36, %v934_v34  ;;  %v1023_v27 = vmul.f32 %v5160_v33, %v4576_v21 }
 0x166   :  { %3521 = vmatmul.mubr.f32.gmra.mxu1 %v5115_v5  ;;  %v935_v1 = vsel %vm6751_vm3, %v5316_v26, %v919_v25  ;;  %3601 = vmatprep.subr.mxu1 %v1488_v44  ;;  %vm6753_vm1 = vmmov %vm6741_vm0  ;;  %v1024_v56 = vmul.f32 %v1008_v29, %v4629_v31  ;;  %v1009_v57 = vsel %vm557_vm13, %v5148_v51, %v993_v20  ;;  %v1485_v33 = vld [vmem:[#allocation5 + $0x148] sm:$0xff] }
 0x167   :  { %3523 = vmatprep.mubr.f32.mxu1 %v5141_v54  ;;  %v979_v24 = vsel %vm6753_vm1, %v5248_v0, %v963_v35  ;;  %vm6754_vm14 = vmmov %vm6751_vm3  ;;  %3602 = vmatpush3.msra.mxu1 %v1488_v44  ;;  %v1010_v32 = vsel %vm557_vm13, %v5230_v13, %v994_v52  ;;  %v1025_v3 = vmul.f32 %v1009_v57, %v4663_v38  ;;  %v1483_v44 = vld [vmem:[#allocation5 + $0x108] sm:$0xff] }
 0x168   :  { %v936_v5 = vsel %vm6754_vm14, %v5337_v53, %v920_v19  ;;  %vm6755_vm11 = vmmov %vm6747_vm6  ;;  %3603 = vmatprep.subr.mxu1 %v1487_v62  ;;  %v1026_v18 = vmul.f32 %v1010_v32, %v4711_v42  ;;  %v1482_v19 = vld [vmem:[#allocation5 + $0xe8] sm:$0xff] }
 0x169   :  { %v921_v45 = vsel %vm6755_vm11, %v5380_v41, %v856_v15  ;;  %vm6756_vm0 = vmmov %vm6746_vm5  ;;  %3604 = vmatpush3.msra.mxu1 %v1487_v62  ;;  %v1480_v29 = vld [vmem:[#allocation5 + $0xa8] sm:$0xff] }
 0x16a   :  { %v965_v54 = vsel %vm6756_vm0, %v5294_v2, %v949_v37  ;;  %vm6757_vm7 = vmmov %vm6753_vm1  ;;  %3524 = vmatmul.mubr.f32.gmra.mxu1 %v1023_v27  ;;  %3605 = vmatprep.subr.mxu1 %v1486_v10  ;;  %v1237_v37 = vld [vmem:[#allocation5 + $0x60] sm:$0xff]  ;;  %v1477_v62 = vld [vmem:[#allocation5 + $0x48] sm:$0xff] }
 0x16b   :  { %v980_v0 = vsel %vm6757_vm7, %v5262_v12, %v964_v28  ;;  %vm6758_vm2 = vmmov %vm6756_vm0  ;;  %v995_v12 = vsel %vm538_vm10, %v5138_v9, %v979_v24  ;;  %3526 = vmatprep.mubr.f32.mxu1 %v1024_v56  ;;  %3606 = vmatpush3.msra.mxu1 %v1486_v10  ;;  %v1484_v9 = vld [vmem:[#allocation5 + $0x128] sm:$0xff]  ;;  %v6640_v10 = vmov 1.0  }
 0x16c   :  { %v966_v21 = vsel %vm6758_vm2, %v5327_v11, %v950_v49  ;;  %vm6759_vm12 = vmmov %vm6750_vm4  ;;  %v996_v7 = vsel %vm538_vm10, %v5169_v60, %v980_v0  ;;  %3607 = vmatprep.subr.mxu1 %v1485_v33  ;;  %v1011_v60 = vsel %vm557_vm13, %v5274_v50, %v995_v12  ;;  %v1479_v28 = vld [vmem:[#allocation5 + $0x88] sm:$0xff]  ;;  %3565 = vmatprep.subr.mxu0 %v1237_v37  ;;  %v6777_v0 = vld [vmem:[#allocation26_spill] sm:$0xff] }
 0x16d   :  { %v951_v31 = vsel %vm6759_vm12, %v5232_v58, %v935_v1  ;;  %vm6760_vm15 = vmmov %vm6751_vm3  ;;  %3608 = vmatpush3.msra.mxu1 %v1485_v33  ;;  %v1027_v15 = vmul.f32 %v1011_v60, %v4746_v47  ;;  %3566 = vmatpush3.msra.mxu0 %v1237_v37  ;;  %v1475_v52 = vld [vmem:[#allocation5 + $0x8] sm:$0xff]  ;;  %v1684_v57 = vadd.s32 128, %v6777_v0 }
 0x16e   :  { %v937_v51 = vsel %vm6760_vm15, %v5209_v16, %v921_v45  ;;  %vm6761_vm5 = vmmov %vm6750_vm4  ;;  %3527 = vmatmul.mubr.f32.gmra.mxu1 %v1025_v3  ;;  %3609 = vmatprep.subr.mxu1 %v1484_v9  ;;  %v6770_v1 = vld [vmem:[#allocation27_spill] sm:$0xff]  ;;  %v6771_v24 = vld [vmem:[#allocation12_spill] sm:$0xff] }
 0x16f   :  { %v952_v13 = vsel %vm6761_vm5, %v5172_v63, %v936_v5  ;;  %vm6762_vm6 = vmmov %vm6753_vm1  ;;  %3529 = vmatprep.mubr.f32.mxu1 %v1026_v18  ;;  %3610 = vmatpush3.msra.mxu1 %v1484_v9  ;;  %v1685_v49 = vadd.s32 128, %v6770_v1  ;;  %v6772_v5 = vand.u32 7, %v6770_v1  ;;  %v1700_v12 = vand.u32 7, %v1684_v57 }
 0x170   :  { %v981_v43 = vsel %vm6762_vm6, %v5285_v59, %v965_v54  ;;  %vm6763_vm8 = vmmov %vm6756_vm0  ;;  %3611 = vmatprep.subr.mxu1 %v1483_v44  ;;  %v5541_v54 = vld [vmem:[%s6577_s4] ss:$0 sm:$0xff] }
 0x171   :  { %v967_v34 = vsel %vm6763_vm8, %v5340_v46, %v951_v31  ;;  %vm6764_vm4 = vmmov %vm6753_vm1  ;;  %v997_v42 = vsel %vm538_vm10, %v5188_v36, %v981_v43  ;;  %3612 = vmatpush3.msra.mxu1 %v1483_v44  ;;  %v1701_v27 = vand.u32 7, %v1685_v49  ;;  %vm5563_vm2 = vcmp.eq.s32.totalorder %v1700_v12, %v6771_v24  ;;  %v6784_v44 = vld [vmem:[#allocation24_spill] sm:$0xff] }
 0x172   :  { %v982_v25 = vsel %vm6764_vm4, %v5316_v26, %v966_v21  ;;  %vm6765_vm3 = vmmov %vm6756_vm0  ;;  %v1012_v26 = vsel %vm557_vm13, %v5294_v2, %v996_v7  ;;  %v983_v35 = vsel %vm6753_vm1, %v5337_v53, %v967_v34  ;;  %v1481_v53 = vld [vmem:[#allocation5 + $0xc8] sm:$0xff]  ;;  %3530 = vmatmul.mubr.f32.gmra.mxu1 %v1027_v15  ;;  %3613 = vmatprep.subr.mxu1 %v1482_v19 }
 0x173   :  { %v968_v59 = vsel %vm6765_vm3, %v5380_v41, %v952_v13  ;;  %vm6766_vm9 = vmmov %vm6761_vm5  ;;  %v998_v50 = vsel %vm538_vm10, %v5232_v58, %v982_v25  ;;  %v1028_v6 = vmul.f32 %v1012_v26, %v4790_v61  ;;  %v1013_v58 = vsel %vm557_vm13, %v5327_v11, %v997_v42  ;;  %3614 = vmatpush3.msra.mxu1 %v1482_v19 }
 0x174   :  { %v953_v38 = vsel %vm6766_vm9, %v5151_v55, %v937_v51  ;;  %vm6767_vm14 = vmmov %vm6753_vm1  ;;  %v1014_v47 = vsel %vm557_vm13, %v5340_v46, %v998_v50  ;;  %v1029_v20 = vmul.f32 %v1013_v58, %v4823_v14  ;;  %3615 = vmatprep.subr.mxu1 %v1481_v53  ;;  %v6778_v51 = vld [vmem:[#allocation25_spill] sm:$0xff]  ;;  %v6779_v25 = vand.u32 7, %v6777_v0 }
 0x175   :  { %v984_v2 = vsel %vm6767_vm14, %v5209_v16, %v968_v59  ;;  %vm6768_vm11 = vmmov %vm6756_vm0  ;;  %v999_v16 = vsel %vm538_vm10, %v5172_v63, %v983_v35  ;;  %3532 = vmatprep.mubr.f32.mxu1 %v1028_v6  ;;  %v1030_v46 = vmul.f32 %v1014_v47, %v4869_v8  ;;  %3616 = vmatpush3.msra.mxu1 %v1481_v53  ;;  %v1683_v13 = vadd.s32 128, %v6778_v51  ;;  %v6790_v47 = vld [vmem:[#allocation23_spill] sm:$0xff] }
 0x176   :  { %v969_v36 = vsel %vm6768_vm11, %v5224_v23, %v953_v38  ;;  %v1000_v61 = vsel %vm538_vm10, %v5151_v55, %v984_v2  ;;  %vm6769_vm0 = vmmov %vm6753_vm1  ;;  %v1015_v63 = vsel %vm557_vm13, %v5380_v41, %v999_v16  ;;  %3533 = vmatmul.mubr.f32.gmra.mxu1 %v1029_v20  ;;  %3617 = vmatprep.subr.mxu1 %v1480_v29  ;;  %v1682_v26 = vadd.s32 128, %v6784_v44 }
 0x177   :  { %v985_v11 = vsel %vm6769_vm0, %v5194_v40, %v969_v36  ;;  %v1016_v55 = vsel %vm557_vm13, %v5224_v23, %v1000_v61  ;;  %3535 = vmatprep.mubr.f32.mxu1 %v1030_v46  ;;  %3618 = vmatpush3.msra.mxu1 %v1480_v29  ;;  %v1031_v14 = vmul.f32 %v1015_v63, %v4898_v48  ;;  %v1236_v48 = vld [vmem:[#allocation5 + $0x40] sm:$0xff]  ;;  %v1699_v38 = vand.u32 7, %v1683_v13 }
 0x178   :  { %v1001_v40 = vsel %vm538_vm10, %v4942_v17, %v985_v11  ;;  %3619 = vmatprep.subr.mxu1 %v1479_v28  ;;  %v1032_v8 = vmul.f32 %v1016_v55, %v4919_v39  ;;  %v1478_v17 = vld [vmem:[#allocation5 + $0x68] sm:$0xff]  ;;  %3567 = vmatprep.subr.mxu0 %v1236_v48  ;;  %v1235_v39 = vld [vmem:[#allocation5 + $0x20] sm:$0xff]  ;;  %vm5523_vm10 = vcmp.eq.s32.totalorder %v6772_v5, %v6771_v24  ;;  %v6785_v2 = vand.u32 7, %v6778_v51  ;;  %v6802_v5 = vld [vmem:[#allocation21_spill] sm:$0xff] }
 0x179   :  { %v1017_v41 = vsel %vm557_vm13, %v5103_v22, %v1001_v40  ;;  %3620 = vmatpush3.msra.mxu1 %v1479_v28  ;;  %3568 = vmatpush3.msra.mxu0 %v1236_v48  ;;  %v1476_v22 = vld [vmem:[#allocation5 + $0x28] sm:$0xff]  ;;  %vm5531_vm13 = vcmp.eq.s32.totalorder %v1701_v27, %v6771_v24  ;;  %vm5555_vm7 = vcmp.eq.s32.totalorder %v6779_v25, %v6771_v24  ;;  %v1698_v53 = vand.u32 7, %v1682_v26 }
 0x17a   :  { %3536 = vmatmul.mubr.f32.gmra.mxu1 %v1031_v14  ;;  %v1033_v23 = vmul.f32 %v1017_v41, %v4926_v30  ;;  %3621 = vmatprep.subr.mxu1 %v1478_v17  ;;  %v1234_v30 = vld [vmem:[#allocation5] sm:$0xff]  ;;  %vm5590_vm12 = vcmp.eq.s32.totalorder %v6785_v2, %v6771_v24  ;;  %vm5598_vm15 = vcmp.eq.s32.totalorder %v1699_v38, %v6771_v24  ;;  %v1681_v16 = vadd.s32 128, %v6790_v47 }
 0x17b   :  { %3538 = vmatprep.mubr.f32.mxu1 %v1032_v8  ;;  %3622 = vmatpush3.msra.mxu1 %v1478_v17  ;;  %v6791_v63 = vand.u32 7, %v6784_v44  ;;  %vm5633_vm6 = vcmp.eq.s32.totalorder %v1698_v53, %v6771_v24  ;;  %v6796_v8 = vld [vmem:[#allocation22_spill] sm:$0xff]  ;;  %v1679_v45 = vadd.s32 128, %v6802_v5  ;;  %v6809_v26 = vand.u32 7, %v6802_v5  ;;  %v6814_v36 = vld [vmem:[#allocation19_spill] sm:$0xff] }
 0x17c   :  { %3623 = vmatprep.subr.mxu1 %v1477_v62  ;;  %3569 = vmatprep.subr.mxu0 %v1235_v39  ;;  %v1697_v14 = vand.u32 7, %v1681_v16  ;;  %v1680_v41 = vadd.s32 128, %v6796_v8  ;;  %v6815_v16 = vld [vmem:[#allocation18_spill] sm:$0xff] }
 0x17d   :  { %3624 = vmatpush3.msra.mxu1 %v1477_v62  ;;  %3570 = vmatpush3.msra.mxu0 %v1235_v39  ;;  %vm5625_vm5 = vcmp.eq.s32.totalorder %v6791_v63, %v6771_v24  ;;  %v6797_v39 = vand.u32 7, %v6790_v47  ;;  %vm5730_vm1 = vcmp.eq.s32.totalorder %v6809_v26, %v6771_v24 }
 0x17e   :  { %3539 = vmatmul.mubr.f32.gmra.mxu1 %v1033_v23  ;;  %3625 = vmatprep.subr.mxu1 %v1476_v22  ;;  %vm5668_vm4 = vcmp.eq.s32.totalorder %v1697_v14, %v6771_v24  ;;  %v1696_v49 = vand.u32 7, %v1680_v41 }
 0x17f   :  { %3626 = vmatpush3.msra.mxu1 %v1476_v22  ;;  %3571 = vmatprep.subr.mxu0 %v1234_v30  ;;  %vm5660_vm8 = vcmp.eq.s32.totalorder %v6797_v39, %v6771_v24  ;;  %v6822_v39 = vld [vmem:[#allocation16_spill] sm:$0xff] }
 0x180   :  { %3627 = vmatprep.subr.mxu1 %v1475_v52  ;;  %3572 = vmatpush3.msra.mxu0 %v1234_v30  ;;  %vm5703_vm9 = vcmp.eq.s32.totalorder %v1696_v49, %v6771_v24  ;;  %v1674_v22 = vadd.s32 128, %v6822_v39 }
 0x181   :  { %3628 = vmatpush3.msra.mxu1 %v1475_v52  ;;  %3653 = vmatprep.subr.msk.mxu0 %vm5531_vm13, %v6640_v10  ;;  %v6823_v52 = vand.u32 7, %v6814_v36 }
 0x182   :  { %3709 = vmatprep.subr.msk.mxu1 %vm5523_vm10, %v6640_v10 }
 0x222   :  { %v3519_v32 = vpop.f32.mrf.mxu1 }
 0x223   :  { %v1129_v21 = vadd.f32 %v3519_v32, %v5541_v54 }
 0x224   :  { %v1123_v31 = vpop.f32.mrf.mxu1 }
 0x225   :  { %v1124_v33 = vadd.f32 %v5541_v54, %v1123_v31  ;;  %v5549_v9 = vmax.f32 %v1129_v21, 0.0  ;;  %v6803_v31 = vand.u32 7, %v6796_v8 }
 0x226   :  { %v3522_v7 = vpop.f32.mrf.mxu1 }
 0x227   :  { %v5547_v43 = vmax.f32 %v1124_v33, 0.0  ;;  %v1139_v3 = vadd.f32 %v3522_v7, %v5541_v54  ;;  %vm5695_vm3 = vcmp.eq.s32.totalorder %v6803_v31, %v6771_v24  ;;  %v1695_v7 = vand.u32 7, %v1679_v45  ;;  %v6824_v45 = vld [vmem:[#allocation15_spill] sm:$0xff] }
 0x228   :  { %v1133_v34 = vpop.f32.mrf.mxu1  ;;  %v6828_v13 = vand.u32 7, %v6824_v45  ;;  %v5897_v14 = vand.u32 63, %v6824_v45 }
 0x229   :  { %v1134_v60 = vadd.f32 %v5541_v54, %v1133_v34  ;;  %3573 = vmatprep.mubr.f32.mxu0 %v5547_v43  ;;  %3629 = vmatprep.mubr.f32.mxu1 %v5547_v43  ;;  %v5578_v35 = vmax.f32 %v1139_v3, 0.0  ;;  %v6808_v3 = vld [vmem:[#allocation20_spill] sm:$0xff]  ;;  %vm5738_vm14 = vcmp.eq.s32.totalorder %v1695_v7, %v6771_v24  ;;  %v6829_v7 = vld [vmem:[#allocation14_spill] sm:$0xff] }
 0x22a   :  { %v3525_v42 = vpop.f32.mrf.mxu1  ;;  %3574 = vmatmul.mubr.f32.vlgmr.msra.gmra.mxu0 %v5549_v9  ;;  %3630 = vmatmul.mubr.f32.vlgmr.msra.gmra.mxu1 %v5549_v9  ;;  %v1678_v34 = vadd.s32 128, %v6808_v3  ;;  %v6816_v28 = vand.u32 7, %v6808_v3 }
 0x22b   :  { %v5570_v50 = vmax.f32 %v1134_v60, 0.0  ;;  %3654 = vmatpush3.msk.msra.mxu0 %vm5531_vm13, %v6640_v10  ;;  %3710 = vmatpush3.msk.msra.mxu1 %vm5523_vm10, %v6640_v10  ;;  %v1149_v19 = vadd.f32 %v3525_v42, %v5541_v54  ;;  %vm1434_vm13 = vcmp.eq.s32.totalorder %v6823_v52, %v6771_v24 }
 0x22c   :  { %v1143_v15 = vpop.f32.mrf.mxu1  ;;  %3655 = vmatprep.subr.msk.mxu0 %vm5563_vm2, %v6640_v10  ;;  %3711 = vmatprep.subr.msk.mxu1 %vm5555_vm7, %v6640_v10  ;;  %v1694_v2 = vand.u32 7, %v1678_v34  ;;  %vm5766_vm11 = vcmp.eq.s32.totalorder %v6816_v28, %v6771_v24  ;;  %v1672_v34 = vadd.s32 128, %v6829_v7 }
 0x22d   :  { %v1144_v6 = vadd.f32 %v5541_v54, %v1143_v15  ;;  %3576 = vmatprep.mubr.f32.mxu0 %v5570_v50  ;;  %3632 = vmatprep.mubr.f32.mxu1 %v5570_v50  ;;  %v5613_v29 = vmax.f32 %v1149_v19, 0.0  ;;  %v6833_v15 = vld [vmem:[#allocation11_spill] sm:$0xff] }
 0x22e   :  { %v3528_v61 = vpop.f32.mrf.mxu1  ;;  %3577 = vmatmul.mubr.f32.gmra.mxu0 %v5578_v35  ;;  %3633 = vmatmul.mubr.f32.gmra.mxu1 %v5578_v35  ;;  %vm5774_vm0 = vcmp.eq.s32.totalorder %v1694_v2, %v6771_v24  ;;  %v1670_v2 = vadd.s32 128, %v6833_v15  ;;  %v5881_v28 = vand.u32 63, %v6833_v15 }
 0x22f   :  { %v5605_v11 = vmax.f32 %v1144_v6, 0.0  ;;  %3656 = vmatpush3.msk.msra.mxu0 %vm5563_vm2, %v6640_v10  ;;  %3712 = vmatpush3.msk.msra.mxu1 %vm5555_vm7, %v6640_v10  ;;  %v1159_v20 = vadd.f32 %v3528_v61, %v5541_v54  ;;  %v1677_v6 = vadd.s32 128, %v6814_v36  ;;  %v1676_v61 = vadd.s32 128, %v6815_v16 }
 0x230   :  { %v1153_v46 = vpop.f32.mrf.mxu1  ;;  %3657 = vmatprep.subr.msk.mxu0 %vm5598_vm15, %v6640_v10  ;;  %3713 = vmatprep.subr.msk.mxu1 %vm5590_vm12, %v6640_v10 }
 0x231   :  { %v1154_v55 = vadd.f32 %v5541_v54, %v1153_v46  ;;  %3579 = vmatprep.mubr.f32.mxu0 %v5605_v11  ;;  %3635 = vmatprep.mubr.f32.mxu1 %v5605_v11  ;;  %v5648_v17 = vmax.f32 %v1159_v20, 0.0  ;;  %v1693_v41 = vand.u32 7, %v1677_v6  ;;  %v6834_v6 = vand.u32 7, %v6833_v15 }
 0x232   :  { %v3531_v23 = vpop.f32.mrf.mxu1  ;;  %3580 = vmatmul.mubr.f32.gmra.mxu0 %v5613_v29  ;;  %3636 = vmatmul.mubr.f32.gmra.mxu1 %v5613_v29 }
 0x233   :  { %v5640_v37 = vmax.f32 %v1154_v55, 0.0  ;;  %3658 = vmatpush3.msk.msra.mxu0 %vm5598_vm15, %v6640_v10  ;;  %3714 = vmatpush3.msk.msra.mxu1 %vm5590_vm12, %v6640_v10  ;;  %v1169_v48 = vadd.f32 %v3531_v23, %v5541_v54  ;;  %v6821_v23 = vld [vmem:[#allocation17_spill] sm:$0xff]  ;;  %vm1709_vm10 = vcmp.eq.s32.totalorder %v1693_v41, %v6771_v24 }
 0x234   :  { %v1163_v62 = vpop.f32.mrf.mxu1  ;;  %3659 = vmatprep.subr.msk.mxu0 %vm5633_vm6, %v6640_v10  ;;  %3715 = vmatprep.subr.msk.mxu1 %vm5625_vm5, %v6640_v10  ;;  %v6826_v31 = vand.u32 7, %v6821_v23 }
 0x235   :  { %v1164_v30 = vadd.f32 %v5541_v54, %v1163_v62  ;;  %3582 = vmatprep.mubr.f32.mxu0 %v5640_v37  ;;  %3638 = vmatprep.mubr.f32.mxu1 %v5640_v37  ;;  %v5683_v57 = vmax.f32 %v1169_v48, 0.0  ;;  %v1675_v48 = vadd.s32 128, %v6821_v23 }
 0x236   :  { %v3534_v27 = vpop.f32.mrf.mxu1  ;;  %3583 = vmatmul.mubr.f32.gmra.mxu0 %v5648_v17  ;;  %3639 = vmatmul.mubr.f32.gmra.mxu1 %v5648_v17  ;;  %vm1432_vm15 = vcmp.eq.s32.totalorder %v6826_v31, %v6771_v24 }
 0x237   :  { %v5675_v56 = vmax.f32 %v1164_v30, 0.0  ;;  %3660 = vmatpush3.msk.msra.mxu0 %vm5633_vm6, %v6640_v10  ;;  %3716 = vmatpush3.msk.msra.mxu1 %vm5625_vm5, %v6640_v10  ;;  %v1179_v32 = vadd.f32 %v3534_v27, %v5541_v54  ;;  %v1691_v49 = vand.u32 7, %v1675_v48  ;;  %v1673_v27 = vadd.s32 128, %v6824_v45 }
 0x238   :  { %v1173_v21 = vpop.f32.mrf.mxu1  ;;  %3661 = vmatprep.subr.msk.mxu0 %vm5668_vm4, %v6640_v10  ;;  %3717 = vmatprep.subr.msk.mxu1 %vm5660_vm8, %v6640_v10  ;;  %v6835_v48 = vmov 0.0  }
 0x239   :  { %v1174_v12 = vadd.f32 %v5541_v54, %v1173_v21  ;;  %3585 = vmatprep.mubr.f32.mxu0 %v5675_v56  ;;  %3641 = vmatprep.mubr.f32.mxu1 %v5675_v56  ;;  %v5718_v60 = vmax.f32 %v1179_v32, 0.0  ;;  %v6825_v32 = vand.u32 7, %v6815_v16  ;;  %v1690_v21 = vand.u32 7, %v1674_v22 }
 0x23a   :  { %v3537_v25 = vpop.f32.mrf.mxu1  ;;  %3586 = vmatmul.mubr.f32.gmra.mxu0 %v5683_v57  ;;  %3642 = vmatmul.mubr.f32.gmra.mxu1 %v5683_v57  ;;  %vm1707_vm12 = vcmp.eq.s32.totalorder %v1691_v49, %v6771_v24  ;;  %v1689_v33 = vand.u32 7, %v1673_v27 }
 0x23b   :  { %v5710_v18 = vmax.f32 %v1174_v12, 0.0  ;;  %3662 = vmatpush3.msk.msra.mxu0 %vm5668_vm4, %v6640_v10  ;;  %3718 = vmatpush3.msk.msra.mxu1 %vm5660_vm8, %v6640_v10  ;;  %v1189_v59 = vadd.f32 %v3537_v25, %v5541_v54  ;;  %vm1433_vm2 = vcmp.eq.s32.totalorder %v6825_v32, %v6771_v24  ;;  %vm1706_vm5 = vcmp.eq.s32.totalorder %v1690_v21, %v6771_v24 }
 0x23c   :  { %v1183_v38 = vpop.f32.mrf.mxu1  ;;  %3663 = vmatprep.subr.msk.mxu0 %vm5703_vm9, %v6640_v10  ;;  %3719 = vmatprep.subr.msk.mxu1 %vm5695_vm3, %v6640_v10  ;;  %v6827_v12 = vand.u32 7, %v6822_v39  ;;  %vm1705_vm8 = vcmp.eq.s32.totalorder %v1689_v33, %v6771_v24  ;;  %vm1430_vm4 = vcmp.eq.s32.totalorder %v6828_v13, %v6771_v24  ;;  %v1688_v25 = vand.u32 7, %v1672_v34 }
 0x23d   :  { %v1184_v19 = vadd.f32 %v5541_v54, %v1183_v38  ;;  %3588 = vmatprep.mubr.f32.mxu0 %v5710_v18  ;;  %3644 = vmatprep.mubr.f32.mxu1 %v5710_v18  ;;  %v5754_v20 = vmax.f32 %v1189_v59, 0.0  ;;  %v6830_v59 = vand.u32 7, %v6829_v7  ;;  %v6831_v38 = vld [vmem:[#allocation13_spill] sm:$0xff]  ;;  %v5908_v32 = vand.u32 63, %v6822_v39 }
 0x23e   :  { %v3540_v58 = vpop.f32.mrf.mxu1  ;;  %3589 = vmatmul.mubr.f32.gmra.mxu0 %v5718_v60  ;;  %3645 = vmatmul.mubr.f32.gmra.mxu1 %v5718_v60  ;;  %vm1431_vm6 = vcmp.eq.s32.totalorder %v6827_v12, %v6771_v24  ;;  %v1671_v26 = vadd.s32 128, %v6831_v38  ;;  %v6832_v42 = vand.u32 7, %v6831_v38  ;;  %v5913_v33 = vand.u32 63, %v6821_v23 }
 0x23f   :  { %v5745_v53 = vmax.f32 %v1184_v19, 0.0  ;;  %3664 = vmatpush3.msk.msra.mxu0 %vm5703_vm9, %v6640_v10  ;;  %3720 = vmatpush3.msk.msra.mxu1 %vm5695_vm3, %v6640_v10  ;;  %v1199_v46 = vadd.f32 %v3540_v58, %v5541_v54  ;;  %vm1429_vm3 = vcmp.eq.s32.totalorder %v6830_v59, %v6771_v24  ;;  %vm1704_vm9 = vcmp.eq.s32.totalorder %v1688_v25, %v6771_v24 }
 0x240   :  { %v1193_v63 = vpop.f32.mrf.mxu1  ;;  %3665 = vmatprep.subr.msk.mxu0 %vm5738_vm14, %v6640_v10  ;;  %3721 = vmatprep.subr.msk.mxu1 %vm5730_vm1, %v6640_v10  ;;  %v1687_v19 = vand.u32 7, %v1671_v26  ;;  %v1686_v58 = vand.u32 7, %v1670_v2 }
 0x241   :  { %v1194_v40 = vadd.f32 %v5541_v54, %v1193_v63  ;;  %3591 = vmatprep.mubr.f32.mxu0 %v5745_v53  ;;  %3647 = vmatprep.mubr.f32.mxu1 %v5745_v53  ;;  %v1692_v54 = vand.u32 7, %v1676_v61  ;;  %v5790_v30 = vmax.f32 %v1199_v46, 0.0  ;;  %v2055_v61 = vld [vmem:[#allocation5 + $0x1f0] sm:$0xff]  ;;  %v1636_v46 = vadd.s32 128, %v6771_v24 }
 0x242   :  { %3592 = vmatmul.mubr.f32.gmra.mxu0 %v5754_v20  ;;  %3648 = vmatmul.mubr.f32.gmra.mxu1 %v5754_v20  ;;  %v5878_v63 = vand.u32 63, %v6831_v38 }
 0x243   :  { %v5781_v62 = vmax.f32 %v1194_v40, 0.0  ;;  %3666 = vmatpush3.msk.msra.mxu0 %vm5738_vm14, %v6640_v10  ;;  %3722 = vmatpush3.msk.msra.mxu1 %vm5730_vm1, %v6640_v10  ;;  %vm1708_vm7 = vcmp.eq.s32.totalorder %v1692_v54, %v6771_v24  ;;  %vm1428_vm1 = vcmp.eq.s32.totalorder %v6832_v42, %v6771_v24  ;;  %vm1703_vm14 = vcmp.eq.s32.totalorder %v1687_v19, %v6771_v24 }
 0x244   :  { %3667 = vmatprep.subr.msk.mxu0 %vm5774_vm0, %v6640_v10  ;;  %3723 = vmatprep.subr.msk.mxu1 %vm5766_vm11, %v6640_v10  ;;  %v5883_v55 = vshra.s32 %v1636_v46, 3  ;;  %v5892_v40 = vand.u32 63, %v6829_v7 }
 0x245   :  { %3594 = vmatprep.mubr.f32.mxu0 %v5781_v62  ;;  %3650 = vmatprep.mubr.f32.mxu1 %v5781_v62 }
 0x246   :  { %3595 = vmatmul.mubr.f32.gmra.mxu0 %v5790_v30  ;;  %3651 = vmatmul.mubr.f32.gmra.mxu1 %v5790_v30 }
 0x247   :  { %3668 = vmatpush3.msk.msra.mxu0 %vm5774_vm0, %v6640_v10  ;;  %3724 = vmatpush3.msk.msra.mxu1 %vm5766_vm11, %v6640_v10  ;;  %vm1427_vm11 = vcmp.eq.s32.totalorder %v6834_v6, %v6771_v24  ;;  %vm1702_vm0 = vcmp.eq.s32.totalorder %v1686_v58, %v6771_v24  ;;  %v2054_v6 = vld [vmem:[#allocation5 + $0x1d0] sm:$0xff]  ;;  %v5925_v58 = vand.u32 63, %v6815_v16 }
 0x248   :  { %3669 = vmatprep.subr.msk.mxu0 %vm1709_vm10, %v6640_v10  ;;  %3725 = vmatprep.subr.msk.mxu1 %vm1434_vm13, %v6640_v10 }
 0x249   :  { %3670 = vmatpush3.msk.msra.mxu0 %vm1709_vm10, %v6640_v10  ;;  %3726 = vmatpush3.msk.msra.mxu1 %vm1434_vm13, %v6640_v10  ;;  %vm1396_vm10 = vcmp.eq.s32.totalorder %v5878_v63, %v4168_v4  ;;  %vm1395_vm13 = vcmp.eq.s32.totalorder %v5881_v28, %v4168_v4  ;;  %6836 = vst [vmem:[#allocation27_spill] sm:$0xff] %v5925_v58 }
 0x24a   :  { %3671 = vmatprep.subr.msk.mxu0 %vm1708_vm7, %v6640_v10  ;;  %3727 = vmatprep.subr.msk.mxu1 %vm1433_vm2, %v6640_v10  ;;  %v1412_v54 = vsel %vm1396_vm10, 1.0, %v6835_v48  ;;  %v1411_v52 = vsel %vm1395_vm13, 1.0, %v6835_v48 }
 0x24b   :  { %3672 = vmatpush3.msk.msra.mxu0 %vm1708_vm7, %v6640_v10  ;;  %3728 = vmatpush3.msk.msra.mxu1 %vm1433_vm2, %v6640_v10  ;;  %vm1638_vm7 = vcmp.eq.s32.totalorder %v5881_v28, %v5883_v55  ;;  %vm1639_vm2 = vcmp.eq.s32.totalorder %v5878_v63, %v5883_v55 }
 0x24c   :  { %3673 = vmatprep.subr.msk.mxu0 %vm1707_vm12, %v6640_v10  ;;  %3729 = vmatprep.subr.msk.mxu1 %vm1432_vm15, %v6640_v10  ;;  %v1654_v49 = vsel %vm1638_vm7, 1.0, %v6835_v48  ;;  %v1655_v27 = vsel %vm1639_vm2, 1.0, %v6835_v48 }
 0x24d   :  { %3674 = vmatpush3.msk.msra.mxu0 %vm1707_vm12, %v6640_v10  ;;  %3730 = vmatpush3.msk.msra.mxu1 %vm1432_vm15, %v6640_v10  ;;  %vm1397_vm12 = vcmp.eq.s32.totalorder %v5892_v40, %v4168_v4  ;;  %vm1640_vm15 = vcmp.eq.s32.totalorder %v5892_v40, %v5883_v55 }
 0x24e   :  { %3675 = vmatprep.subr.msk.mxu0 %vm1706_vm5, %v6640_v10  ;;  %3731 = vmatprep.subr.msk.mxu1 %vm1431_vm6, %v6640_v10  ;;  %v1413_v42 = vsel %vm1397_vm12, 1.0, %v6835_v48  ;;  %v1656_v19 = vsel %vm1640_vm15, 1.0, %v6835_v48 }
 0x24f   :  { %3676 = vmatpush3.msk.msra.mxu0 %vm1706_vm5, %v6640_v10  ;;  %3732 = vmatpush3.msk.msra.mxu1 %vm1431_vm6, %v6640_v10  ;;  %vm1398_vm5 = vcmp.eq.s32.totalorder %v5897_v14, %v4168_v4  ;;  %vm1641_vm6 = vcmp.eq.s32.totalorder %v5897_v14, %v5883_v55 }
 0x250   :  { %3677 = vmatprep.subr.msk.mxu0 %vm1705_vm8, %v6640_v10  ;;  %3733 = vmatprep.subr.msk.mxu1 %vm1430_vm4, %v6640_v10  ;;  %v1414_v2 = vsel %vm1398_vm5, 1.0, %v6835_v48  ;;  %v1657_v46 = vsel %vm1641_vm6, 1.0, %v6835_v48 }
 0x251   :  { %3678 = vmatpush3.msk.msra.mxu0 %vm1705_vm8, %v6640_v10  ;;  %3734 = vmatpush3.msk.msra.mxu1 %vm1430_vm4, %v6640_v10  ;;  %vm1399_vm8 = vcmp.eq.s32.totalorder %v5908_v32, %v4168_v4  ;;  %vm1642_vm4 = vcmp.eq.s32.totalorder %v5908_v32, %v5883_v55 }
 0x252   :  { %3735 = vmatprep.subr.msk.mxu1 %vm1429_vm3, %v6640_v10  ;;  %3679 = vmatprep.subr.msk.mxu0 %vm1704_vm9, %v6640_v10 }
 0x253   :  { %3736 = vmatpush3.msk.msra.mxu1 %vm1429_vm3, %v6640_v10  ;;  %3680 = vmatpush3.msk.msra.mxu0 %vm1704_vm9, %v6640_v10  ;;  %vm1400_vm3 = vcmp.eq.s32.totalorder %v5913_v33, %v4168_v4  ;;  %vm1643_vm9 = vcmp.eq.s32.totalorder %v5913_v33, %v5883_v55 }
 0x254   :  { %3737 = vmatprep.subr.msk.mxu1 %vm1428_vm1, %v6640_v10  ;;  %3681 = vmatprep.subr.msk.mxu0 %vm1703_vm14, %v6640_v10 }
 0x255   :  { %3738 = vmatpush3.msk.msra.mxu1 %vm1428_vm1, %v6640_v10  ;;  %3682 = vmatpush3.msk.msra.mxu0 %vm1703_vm14, %v6640_v10  ;;  %vm1401_vm1 = vcmp.eq.s32.totalorder %v5925_v58, %v4168_v4  ;;  %vm1644_vm14 = vcmp.eq.s32.totalorder %v5925_v58, %v5883_v55 }
 0x256   :  { %3739 = vmatprep.subr.msk.mxu1 %vm1427_vm11, %v6640_v10  ;;  %3683 = vmatprep.subr.msk.mxu0 %vm1702_vm0, %v6640_v10 }
 0x257   :  { %3740 = vmatpush3.msk.msra.mxu1 %vm1427_vm11, %v6640_v10  ;;  %3684 = vmatpush3.msk.msra.mxu0 %vm1702_vm0, %v6640_v10 }
 0x258   :  { %3765 = vmatprep.subr.mxu0 %v2055_v61 }
 0x2ea   :  { %v3575_v41 = vpop.f32.mrf.mxu0  ;;  %v3631_v22 = vpop.f32.mrf.mxu1 }
 0x2eb   :  { %v1460_v34 = vmul.f32 %v3575_v41, %v1412_v54  ;;  %v1735_v25 = vmul.f32 %v3631_v22, %v1655_v27 }
 0x2ec   :  { %v1316_v21 = vpop.f32.mrf.mxu0  ;;  %v1557_v31 = vpop.f32.mrf.mxu1 }
 0x2ed   :  { %v1459_v12 = vmul.f32 %v1411_v52, %v1316_v21  ;;  %v1734_v13 = vmul.f32 %v1654_v49, %v1557_v31  ;;  %v5933_v49 = vand.u32 63, %v6814_v36 }
 0x2ee   :  { %v3578_v59 = vpop.f32.mrf.mxu0  ;;  %v3634_v26 = vpop.f32.mrf.mxu1 }
 0x2ef   :  { %3685 = vmatprep.mubr.f32.mxu0 %v1734_v13  ;;  %3741 = vmatprep.mubr.f32.mxu1 %v1459_v12  ;;  %6837 = vst [vmem:[#allocation12_spill] sm:$0xff] %v5933_v49  ;;  %v1462_v27 = vmul.f32 %v3578_v59, %v1414_v2  ;;  %v1415_v12 = vsel %vm1399_vm8, 1.0, %v6835_v48  ;;  %v2053_v13 = vld [vmem:[#allocation5 + $0x1b0] sm:$0xff]  ;;  %v1416_v59 = vsel %vm1400_vm3, 1.0, %v6835_v48  ;;  %vm1402_vm11 = vcmp.eq.s32.totalorder %v5933_v49, %v4168_v4 }
 0x2f0   :  { %v1326_v41 = vpop.f32.mrf.mxu0  ;;  %v1567_v54 = vpop.f32.mrf.mxu1  ;;  %3686 = vmatmul.mubr.f32.vlgmr.msra.gmra.mxu0 %v1735_v25  ;;  %3742 = vmatmul.mubr.f32.vlgmr.msra.gmra.mxu1 %v1460_v34  ;;  %v5944_v34 = vand.u32 63, %v6808_v3  ;;  %v1737_v25 = vmul.f32 %v3634_v26, %v1657_v46  ;;  %v2052_v2 = vld [vmem:[#allocation5 + $0x190] sm:$0xff]  ;;  %v5959_v46 = vand.u32 63, %v6802_v5  ;;  %vm1645_vm0 = vcmp.eq.s32.totalorder %v5933_v49, %v5883_v55 }
 0x2f1   :  { %v1461_v22 = vmul.f32 %v1413_v42, %v1326_v41  ;;  %v1736_v52 = vmul.f32 %v1656_v19, %v1567_v54  ;;  %3766 = vmatpush3.msra.mxu0 %v2055_v61  ;;  %v1658_v61 = vsel %vm1642_vm4, 1.0, %v6835_v48  ;;  %v1659_v42 = vsel %vm1643_vm9, 1.0, %v6835_v48 }
 0x2f2   :  { %v3581_v21 = vpop.f32.mrf.mxu0  ;;  %v3637_v31 = vpop.f32.mrf.mxu1  ;;  %3767 = vmatprep.subr.mxu0 %v2054_v6  ;;  %6838 = vst [vmem:[#allocation26_spill] sm:$0xff] %v5944_v34  ;;  %6839 = vst [vmem:[#allocation25_spill] sm:$0xff] %v5959_v46  ;;  %vm1403_vm10 = vcmp.eq.s32.totalorder %v5944_v34, %v4168_v4  ;;  %vm1646_vm13 = vcmp.eq.s32.totalorder %v5944_v34, %v5883_v55  ;;  %vm1404_vm7 = vcmp.eq.s32.totalorder %v5959_v46, %v4168_v4 }
 0x2f3   :  { %3688 = vmatprep.mubr.f32.mxu0 %v1736_v52  ;;  %3744 = vmatprep.mubr.f32.mxu1 %v1461_v22  ;;  %vm1647_vm2 = vcmp.eq.s32.totalorder %v5959_v46, %v5883_v55  ;;  %v1419_v58 = vsel %vm1403_vm10, 1.0, %v6835_v48  ;;  %v6020_v34 = vand.u32 63, %v6778_v51 }
 0x2f4   :  { %3768 = vmatpush3.msra.mxu0 %v2054_v6  ;;  %v1336_v26 = vpop.f32.mrf.mxu0  ;;  %v1577_v19 = vpop.f32.mrf.mxu1  ;;  %3745 = vmatmul.mubr.f32.gmra.mxu1 %v1462_v27  ;;  %v1417_v6 = vsel %vm1401_vm1, 1.0, %v6835_v48  ;;  %v1660_v27 = vsel %vm1644_vm14, 1.0, %v6835_v48 }
 0x2f5   :  { %v1463_v41 = vmul.f32 %v1415_v12, %v1336_v26  ;;  %v1738_v54 = vmul.f32 %v1658_v61, %v1577_v19  ;;  %3689 = vmatmul.mubr.f32.gmra.mxu0 %v1737_v25  ;;  %3769 = vmatprep.subr.mxu0 %v2053_v13  ;;  %v1464_v12 = vmul.f32 %v3581_v21, %v1416_v59  ;;  %v5978_v25 = vand.u32 63, %v6796_v8 }
 0x2f6   :  { %3770 = vmatpush3.msra.mxu0 %v2053_v13  ;;  %v3584_v22 = vpop.f32.mrf.mxu0  ;;  %v3640_v52 = vpop.f32.mrf.mxu1  ;;  %v1739_v61 = vmul.f32 %v3637_v31, %v1659_v42  ;;  %v2051_v13 = vld [vmem:[#allocation5 + $0x170] sm:$0xff]  ;;  %v1418_v26 = vsel %vm1402_vm11, 1.0, %v6835_v48  ;;  %v5984_v21 = vand.u32 63, %v6790_v47  ;;  %v1661_v31 = vsel %vm1645_vm0, 1.0, %v6835_v48  ;;  %6843 = vst [vmem:[#allocation21_spill] sm:$0xff] %v6020_v34 }
 0x2f7   :  { %3771 = vmatprep.subr.mxu0 %v2052_v2  ;;  %3691 = vmatprep.mubr.f32.mxu0 %v1738_v54  ;;  %6840 = vst [vmem:[#allocation24_spill] sm:$0xff] %v5978_v25  ;;  %vm1405_vm12 = vcmp.eq.s32.totalorder %v5978_v25, %v4168_v4  ;;  %vm1648_vm15 = vcmp.eq.s32.totalorder %v5978_v25, %v5883_v55 }
 0x2f8   :  { %3747 = vmatprep.mubr.f32.mxu1 %v1463_v41  ;;  %3772 = vmatpush3.msra.mxu0 %v2052_v2  ;;  %v1346_v19 = vpop.f32.mrf.mxu0  ;;  %v1587_v10 = vpop.f32.mrf.mxu1  ;;  %6841 = vst [vmem:[#allocation23_spill] sm:$0xff] %v5984_v21  ;;  %v2050_v2 = vld [vmem:[#allocation5 + $0x150] sm:$0xff]  ;;  %vm1406_vm5 = vcmp.eq.s32.totalorder %v5984_v21, %v4168_v4  ;;  %vm1649_vm6 = vcmp.eq.s32.totalorder %v5984_v21, %v5883_v55  ;;  %v1421_v49 = vsel %vm1405_vm12, 1.0, %v6835_v48 }
 0x2f9   :  { %v1465_v59 = vmul.f32 %v1417_v6, %v1346_v19  ;;  %v1740_v42 = vmul.f32 %v1660_v27, %v1587_v10  ;;  %3692 = vmatmul.mubr.f32.gmra.mxu0 %v1739_v61  ;;  %3748 = vmatmul.mubr.f32.gmra.mxu1 %v1464_v12  ;;  %v1662_v6 = vsel %vm1646_vm13, 1.0, %v6835_v48  ;;  %v1466_v10 = vmul.f32 %v3584_v22, %v1418_v26  ;;  %v2049_v27 = vld [vmem:[#allocation5 + $0x130] sm:$0xff] }
 0x2fa   :  { %3773 = vmatprep.subr.mxu0 %v2051_v13  ;;  %v3587_v41 = vpop.f32.mrf.mxu0  ;;  %v3643_v54 = vpop.f32.mrf.mxu1  ;;  %v6005_v12 = vand.u32 63, %v6784_v44  ;;  %v1741_v61 = vmul.f32 %v3640_v52, %v1661_v31  ;;  %v1420_v19 = vsel %vm1404_vm7, 1.0, %v6835_v48  ;;  %v1663_v22 = vsel %vm1647_vm2, 1.0, %v6835_v48  ;;  %v2048_v31 = vld [vmem:[#allocation5 + $0x110] sm:$0xff] }
 0x2fb   :  { %3774 = vmatpush3.msra.mxu0 %v2051_v13  ;;  %3694 = vmatprep.mubr.f32.mxu0 %v1740_v42  ;;  %vm1408_vm3 = vcmp.eq.s32.totalorder %v6020_v34, %v4168_v4  ;;  %vm1651_vm9 = vcmp.eq.s32.totalorder %v6020_v34, %v5883_v55  ;;  %v2042_v34 = vld [vmem:[#allocation5 + $0x50] sm:$0xff] }
 0x2fc   :  { %6842 = vst [vmem:[#allocation22_spill] sm:$0xff] %v6005_v12  ;;  %3775 = vmatprep.subr.mxu0 %v2050_v2  ;;  %3750 = vmatprep.mubr.f32.mxu1 %v1465_v59  ;;  %v1356_v13 = vpop.f32.mrf.mxu0  ;;  %v1597_v26 = vpop.f32.mrf.mxu1  ;;  %vm1407_vm8 = vcmp.eq.s32.totalorder %v6005_v12, %v4168_v4  ;;  %vm1650_vm4 = vcmp.eq.s32.totalorder %v6005_v12, %v5883_v55 }
 0x2fd   :  { %3776 = vmatpush3.msra.mxu0 %v2050_v2  ;;  %v1467_v42 = vmul.f32 %v1419_v58, %v1356_v13  ;;  %v1742_v52 = vmul.f32 %v1662_v6, %v1597_v26  ;;  %3751 = vmatmul.mubr.f32.gmra.mxu1 %v1466_v10  ;;  %v1664_v58 = vsel %vm1648_vm15, 1.0, %v6835_v48  ;;  %v1468_v2 = vmul.f32 %v3587_v41, %v1420_v19  ;;  %v2047_v6 = vld [vmem:[#allocation5 + $0xf0] sm:$0xff] }
 0x2fe   :  { %3695 = vmatmul.mubr.f32.gmra.mxu0 %v1741_v61  ;;  %3777 = vmatprep.subr.mxu0 %v2049_v27  ;;  %v3590_v46 = vpop.f32.mrf.mxu0  ;;  %v3646_v59 = vpop.f32.mrf.mxu1  ;;  %v6035_v10 = vand.u32 63, %v6777_v0  ;;  %v1743_v61 = vmul.f32 %v3643_v54, %v1663_v22  ;;  %v1422_v13 = vsel %vm1406_vm5, 1.0, %v6835_v48  ;;  %v1665_v41 = vsel %vm1649_vm6, 1.0, %v6835_v48  ;;  %v2046_v54 = vld [vmem:[#allocation5 + $0xd0] sm:$0xff] }
 0x2ff   :  { %3778 = vmatpush3.msra.mxu0 %v2049_v27  ;;  %3697 = vmatprep.mubr.f32.mxu0 %v1742_v52  ;;  %v6048_v22 = vand.u32 63, %v6770_v1 }
 0x300   :  { %3779 = vmatprep.subr.mxu0 %v2048_v31  ;;  %3753 = vmatprep.mubr.f32.mxu1 %v1467_v42  ;;  %v1366_v27 = vpop.f32.mrf.mxu0  ;;  %v1607_v19 = vpop.f32.mrf.mxu1  ;;  %v1666_v42 = vsel %vm1650_vm4, 1.0, %v6835_v48  ;;  %vm1409_vm1 = vcmp.eq.s32.totalorder %v6035_v10, %v4168_v4  ;;  %vm1652_vm14 = vcmp.eq.s32.totalorder %v6035_v10, %v5883_v55 }
 0x301   :  { %3780 = vmatpush3.msra.mxu0 %v2048_v31  ;;  %v1469_v26 = vmul.f32 %v1421_v49, %v1366_v27  ;;  %v1744_v52 = vmul.f32 %v1664_v58, %v1607_v19  ;;  %3754 = vmatmul.mubr.f32.gmra.mxu1 %v1468_v2  ;;  %6844 = vst [vmem:[#allocation20_spill] sm:$0xff] %v6048_v22  ;;  %v1423_v49 = vsel %vm1407_vm8, 1.0, %v6835_v48  ;;  %v2045_v58 = vld [vmem:[#allocation5 + $0xb0] sm:$0xff] }
 0x302   :  { %3698 = vmatmul.mubr.f32.gmra.mxu0 %v1743_v61  ;;  %3781 = vmatprep.subr.mxu0 %v2047_v6  ;;  %v3593_v25 = vpop.f32.mrf.mxu0  ;;  %v3649_v21 = vpop.f32.mrf.mxu1  ;;  %v1470_v31 = vmul.f32 %v3590_v46, %v1422_v13  ;;  %v1745_v2 = vmul.f32 %v3646_v59, %v1665_v41  ;;  %v1424_v61 = vsel %vm1408_vm3, 1.0, %v6835_v48  ;;  %v1667_v46 = vsel %vm1651_vm9, 1.0, %v6835_v48 }
 0x303   :  { %3782 = vmatpush3.msra.mxu0 %v2047_v6  ;;  %3700 = vmatprep.mubr.f32.mxu0 %v1744_v52  ;;  %vm1410_vm11 = vcmp.eq.s32.totalorder %v6048_v22, %v4168_v4  ;;  %v2044_v52 = vld [vmem:[#allocation5 + $0x90] sm:$0xff]  ;;  %vm1653_vm0 = vcmp.eq.s32.totalorder %v6048_v22, %v5883_v55 }
 0x304   :  { %3783 = vmatprep.subr.mxu0 %v2046_v54  ;;  %3756 = vmatprep.mubr.f32.mxu1 %v1469_v26  ;;  %v1376_v27 = vpop.f32.mrf.mxu0  ;;  %v1617_v19 = vpop.f32.mrf.mxu1  ;;  %v1425_v26 = vsel %vm1409_vm1, 1.0, %v6835_v48  ;;  %v1669_v22 = vsel %vm1653_vm0, 1.0, %v6835_v48 }
 0x305   :  { %3784 = vmatpush3.msra.mxu0 %v2046_v54  ;;  %v1471_v6 = vmul.f32 %v1423_v49, %v1376_v27  ;;  %v1746_v13 = vmul.f32 %v1666_v42, %v1617_v19  ;;  %3757 = vmatmul.mubr.f32.gmra.mxu1 %v1470_v31  ;;  %v1668_v54 = vsel %vm1652_vm14, 1.0, %v6835_v48  ;;  %v1472_v49 = vmul.f32 %v3593_v25, %v1424_v61  ;;  %v2043_v42 = vld [vmem:[#allocation5 + $0x70] sm:$0xff]  ;;  %v2491_v61 = vld [vmem:[#allocation5 + $0x1f8] sm:$0xff] }
 0x306   :  { %3701 = vmatmul.mubr.f32.gmra.mxu0 %v1745_v2  ;;  %3785 = vmatprep.subr.mxu0 %v2045_v58  ;;  %v3596_v59 = vpop.f32.mrf.mxu0  ;;  %v3652_v41 = vpop.f32.mrf.mxu1  ;;  %v1747_v31 = vmul.f32 %v3649_v21, %v1667_v46  ;;  %v1426_v2 = vsel %vm1410_vm11, 1.0, %v6835_v48  ;;  %v2041_v25 = vld [vmem:[#allocation5 + $0x30] sm:$0xff]  ;;  %v2490_v46 = vld [vmem:[#allocation5 + $0x1d8] sm:$0xff] }
 0x307   :  { %3786 = vmatpush3.msra.mxu0 %v2045_v58  ;;  %3703 = vmatprep.mubr.f32.mxu0 %v1746_v13  ;;  %v1474_v55 = vmul.f32 %v3596_v59, %v1426_v2  ;;  %v1749_v21 = vmul.f32 %v3652_v41, %v1669_v22  ;;  %v2040_v58 = vld [vmem:[#allocation5 + $0x10] sm:$0xff]  ;;  %v2487_v22 = vld [vmem:[#allocation5 + $0x178] sm:$0xff] }
 0x308   :  { %3787 = vmatprep.subr.mxu0 %v2044_v52  ;;  %3759 = vmatprep.mubr.f32.mxu1 %v1471_v6  ;;  %v1386_v27 = vpop.f32.mrf.mxu0  ;;  %v1627_v19 = vpop.f32.mrf.mxu1  ;;  %v2486_v6 = vld [vmem:[#allocation5 + $0x158] sm:$0xff] }
 0x309   :  { %3788 = vmatpush3.msra.mxu0 %v2044_v52  ;;  %v1473_v4 = vmul.f32 %v1425_v26, %v1386_v27  ;;  %v1748_v12 = vmul.f32 %v1668_v54, %v1627_v19  ;;  %3760 = vmatmul.mubr.f32.gmra.mxu1 %v1472_v49  ;;  %v2485_v13 = vld [vmem:[#allocation5 + $0x138] sm:$0xff]  ;;  %v2250_v27 = vadd.s32 256, %v6770_v1 }
 0x30a   :  { %3704 = vmatmul.mubr.f32.gmra.mxu0 %v1747_v31  ;;  %3789 = vmatprep.subr.mxu0 %v2043_v42  ;;  %v2484_v52 = vld [vmem:[#allocation5 + $0x118] sm:$0xff] }
 0x30b   :  { %3790 = vmatpush3.msra.mxu0 %v2043_v42  ;;  %3706 = vmatprep.mubr.f32.mxu0 %v1748_v12  ;;  %v2489_v12 = vld [vmem:[#allocation5 + $0x1b8] sm:$0xff]  ;;  %v2266_v19 = vand.u32 7, %v2250_v27 }
 0x30c   :  { %3791 = vmatprep.subr.mxu0 %v2042_v34  ;;  %3762 = vmatprep.mubr.f32.mxu1 %v1473_v4  ;;  %v2483_v59 = vld [vmem:[#allocation5 + $0xf8] sm:$0xff]  ;;  %v2249_v4 = vadd.s32 256, %v6777_v0 }
 0x30d   :  { %3792 = vmatpush3.msra.mxu0 %v2042_v34  ;;  %3763 = vmatmul.mubr.f32.gmra.mxu1 %v1474_v55  ;;  %v2488_v34 = vld [vmem:[#allocation5 + $0x198] sm:$0xff]  ;;  %vm2282_vm10 = vcmp.eq.s32.totalorder %v2266_v19, %v6771_v24  ;;  %v2248_v55 = vadd.s32 256, %v6778_v51 }
 0x30e   :  { %3707 = vmatmul.mubr.f32.gmra.mxu0 %v1749_v21  ;;  %3793 = vmatprep.subr.mxu0 %v2041_v25  ;;  %v2482_v41 = vld [vmem:[#allocation5 + $0xd8] sm:$0xff] }
 0x30f   :  { %3794 = vmatpush3.msra.mxu0 %v2041_v25  ;;  %3797 = vmatprep.mubr.f32.mxu0 %v5547_v43  ;;  %v2481_v26 = vld [vmem:[#allocation5 + $0xb8] sm:$0xff]  ;;  %v2245_v25 = vadd.s32 256, %v6796_v8 }
 0x310   :  { %3795 = vmatprep.subr.mxu0 %v2040_v58  ;;  %v2480_v54 = vld [vmem:[#allocation5 + $0x98] sm:$0xff] }
 0x311   :  { %3796 = vmatpush3.msra.mxu0 %v2040_v58  ;;  %v2479_v49 = vld [vmem:[#allocation5 + $0x78] sm:$0xff]  ;;  %v2261_v21 = vand.u32 7, %v2245_v25  ;;  %v2243_v58 = vadd.s32 256, %v6808_v3 }
 0x312   :  { %3798 = vmatmul.mubr.f32.vlgmr.msra.gmra.mxu0 %v5549_v9  ;;  %3877 = vmatprep.subr.mxu0 %v2491_v61  ;;  %v2478_v42 = vld [vmem:[#allocation5 + $0x58] sm:$0xff] }
 0x313   :  { %3800 = vmatprep.mubr.f32.mxu0 %v5570_v50  ;;  %3878 = vmatpush3.msra.mxu0 %v2491_v61  ;;  %v2477_v31 = vld [vmem:[#allocation5 + $0x38] sm:$0xff]  ;;  %vm2277_vm15 = vcmp.eq.s32.totalorder %v2261_v21, %v6771_v24  ;;  %v2259_v61 = vand.u32 7, %v2243_v58 }
 0x314   :  { %3879 = vmatprep.subr.mxu0 %v2490_v46  ;;  %v2476_v2 = vld [vmem:[#allocation5 + $0x18] sm:$0xff] }
 0x315   :  { %3880 = vmatpush3.msra.mxu0 %v2490_v46  ;;  %vm2275_vm6 = vcmp.eq.s32.totalorder %v2259_v61, %v6771_v24  ;;  %v2241_v46 = vadd.s32 256, %v6815_v16 }
 0x316   :  { %3801 = vmatmul.mubr.f32.gmra.mxu0 %v5578_v35  ;;  %3881 = vmatprep.subr.mxu0 %v2489_v12 }
 0x317   :  { %3803 = vmatprep.mubr.f32.mxu0 %v5605_v11  ;;  %3882 = vmatpush3.msra.mxu0 %v2489_v12  ;;  %v2257_v12 = vand.u32 7, %v2241_v46 }
 0x318   :  { %3883 = vmatprep.subr.mxu0 %v2488_v34 }
 0x319   :  { %3884 = vmatpush3.msra.mxu0 %v2488_v34  ;;  %vm2273_vm4 = vcmp.eq.s32.totalorder %v2257_v12, %v6771_v24  ;;  %v2239_v34 = vadd.s32 256, %v6822_v39 }
 0x31a   :  { %3804 = vmatmul.mubr.f32.gmra.mxu0 %v5613_v29  ;;  %3885 = vmatprep.subr.mxu0 %v2487_v22 }
 0x31b   :  { %3806 = vmatprep.mubr.f32.mxu0 %v5640_v37  ;;  %3886 = vmatpush3.msra.mxu0 %v2487_v22  ;;  %v2255_v22 = vand.u32 7, %v2239_v34 }
 0x31c   :  { %3887 = vmatprep.subr.mxu0 %v2486_v6 }
 0x31d   :  { %3888 = vmatpush3.msra.mxu0 %v2486_v6  ;;  %vm2271_vm9 = vcmp.eq.s32.totalorder %v2255_v22, %v6771_v24  ;;  %v2237_v6 = vadd.s32 256, %v6829_v7 }
 0x31e   :  { %3807 = vmatmul.mubr.f32.gmra.mxu0 %v5648_v17  ;;  %3889 = vmatprep.subr.mxu0 %v2485_v13 }
 0x31f   :  { %3809 = vmatprep.mubr.f32.mxu0 %v5675_v56  ;;  %3890 = vmatpush3.msra.mxu0 %v2485_v13  ;;  %v2253_v13 = vand.u32 7, %v2237_v6 }
 0x320   :  { %3891 = vmatprep.subr.mxu0 %v2484_v52 }
 0x321   :  { %3892 = vmatpush3.msra.mxu0 %v2484_v52  ;;  %v2236_v52 = vadd.s32 256, %v6831_v38  ;;  %vm2269_vm14 = vcmp.eq.s32.totalorder %v2253_v13, %v6771_v24 }
 0x322   :  { %3810 = vmatmul.mubr.f32.gmra.mxu0 %v5683_v57  ;;  %3893 = vmatprep.subr.mxu0 %v2483_v59 }
 0x323   :  { %3812 = vmatprep.mubr.f32.mxu0 %v5710_v18  ;;  %3894 = vmatpush3.msra.mxu0 %v2483_v59  ;;  %v2235_v59 = vadd.s32 256, %v6833_v15 }
 0x324   :  { %3895 = vmatprep.subr.mxu0 %v2482_v41 }
 0x325   :  { %3896 = vmatpush3.msra.mxu0 %v2482_v41  ;;  %v2251_v41 = vand.u32 7, %v2235_v59  ;;  %v2201_v59 = vadd.s32 256, %v6771_v24 }
 0x326   :  { %3813 = vmatmul.mubr.f32.gmra.mxu0 %v5718_v60  ;;  %3897 = vmatprep.subr.mxu0 %v2481_v26 }
 0x327   :  { %3815 = vmatprep.mubr.f32.mxu0 %v5745_v53  ;;  %3898 = vmatpush3.msra.mxu0 %v2481_v26  ;;  %v2686_v26 = vadd.s32 384, %v6770_v1  ;;  %vm2267_vm0 = vcmp.eq.s32.totalorder %v2251_v41, %v6771_v24 }
 0x328   :  { %3899 = vmatprep.subr.mxu0 %v2480_v54 }
 0x329   :  { %3900 = vmatpush3.msra.mxu0 %v2480_v54  ;;  %v2702_v54 = vand.u32 7, %v2686_v26 }
 0x32a   :  { %3816 = vmatmul.mubr.f32.gmra.mxu0 %v5754_v20  ;;  %3901 = vmatprep.subr.mxu0 %v2479_v49 }
 0x32b   :  { %3818 = vmatprep.mubr.f32.mxu0 %v5781_v62  ;;  %3902 = vmatpush3.msra.mxu0 %v2479_v49  ;;  %v6852_v49 = vld [vmem:[#allocation12_spill] sm:$0xff] }
 0x32c   :  { %3903 = vmatprep.subr.mxu0 %v2478_v42 }
 0x32d   :  { %3904 = vmatpush3.msra.mxu0 %v2478_v42 }
 0x32e   :  { %3819 = vmatmul.mubr.f32.gmra.mxu0 %v5790_v30  ;;  %3905 = vmatprep.subr.mxu0 %v2477_v31 }
 0x32f   :  { %3906 = vmatpush3.msra.mxu0 %v2477_v31  ;;  %3909 = vmatprep.mubr.f32.mxu0 %v5547_v43  ;;  %v2265_v43 = vand.u32 7, %v2249_v4 }
 0x330   :  { %3907 = vmatprep.subr.mxu0 %v2476_v2 }
 0x331   :  { %3908 = vmatpush3.msra.mxu0 %v2476_v2  ;;  %vm2281_vm13 = vcmp.eq.s32.totalorder %v2265_v43, %v6771_v24 }
 0x332   :  { %3910 = vmatmul.mubr.f32.vlgmr.msra.gmra.mxu0 %v5549_v9  ;;  %3989 = vmatprep.subr.mxu0 %v6835_v48  ;;  %v6845_v9 = vmov 1.0  }
 0x333   :  { %3912 = vmatprep.mubr.f32.mxu0 %v5570_v50  ;;  %3821 = vmatprep.subr.msk.mxu1 %vm2282_vm10, %v6845_v9  ;;  %v2264_v50 = vand.u32 7, %v2248_v55 }
 0x334   :  { %3822 = vmatpush3.msk.msra.mxu1 %vm2282_vm10, %v6845_v9  ;;  %vm6182_vm10 = vcmp.eq.s32.totalorder %v2702_v54, %v6771_v24 }
 0x335   :  { %3823 = vmatprep.subr.msk.mxu1 %vm2281_vm13, %v6845_v9  ;;  %vm2280_vm7 = vcmp.eq.s32.totalorder %v2264_v50, %v6771_v24 }
 0x336   :  { %3913 = vmatmul.mubr.f32.gmra.mxu0 %v5578_v35  ;;  %v2247_v35 = vadd.s32 256, %v6784_v44  ;;  %3824 = vmatpush3.msk.msra.mxu1 %vm2281_vm13, %v6845_v9 }
 0x337   :  { %3915 = vmatprep.mubr.f32.mxu0 %v5605_v11  ;;  %3825 = vmatprep.subr.msk.mxu1 %vm2280_vm7, %v6845_v9 }
 0x338   :  { %v2263_v11 = vand.u32 7, %v2247_v35  ;;  %3826 = vmatpush3.msk.msra.mxu1 %vm2280_vm7, %v6845_v9 }
 0x33a   :  { %3916 = vmatmul.mubr.f32.gmra.mxu0 %v5613_v29  ;;  %v2246_v29 = vadd.s32 256, %v6790_v47  ;;  %vm2279_vm2 = vcmp.eq.s32.totalorder %v2263_v11, %v6771_v24 }
 0x33b   :  { %3918 = vmatprep.mubr.f32.mxu0 %v5640_v37  ;;  %3827 = vmatprep.subr.msk.mxu1 %vm2279_vm2, %v6845_v9 }
 0x33c   :  { %v2262_v37 = vand.u32 7, %v2246_v29  ;;  %3828 = vmatpush3.msk.msra.mxu1 %vm2279_vm2, %v6845_v9 }
 0x33e   :  { %3919 = vmatmul.mubr.f32.gmra.mxu0 %v5648_v17  ;;  %vm2278_vm12 = vcmp.eq.s32.totalorder %v2262_v37, %v6771_v24  ;;  %v2244_v17 = vadd.s32 256, %v6802_v5 }
 0x33f   :  { %3921 = vmatprep.mubr.f32.mxu0 %v5675_v56  ;;  %3829 = vmatprep.subr.msk.mxu1 %vm2278_vm12, %v6845_v9 }
 0x340   :  { %3830 = vmatpush3.msk.msra.mxu1 %vm2278_vm12, %v6845_v9  ;;  %v2260_v56 = vand.u32 7, %v2244_v17 }
 0x341   :  { %3831 = vmatprep.subr.msk.mxu1 %vm2277_vm15, %v6845_v9 }
 0x342   :  { %3922 = vmatmul.mubr.f32.gmra.mxu0 %v5683_v57  ;;  %3832 = vmatpush3.msk.msra.mxu1 %vm2277_vm15, %v6845_v9  ;;  %vm2276_vm5 = vcmp.eq.s32.totalorder %v2260_v56, %v6771_v24  ;;  %v2242_v57 = vadd.s32 256, %v6814_v36 }
 0x343   :  { %3924 = vmatprep.mubr.f32.mxu0 %v5710_v18  ;;  %3833 = vmatprep.subr.msk.mxu1 %vm2276_vm5, %v6845_v9 }
 0x344   :  { %3834 = vmatpush3.msk.msra.mxu1 %vm2276_vm5, %v6845_v9  ;;  %v2258_v18 = vand.u32 7, %v2242_v57 }
 0x345   :  { %3835 = vmatprep.subr.msk.mxu1 %vm2275_vm6, %v6845_v9 }
 0x346   :  { %3925 = vmatmul.mubr.f32.gmra.mxu0 %v5718_v60  ;;  %3836 = vmatpush3.msk.msra.mxu1 %vm2275_vm6, %v6845_v9  ;;  %vm2274_vm8 = vcmp.eq.s32.totalorder %v2258_v18, %v6771_v24  ;;  %v2240_v60 = vadd.s32 256, %v6821_v23 }
 0x347   :  { %3927 = vmatprep.mubr.f32.mxu0 %v5745_v53  ;;  %3837 = vmatprep.subr.msk.mxu1 %vm2274_vm8, %v6845_v9 }
 0x348   :  { %3838 = vmatpush3.msk.msra.mxu1 %vm2274_vm8, %v6845_v9  ;;  %v2256_v53 = vand.u32 7, %v2240_v60 }
 0x349   :  { %3839 = vmatprep.subr.msk.mxu1 %vm2273_vm4, %v6845_v9 }
 0x34a   :  { %3928 = vmatmul.mubr.f32.gmra.mxu0 %v5754_v20  ;;  %3840 = vmatpush3.msk.msra.mxu1 %vm2273_vm4, %v6845_v9  ;;  %vm2272_vm3 = vcmp.eq.s32.totalorder %v2256_v53, %v6771_v24  ;;  %v2238_v20 = vadd.s32 256, %v6824_v45 }
 0x34b   :  { %3930 = vmatprep.mubr.f32.mxu0 %v5781_v62  ;;  %3841 = vmatprep.subr.msk.mxu1 %vm2272_vm3, %v6845_v9 }
 0x34c   :  { %3842 = vmatpush3.msk.msra.mxu1 %vm2272_vm3, %v6845_v9  ;;  %v2254_v62 = vand.u32 7, %v2238_v20 }
 0x34d   :  { %3843 = vmatprep.subr.msk.mxu1 %vm2271_vm9, %v6845_v9 }
 0x34e   :  { %3931 = vmatmul.mubr.f32.gmra.mxu0 %v5790_v30  ;;  %3844 = vmatpush3.msk.msra.mxu1 %vm2271_vm9, %v6845_v9  ;;  %vm2270_vm1 = vcmp.eq.s32.totalorder %v2254_v62, %v6771_v24  ;;  %v2252_v30 = vand.u32 7, %v2236_v52 }
 0x34f   :  { %3845 = vmatprep.subr.msk.mxu1 %vm2270_vm1, %v6845_v9 }
 0x350   :  { %3846 = vmatpush3.msk.msra.mxu1 %vm2270_vm1, %v6845_v9  ;;  %vm2268_vm11 = vcmp.eq.s32.totalorder %v2252_v30, %v6771_v24 }
 0x351   :  { %3847 = vmatprep.subr.msk.mxu1 %vm2269_vm14, %v6845_v9 }
 0x352   :  { %3848 = vmatpush3.msk.msra.mxu1 %vm2269_vm14, %v6845_v9 }
 0x353   :  { %3849 = vmatprep.subr.msk.mxu1 %vm2268_vm11, %v6845_v9 }
 0x354   :  { %3850 = vmatpush3.msk.msra.mxu1 %vm2268_vm11, %v6845_v9 }
 0x355   :  { %3851 = vmatprep.subr.msk.mxu1 %vm2267_vm0, %v6845_v9 }
 0x356   :  { %3852 = vmatpush3.msk.msra.mxu1 %vm2267_vm0, %v6845_v9 }
 0x357   :  { %3933 = vmatprep.subr.msk.mxu1 %vm6182_vm10, %v6845_v9 }
 0x3b0   :  { %v3687_v1 = vpop.f32.mrf.mxu0  ;;  %v3743_v42 = vpop.f32.mrf.mxu1 }
 0x3b1   :  { %v6189_v31 = vadd.f32 %v3743_v42, %v3687_v1 }
 0x3b2   :  { %v1816_v2 = vpop.f32.mrf.mxu0  ;;  %v1961_v27 = vpop.f32.mrf.mxu1 }
 0x3b3   :  { %v6191_v19 = vadd.f32 %v1961_v27, %v1816_v2  ;;  %v6216_v27 = vshra.s32 %v2201_v59, 3 }
 0x3b4   :  { %v3746_v4 = vpop.f32.mrf.mxu1 }
 0x3b5   :  { %v3690_v43 = vpop.f32.mrf.mxu0  ;;  %vm2204_vm13 = vcmp.eq.s32.totalorder %v5878_v63, %v6216_v27  ;;  %vm2203_vm7 = vcmp.eq.s32.totalorder %v5881_v28, %v6216_v27  ;;  %vm2206_vm2 = vcmp.eq.s32.totalorder %v5897_v14, %v6216_v27  ;;  %vm2205_vm12 = vcmp.eq.s32.totalorder %v5892_v40, %v6216_v27 }
 0x3b6   :  { %v6193_v55 = vadd.f32 %v3746_v4, %v3690_v43  ;;  %v1971_v50 = vpop.f32.mrf.mxu1  ;;  %vm2208_vm15 = vcmp.eq.s32.totalorder %v5913_v33, %v6216_v27  ;;  %vm2207_vm6 = vcmp.eq.s32.totalorder %v5908_v32, %v6216_v27  ;;  %vm2210_vm4 = vcmp.eq.s32.totalorder %v6852_v49, %v6216_v27 }
 0x3b7   :  { %v1826_v35 = vpop.f32.mrf.mxu0 }
 0x3b8   :  { %v6195_v11 = vadd.f32 %v1971_v50, %v1826_v35  ;;  %v2685_v35 = vadd.s32 384, %v6777_v0 }
 0x3b9   :  { %v3693_v29 = vpop.f32.mrf.mxu0  ;;  %v3749_v37 = vpop.f32.mrf.mxu1 }
 0x3ba   :  { %v6197_v25 = vadd.f32 %v3749_v37, %v3693_v29  ;;  %v2684_v37 = vadd.s32 384, %v6778_v51 }
 0x3bb   :  { %v1836_v21 = vpop.f32.mrf.mxu0  ;;  %v1981_v17 = vpop.f32.mrf.mxu1 }
 0x3bc   :  { %v6199_v56 = vadd.f32 %v1981_v17, %v1836_v21  ;;  %v2220_v17 = vsel %vm2204_vm13, 1.0, %v6835_v48 }
 0x3bd   :  { %v3752_v58 = vpop.f32.mrf.mxu1 }
 0x3be   :  { %v3696_v61 = vpop.f32.mrf.mxu0 }
 0x3bf   :  { %v6201_v57 = vadd.f32 %v3752_v58, %v3696_v61  ;;  %v1991_v18 = vpop.f32.mrf.mxu1  ;;  %v2219_v58 = vsel %vm2203_vm7, 1.0, %v6835_v48  ;;  %v2701_v61 = vand.u32 7, %v2685_v35  ;;  %v2224_v35 = vsel %vm2208_vm15, 1.0, %v6835_v48 }
 0x3c0   :  { %v1846_v46 = vpop.f32.mrf.mxu0 }
 0x3c1   :  { %v6203_v12 = vadd.f32 %v1991_v18, %v1846_v46  ;;  %v3755_v60 = vpop.f32.mrf.mxu1  ;;  %v2683_v18 = vadd.s32 384, %v6784_v44  ;;  %vm6243_vm5 = vcmp.eq.s32.totalorder %v2701_v61, %v6771_v24 }
 0x3c2   :  { %v3699_v53 = vpop.f32.mrf.mxu0 }
 0x3c3   :  { %v6205_v34 = vadd.f32 %v3755_v60, %v3699_v53  ;;  %v2001_v22 = vpop.f32.mrf.mxu1  ;;  %v2700_v60 = vand.u32 7, %v2684_v37  ;;  %v2682_v53 = vadd.s32 384, %v6790_v47  ;;  %v2699_v44 = vand.u32 7, %v2683_v18  ;;  %v6855_v37 = vld [vmem:[#allocation27_spill] sm:$0xff] }
 0x3c4   :  { %v1856_v20 = vpop.f32.mrf.mxu0  ;;  %v2681_v47 = vadd.s32 384, %v6796_v8  ;;  %v2223_v8 = vsel %vm2207_vm6, 1.0, %v6835_v48  ;;  %vm2209_vm9 = vcmp.eq.s32.totalorder %v6855_v37, %v6216_v27  ;;  %v2674_v18 = vadd.s32 384, %v6824_v45 }
 0x3c5   :  { %v6207_v62 = vadd.f32 %v2001_v22, %v1856_v20  ;;  %v3758_v6 = vpop.f32.mrf.mxu1  ;;  %v2222_v20 = vsel %vm2206_vm2, 1.0, %v6835_v48  ;;  %vm6254_vm8 = vcmp.eq.s32.totalorder %v2700_v60, %v6771_v24  ;;  %vm6270_vm3 = vcmp.eq.s32.totalorder %v2699_v44, %v6771_v24 }
 0x3c6   :  { %v3702_v13 = vpop.f32.mrf.mxu0 }
 0x3c7   :  { %v6209_v52 = vadd.f32 %v3758_v6, %v3702_v13  ;;  %v2011_v30 = vpop.f32.mrf.mxu1  ;;  %v2221_v6 = vsel %vm2205_vm12, 1.0, %v6835_v48  ;;  %v2677_v13 = vadd.s32 384, %v6815_v16 }
 0x3c8   :  { %v1866_v41 = vpop.f32.mrf.mxu0 }
 0x3c9   :  { %v6212_v26 = vadd.f32 %v2011_v30, %v1866_v41  ;;  %v3761_v54 = vpop.f32.mrf.mxu1  ;;  %v2676_v41 = vadd.s32 384, %v6821_v23 }
 0x3ca   :  { %v3705_v1 = vpop.f32.mrf.mxu0 }
 0x3cb   :  { %v6214_v42 = vadd.f32 %v3761_v54, %v3705_v1  ;;  %v2021_v2 = vpop.f32.mrf.mxu1  ;;  %v2698_v54 = vand.u32 7, %v2682_v53  ;;  %v2680_v1 = vadd.s32 384, %v6802_v5  ;;  %v2226_v53 = vsel %vm2210_vm4, 1.0, %v6835_v48 }
 0x3cc   :  { %v1876_v4 = vpop.f32.mrf.mxu0  ;;  %v2675_v5 = vadd.s32 384, %v6822_v39 }
 0x3cd   :  { %v6218_v43 = vadd.f32 %v2021_v2, %v1876_v4  ;;  %vm6284_vm1 = vcmp.eq.s32.totalorder %v2698_v54, %v6771_v24 }
 0x3ce   :  { %v6220_v50 = vpop.f32.mrf.mxu0 }
 0x3d0   :  { %v6227_v29 = vpop.f32.mrf.mxu0 }
 0x3d2   :  { %v3799_v21 = vpop.f32.mrf.mxu0 }
 0x3d3   :  { %v2300_v51 = vmul.f32 %v3799_v21, %v2220_v17  ;;  %v2697_v21 = vand.u32 7, %v2681_v47  ;;  %v2679_v17 = vadd.s32 384, %v6808_v3 }
 0x3d4   :  { %v2122_v46 = vpop.f32.mrf.mxu0 }
 0x3d5   :  { %v2299_v0 = vmul.f32 %v2219_v58, %v2122_v46  ;;  %v2696_v46 = vand.u32 7, %v2680_v1  ;;  %vm6303_vm11 = vcmp.eq.s32.totalorder %v2697_v21, %v6771_v24 }
 0x3d6   :  { %v3802_v22 = vpop.f32.mrf.mxu0 }
 0x3d7   :  { %3853 = vmatprep.mubr.f32.mxu1 %v2299_v0  ;;  %v2302_v2 = vmul.f32 %v3802_v22, %v2222_v20  ;;  %v2678_v0 = vadd.s32 384, %v6814_v36  ;;  %v6858_v22 = vld [vmem:[#allocation25_spill] sm:$0xff]  ;;  %v6861_v20 = vld [vmem:[#allocation26_spill] sm:$0xff]  ;;  %v2673_v36 = vadd.s32 384, %v6829_v7  ;;  %v2672_v7 = vadd.s32 384, %v6831_v38 }
 0x3d8   :  { %v2132_v30 = vpop.f32.mrf.mxu0  ;;  %3854 = vmatmul.mubr.f32.vlgmr.msra.gmra.mxu1 %v2300_v51  ;;  %v2225_v51 = vsel %vm2209_vm9, 1.0, %v6835_v48  ;;  %vm2212_vm14 = vcmp.eq.s32.totalorder %v6858_v22, %v6216_v27  ;;  %vm2211_vm0 = vcmp.eq.s32.totalorder %v6861_v20, %v6216_v27 }
 0x3d9   :  { %v2301_v59 = vmul.f32 %v2221_v6, %v2132_v30  ;;  %3934 = vmatpush3.msk.msra.mxu1 %vm6182_vm10, %v6845_v9  ;;  %v2695_v6 = vand.u32 7, %v2679_v17  ;;  %vm6317_vm10 = vcmp.eq.s32.totalorder %v2696_v46, %v6771_v24  ;;  %v2228_v1 = vsel %vm2212_vm14, 1.0, %v6835_v48 }
 0x3da   :  { %v3805_v4 = vpop.f32.mrf.mxu0  ;;  %3935 = vmatprep.subr.msk.mxu1 %vm6243_vm5, %v6845_v9  ;;  %v2690_v30 = vand.u32 7, %v2674_v18 }
 0x3db   :  { %3856 = vmatprep.mubr.f32.mxu1 %v2301_v59  ;;  %3936 = vmatpush3.msk.msra.mxu1 %vm6243_vm5, %v6845_v9  ;;  %v2304_v3 = vmul.f32 %v3805_v4, %v2224_v35  ;;  %v2694_v59 = vand.u32 7, %v2678_v0  ;;  %v6864_v4 = vld [vmem:[#allocation23_spill] sm:$0xff]  ;;  %vm6336_vm7 = vcmp.eq.s32.totalorder %v2695_v6, %v6771_v24  ;;  %v6867_v35 = vld [vmem:[#allocation24_spill] sm:$0xff] }
 0x3dc   :  { %v2142_v58 = vpop.f32.mrf.mxu0  ;;  %3857 = vmatmul.mubr.f32.gmra.mxu1 %v2302_v2  ;;  %3937 = vmatprep.subr.msk.mxu1 %vm6254_vm8, %v6845_v9  ;;  %v2227_v2 = vsel %vm2211_vm0, 1.0, %v6835_v48  ;;  %vm2214_vm13 = vcmp.eq.s32.totalorder %v6864_v4, %v6216_v27  ;;  %vm2213_vm2 = vcmp.eq.s32.totalorder %v6867_v35, %v6216_v27 }
 0x3dd   :  { %v2303_v61 = vmul.f32 %v2223_v8, %v2142_v58  ;;  %3938 = vmatpush3.msk.msra.mxu1 %vm6254_vm8, %v6845_v9  ;;  %v2693_v8 = vand.u32 7, %v2677_v13  ;;  %vm6350_vm12 = vcmp.eq.s32.totalorder %v2694_v59, %v6771_v24  ;;  %v2230_v0 = vsel %vm2214_vm13, 1.0, %v6835_v48 }
 0x3de   :  { %v3808_v60 = vpop.f32.mrf.mxu0  ;;  %3939 = vmatprep.subr.msk.mxu1 %vm6270_vm3, %v6845_v9  ;;  %v2637_v13 = vadd.s32 384, %v6771_v24  ;;  %v2688_v58 = vand.u32 7, %v2672_v7 }
 0x3df   :  { %3859 = vmatprep.mubr.f32.mxu1 %v2303_v61  ;;  %3940 = vmatpush3.msk.msra.mxu1 %vm6270_vm3, %v6845_v9  ;;  %v2306_v16 = vmul.f32 %v3808_v60, %v2226_v53  ;;  %v2692_v61 = vand.u32 7, %v2676_v41  ;;  %v6870_v60 = vld [vmem:[#allocation21_spill] sm:$0xff]  ;;  %vm6369_vm5 = vcmp.eq.s32.totalorder %v2693_v8, %v6771_v24  ;;  %v6873_v53 = vld [vmem:[#allocation22_spill] sm:$0xff]  ;;  %vm2217_vm3 = vcmp.eq.s32.totalorder %v6035_v10, %v6216_v27  ;;  %v6878_v8 = vld [vmem:[#allocation20_spill] sm:$0xff] }
 0x3e0   :  { %v2152_v44 = vpop.f32.mrf.mxu0  ;;  %3860 = vmatmul.mubr.f32.gmra.mxu1 %v2304_v3  ;;  %3941 = vmatprep.subr.msk.mxu1 %vm6284_vm1, %v6845_v9  ;;  %v2229_v3 = vsel %vm2213_vm2, 1.0, %v6835_v48  ;;  %vm2216_vm15 = vcmp.eq.s32.totalorder %v6870_v60, %v6216_v27  ;;  %vm2215_vm6 = vcmp.eq.s32.totalorder %v6873_v53, %v6216_v27  ;;  %vm2218_vm9 = vcmp.eq.s32.totalorder %v6878_v8, %v6216_v27 }
 0x3e1   :  { %v2305_v47 = vmul.f32 %v2225_v51, %v2152_v44  ;;  %3942 = vmatpush3.msk.msra.mxu1 %vm6284_vm1, %v6845_v9  ;;  %v2691_v51 = vand.u32 7, %v2675_v5  ;;  %vm6384_vm8 = vcmp.eq.s32.totalorder %v2692_v61, %v6771_v24  ;;  %v6416_v5 = vshra.s32 %v2637_v13, 3 }
 0x3e2   :  { %v3811_v54 = vpop.f32.mrf.mxu0  ;;  %3943 = vmatprep.subr.msk.mxu1 %vm6303_vm11, %v6845_v9  ;;  %vm6422_vm1 = vcmp.eq.s32.totalorder %v2690_v30, %v6771_v24  ;;  %v2233_v27 = vsel %vm2217_vm3, 1.0, %v6835_v48 }
 0x3e3   :  { %3862 = vmatprep.mubr.f32.mxu1 %v2305_v47  ;;  %3944 = vmatpush3.msk.msra.mxu1 %vm6303_vm11, %v6845_v9  ;;  %v2308_v39 = vmul.f32 %v3811_v54, %v2228_v1  ;;  %v2231_v54 = vsel %vm2215_vm6, 1.0, %v6835_v48  ;;  %vm6404_vm4 = vcmp.eq.s32.totalorder %v2691_v51, %v6771_v24  ;;  %v2689_v1 = vand.u32 7, %v2673_v36 }
 0x3e4   :  { %v2162_v21 = vpop.f32.mrf.mxu0  ;;  %3863 = vmatmul.mubr.f32.gmra.mxu1 %v2306_v16  ;;  %3945 = vmatprep.subr.msk.mxu1 %vm6317_vm10, %v6845_v9  ;;  %v2232_v16 = vsel %vm2216_vm15, 1.0, %v6835_v48  ;;  %vm2639_vm11 = vcmp.eq.s32.totalorder %v5881_v28, %v6416_v5  ;;  %vm2640_vm0 = vcmp.eq.s32.totalorder %v5878_v63, %v6416_v5  ;;  %vm2642_vm2 = vcmp.eq.s32.totalorder %v5897_v14, %v6416_v5 }
 0x3e5   :  { %v2307_v17 = vmul.f32 %v2227_v2, %v2162_v21  ;;  %3946 = vmatpush3.msk.msra.mxu1 %vm6317_vm10, %v6845_v9  ;;  %v2671_v2 = vadd.s32 384, %v6833_v15  ;;  %vm6435_vm14 = vcmp.eq.s32.totalorder %v2689_v1, %v6771_v24  ;;  %vm2704_vm10 = vcmp.eq.s32.totalorder %v2688_v58, %v6771_v24 }
 0x3e6   :  { %v3814_v46 = vpop.f32.mrf.mxu0  ;;  %3947 = vmatprep.subr.msk.mxu1 %vm6336_vm7, %v6845_v9  ;;  %v2655_v28 = vsel %vm2639_vm11, 1.0, %v6835_v48  ;;  %v2658_v7 = vsel %vm2642_vm2, 1.0, %v6835_v48  ;;  %vm2644_vm15 = vcmp.eq.s32.totalorder %v5913_v33, %v6416_v5  ;;  %vm2646_vm6 = vcmp.eq.s32.totalorder %v6852_v49, %v6416_v5 }
 0x3e7   :  { %3865 = vmatprep.mubr.f32.mxu1 %v2307_v17  ;;  %3948 = vmatpush3.msk.msra.mxu1 %vm6336_vm7, %v6845_v9  ;;  %v2310_v59 = vmul.f32 %v3814_v46, %v2230_v0  ;;  %v2687_v0 = vand.u32 7, %v2671_v2  ;;  %vm2641_vm7 = vcmp.eq.s32.totalorder %v5892_v40, %v6416_v5  ;;  %vm2649_vm3 = vcmp.eq.s32.totalorder %v6867_v35, %v6416_v5 }
 0x3e8   :  { %v2172_v6 = vpop.f32.mrf.mxu0  ;;  %3866 = vmatmul.mubr.f32.gmra.mxu1 %v2308_v39  ;;  %3949 = vmatprep.subr.msk.mxu1 %vm6350_vm12, %v6845_v9  ;;  %v2234_v39 = vsel %vm2218_vm9, 1.0, %v6835_v48  ;;  %v2657_v30 = vsel %vm2641_vm7, 1.0, %v6835_v48  ;;  %vm2650_vm9 = vcmp.eq.s32.totalorder %v6864_v4, %v6416_v5  ;;  %vm2653_vm11 = vcmp.eq.s32.totalorder %v6035_v10, %v6416_v5  ;;  %v3764_v10 = vpop.f32.mrf.mxu1 }
 0x3e9   :  { %v2309_v44 = vmul.f32 %v2229_v3, %v2172_v6  ;;  %3950 = vmatpush3.msk.msra.mxu1 %vm6350_vm12, %v6845_v9  ;;  %v2656_v6 = vsel %vm2640_vm0, 1.0, %v6835_v48  ;;  %vm2703_vm13 = vcmp.eq.s32.totalorder %v2687_v0, %v6771_v24  ;;  %vm2643_vm12 = vcmp.eq.s32.totalorder %v5908_v32, %v6416_v5 }
 0x3ea   :  { %v3817_v41 = vpop.f32.mrf.mxu0  ;;  %3951 = vmatprep.subr.msk.mxu1 %vm6369_vm5, %v6845_v9  ;;  %v2666_v46 = vsel %vm2650_vm9, 1.0, %v6835_v48  ;;  %vm2654_vm0 = vcmp.eq.s32.totalorder %v6878_v8, %v6416_v5  ;;  %vm2993_vm7 = vcmask 58368  }
 0x3eb   :  { %3868 = vmatprep.mubr.f32.mxu1 %v2309_v44  ;;  %3952 = vmatpush3.msk.msra.mxu1 %vm6369_vm5, %v6845_v9  ;;  %v2312_v61 = vmul.f32 %v3817_v41, %v2232_v16  ;;  %v2659_v16 = vsel %vm2643_vm12, 1.0, %v6835_v48  ;;  %vm2645_vm5 = vcmp.eq.s32.totalorder %v6855_v37, %v6416_v5 }
 0x3ec   :  { %v2182_v23 = vpop.f32.mrf.mxu0  ;;  %3869 = vmatmul.mubr.f32.gmra.mxu1 %v2310_v59  ;;  %3953 = vmatprep.subr.msk.mxu1 %vm6384_vm8, %v6845_v9  ;;  %v2661_v33 = vsel %vm2645_vm5, 1.0, %v6835_v48 }
 0x3ed   :  { %v2311_v21 = vmul.f32 %v2231_v54, %v2182_v23  ;;  %3954 = vmatpush3.msk.msra.mxu1 %vm6384_vm8, %v6845_v9  ;;  %v2660_v54 = vsel %vm2644_vm15, 1.0, %v6835_v48  ;;  %v2662_v23 = vsel %vm2646_vm6, 1.0, %v6835_v48  ;;  %vm2647_vm8 = vcmp.eq.s32.totalorder %v6861_v20, %v6416_v5 }
 0x3ee   :  { %v3820_v18 = vpop.f32.mrf.mxu0  ;;  %3955 = vmatprep.subr.msk.mxu1 %vm6404_vm4, %v6845_v9  ;;  %v2663_v49 = vsel %vm2647_vm8, 1.0, %v6835_v48 }
 0x3ef   :  { %3871 = vmatprep.mubr.f32.mxu1 %v2311_v21  ;;  %3956 = vmatpush3.msk.msra.mxu1 %vm6404_vm4, %v6845_v9  ;;  %v2314_v51 = vmul.f32 %v3820_v18, %v2234_v39  ;;  %vm2648_vm4 = vcmp.eq.s32.totalorder %v6858_v22, %v6416_v5  ;;  %v2665_v22 = vsel %vm2649_vm3, 1.0, %v6835_v48 }
 0x3f0   :  { %v2192_v3 = vpop.f32.mrf.mxu0  ;;  %3872 = vmatmul.mubr.f32.gmra.mxu1 %v2312_v61  ;;  %3957 = vmatprep.subr.msk.mxu1 %vm6422_vm1, %v6845_v9  ;;  %v2664_v61 = vsel %vm2648_vm4, 1.0, %v6835_v48 }
 0x3f1   :  { %v2313_v45 = vmul.f32 %v2233_v27, %v2192_v3  ;;  %3958 = vmatpush3.msk.msra.mxu1 %vm6422_vm1, %v6845_v9  ;;  %vm2651_vm1 = vcmp.eq.s32.totalorder %v6873_v53, %v6416_v5 }
 0x3f2   :  { %v3911_v36 = vpop.f32.mrf.mxu0  ;;  %3959 = vmatprep.subr.msk.mxu1 %vm6435_vm14, %v6845_v9  ;;  %v2667_v4 = vsel %vm2651_vm1, 1.0, %v6835_v48 }
 0x3f3   :  { %3874 = vmatprep.mubr.f32.mxu1 %v2313_v45  ;;  %3960 = vmatpush3.msk.msra.mxu1 %vm6435_vm14, %v6845_v9  ;;  %v2736_v44 = vmul.f32 %v3911_v36, %v2656_v6  ;;  %vm2652_vm14 = vcmp.eq.s32.totalorder %v6870_v60, %v6416_v5  ;;  %v2669_v60 = vsel %vm2653_vm11, 1.0, %v6835_v48 }
 0x3f4   :  { %3875 = vmatmul.mubr.f32.gmra.mxu1 %v2314_v51  ;;  %v2558_v63 = vpop.f32.mrf.mxu0  ;;  %3961 = vmatprep.subr.msk.mxu1 %vm2704_vm10, %v6845_v9  ;;  %v2668_v51 = vsel %vm2652_vm14, 1.0, %v6835_v48 }
 0x3f5   :  { %v2735_v13 = vmul.f32 %v2655_v28, %v2558_v63  ;;  %3962 = vmatpush3.msk.msra.mxu1 %vm2704_vm10, %v6845_v9  ;;  %v2670_v63 = vsel %vm2654_vm0, 1.0, %v6835_v48  ;;  %vm4114_vm10 = vmmov 0  }
 0x3f6   :  { %v3914_v47 = vpop.f32.mrf.mxu0  ;;  %3963 = vmatprep.subr.msk.mxu1 %vm2703_vm13, %v6845_v9  ;;  %4021 = vmatprep.mubr.msk.f32.mxu0 %vm4114_vm10, %v6835_v48 }
 0x3f7   :  { %3964 = vmatpush3.msk.msra.mxu1 %vm2703_vm13, %v6845_v9  ;;  %3965 = vmatprep.mubr.f32.mxu1 %v2735_v13  ;;  %v2738_v59 = vmul.f32 %v3914_v47, %v2658_v7 }
 0x3f8   :  { %v2568_v40 = vpop.f32.mrf.mxu0  ;;  %3966 = vmatmul.mubr.f32.vlgmr.msra.gmra.mxu1 %v2736_v44 }
 0x3f9   :  { %v2737_v14 = vmul.f32 %v2657_v30, %v2568_v40  ;;  %v2031_v30 = vpop.f32.mrf.mxu1 }
 0x3fa   :  { %v3917_v41 = vpop.f32.mrf.mxu0 }
 0x3fb   :  { %3968 = vmatprep.mubr.f32.mxu1 %v2737_v14  ;;  %v2740_v1 = vmul.f32 %v3917_v41, %v2660_v54 }
 0x3fc   :  { %v2578_v38 = vpop.f32.mrf.mxu0  ;;  %3969 = vmatmul.mubr.f32.gmra.mxu1 %v2738_v59 }
 0x3fd   :  { %v2739_v32 = vmul.f32 %v2659_v16, %v2578_v38 }
 0x3fe   :  { %v3920_v2 = vpop.f32.mrf.mxu0 }
 0x3ff   :  { %3971 = vmatprep.mubr.f32.mxu1 %v2739_v32  ;;  %v2742_v17 = vmul.f32 %v3920_v2, %v2662_v23 }
 0x400   :  { %v2588_v21 = vpop.f32.mrf.mxu0  ;;  %3972 = vmatmul.mubr.f32.gmra.mxu1 %v2740_v1 }
 0x401   :  { %v2741_v37 = vmul.f32 %v2661_v33, %v2588_v21 }
 0x402   :  { %v3923_v58 = vpop.f32.mrf.mxu0 }
 0x403   :  { %3974 = vmatprep.mubr.f32.mxu1 %v2741_v37  ;;  %v2744_v27 = vmul.f32 %v3923_v58, %v2664_v61 }
 0x404   :  { %v2598_v18 = vpop.f32.mrf.mxu0  ;;  %3975 = vmatmul.mubr.f32.gmra.mxu1 %v2742_v17 }
 0x405   :  { %v2743_v20 = vmul.f32 %v2663_v49, %v2598_v18 }
 0x406   :  { %v3926_v39 = vpop.f32.mrf.mxu0 }
 0x407   :  { %3977 = vmatprep.mubr.f32.mxu1 %v2743_v20  ;;  %v2746_v3 = vmul.f32 %v3926_v39, %v2666_v46 }
 0x408   :  { %v2608_v0 = vpop.f32.mrf.mxu0  ;;  %3978 = vmatmul.mubr.f32.gmra.mxu1 %v2744_v27 }
 0x409   :  { %v2745_v35 = vmul.f32 %v2665_v22, %v2608_v0 }
 0x40a   :  { %v3929_v45 = vpop.f32.mrf.mxu0 }
 0x40b   :  { %3980 = vmatprep.mubr.f32.mxu1 %v2745_v35  ;;  %v2748_v28 = vmul.f32 %v3929_v45, %v2668_v51 }
 0x40c   :  { %v2618_v36 = vpop.f32.mrf.mxu0  ;;  %3981 = vmatmul.mubr.f32.gmra.mxu1 %v2746_v3  ;;  %v2037_v3 = vadd.f32 %v3764_v10, %v6220_v50 }
 0x40d   :  { %v2747_v53 = vmul.f32 %v2667_v4, %v2618_v36  ;;  %v2032_v4 = vadd.f32 %v2031_v30, %v6227_v29 }
 0x40e   :  { %v3932_v6 = vpop.f32.mrf.mxu0 }
 0x40f   :  { %3983 = vmatprep.mubr.f32.mxu1 %v2747_v53  ;;  %v2750_v47 = vmul.f32 %v3932_v6, %v2670_v63 }
 0x410   :  { %v2628_v13 = vpop.f32.mrf.mxu0  ;;  %3984 = vmatmul.mubr.f32.gmra.mxu1 %v2748_v28 }
 0x411   :  { %v2749_v44 = vmul.f32 %v2669_v60, %v2628_v13 }
 0x413   :  { %3986 = vmatprep.mubr.f32.mxu1 %v2749_v44 }
 0x414   :  { %3987 = vmatmul.mubr.f32.gmra.mxu1 %v2750_v47 }
 0x498   :  { %v3855_v8 = vpop.f32.mrf.mxu1 }
 0x499   :  { %v6507_v5 = vadd.f32 %v3855_v8, %v6189_v31 }
 0x49a   :  { %v2381_v7 = vpop.f32.mrf.mxu1 }
 0x49b   :  { %v6510_v40 = vadd.f32 %v2381_v7, %v6191_v19 }
 0x49c   :  { %v3858_v14 = vpop.f32.mrf.mxu1 }
 0x49d   :  { %v6513_v59 = vadd.f32 %v3858_v14, %v6193_v55 }
 0x49e   :  { %v2391_v41 = vpop.f32.mrf.mxu1 }
 0x49f   :  { %v6516_v16 = vadd.f32 %v2391_v41, %v6195_v11 }
 0x4a0   :  { %v3861_v54 = vpop.f32.mrf.mxu1 }
 0x4a1   :  { %v6519_v38 = vadd.f32 %v3861_v54, %v6197_v25  ;;  %v2912_v54 = vshra.s32 %v6771_v24, 6  ;;  %v3090_v24 = vld [vmem:[%s6579_s6] ss:$0 sm:$0xff]  ;;  %s3012_s6 = sshll.u32 %s4115_s29, 4  ;;  %s3013_s6 = int_to_ptr.vmem [resolvable:$true] %s3012_s6 }
 0x4a2   :  { %v2401_v32 = vpop.f32.mrf.mxu1  ;;  %s4079_s30 = scalar_lea.vmem %s3013_s6, 32  ;;  %p4084_p11 = scmp.lt.s32.totalorder %s3013_s6, %s3013_s6 }
 0x4a3   :  { %v6522_v31 = vadd.f32 %v2401_v32, %v6199_v56  ;;  %vm2913_vm13 = vcmp.eq.s32.totalorder %v2912_v54, %v6833_v15  ;;  %p4080_p10 = scmp.ne.s32.totalorder %s3013_s6, %s4079_s30  ;;  %p4085_p12 = scmp.lt.s32.totalorder %s4079_s30, %s4079_s30 }
 0x4a4   :  { %v3864_v1 = vpop.f32.mrf.mxu1 }
 0x4a5   :  { %p4086_p13 = por %p4085_p12, %p4084_p11 }
 0x4a6   :  { %v2411_v2 = vpop.f32.mrf.mxu1 }
 0x4a7   :  { %p4087_p0 = pnand %p4086_p13, %p4080_p10 }
 0x4a8   :  { %v3867_v19 = vpop.f32.mrf.mxu1 }
 0x4aa   :  { %v2421_v33 = vpop.f32.mrf.mxu1 }
 0x4ac   :  { %v3870_v23 = vpop.f32.mrf.mxu1 }
 0x4ad   :  { %v2471_v50 = vadd.f32 %v3870_v23, %v6209_v52  ;;  %v2467_v52 = vadd.f32 %v3864_v1, %v6201_v57 }
 0x4ae   :  { %v2431_v21 = vpop.f32.mrf.mxu1 }
 0x4af   :  { %v2470_v47 = vadd.f32 %v2431_v21, %v6212_v26  ;;  %v2466_v26 = vadd.f32 %v2411_v2, %v6203_v12 }
 0x4b0   :  { %v3873_v55 = vpop.f32.mrf.mxu1 }
 0x4b1   :  { %v2473_v60 = vadd.f32 %v3873_v55, %v6214_v42  ;;  %v2469_v42 = vadd.f32 %v3867_v19, %v6205_v34 }
 0x4b2   :  { %v2441_v37 = vpop.f32.mrf.mxu1 }
 0x4b3   :  { %v2472_v13 = vadd.f32 %v2441_v37, %v6218_v43  ;;  %v2468_v43 = vadd.f32 %v2421_v33, %v6207_v62 }
 0x4b4   :  { %v3876_v17 = vpop.f32.mrf.mxu1 }
 0x4b5   :  { %v2475_v51 = vadd.f32 %v3876_v17, %v2037_v3 }
 0x4b6   :  { %v2451_v58 = vpop.f32.mrf.mxu1 }
 0x4b7   :  { %v2474_v53 = vadd.f32 %v2451_v58, %v2032_v4 }
 0x4b8   :  { %v6524_v11 = vpop.f32.mrf.mxu1 }
 0x4ba   :  { %v6526_v49 = vpop.f32.mrf.mxu1 }
 0x4bb   :  { %v2896_v32 = vadd.f32 %v6526_v49, %v6510_v40 }
 0x4bc   :  { %v3970_v25 = vpop.f32.mrf.mxu1 }
 0x4bd   :  { %v2899_v12 = vadd.f32 %v3970_v25, %v6513_v59 }
 0x4be   :  { %v2827_v61 = vpop.f32.mrf.mxu1 }
 0x4bf   :  { %v2898_v41 = vadd.f32 %v2827_v61, %v6516_v16 }
 0x4c0   :  { %v3973_v18 = vpop.f32.mrf.mxu1 }
 0x4c1   :  { %v2901_v62 = vadd.f32 %v3973_v18, %v6519_v38  ;;  %v2897_v38 = vadd.f32 %v6524_v11, %v6507_v5 }
 0x4c2   :  { %v2837_v20 = vpop.f32.mrf.mxu1 }
 0x4c3   :  { %v2900_v57 = vadd.f32 %v2837_v20, %v6522_v31 }
 0x4c4   :  { %v3976_v56 = vpop.f32.mrf.mxu1 }
 0x4c5   :  { %v2903_v14 = vadd.f32 %v3976_v56, %v2467_v52 }
 0x4c6   :  { %v2847_v27 = vpop.f32.mrf.mxu1 }
 0x4c7   :  { %v2902_v34 = vadd.f32 %v2847_v27, %v2466_v26 }
 0x4c8   :  { %v3979_v39 = vpop.f32.mrf.mxu1 }
 0x4c9   :  { %v2905_v8 = vadd.f32 %v3979_v39, %v2469_v42 }
 0x4ca   :  { %v2857_v22 = vpop.f32.mrf.mxu1 }
 0x4cb   :  { %v2904_v7 = vadd.f32 %v2857_v22, %v2468_v43 }
 0x4cc   :  { %v3982_v46 = vpop.f32.mrf.mxu1 }
 0x4cd   :  { %v2907_v10 = vadd.f32 %v3982_v46, %v2471_v50 }
 0x4ce   :  { %v2867_v0 = vpop.f32.mrf.mxu1 }
 0x4cf   :  { %v2906_v30 = vadd.f32 %v2867_v0, %v2470_v47 }
 0x4d0   :  { %v3985_v35 = vpop.f32.mrf.mxu1 }
 0x4d1   :  { %v2909_v44 = vadd.f32 %v3985_v35, %v2473_v60 }
 0x4d2   :  { %v2877_v45 = vpop.f32.mrf.mxu1 }
 0x4d3   :  { %v2908_v29 = vadd.f32 %v2877_v45, %v2472_v13 }
 0x4d4   :  { %v3988_v36 = vpop.f32.mrf.mxu1 }
 0x4d5   :  { %v2911_v28 = vadd.f32 %v3988_v36, %v2475_v51 }
 0x4d6   :  { %v2887_v6 = vpop.f32.mrf.mxu1 }
 0x4d7   :  { %v2910_v63 = vadd.f32 %v2887_v6, %v2474_v53  ;;  %3990 = vmatpush3.msra.mxu0 %v2911_v28 }
 0x4d8   :  { %3991 = vmatprep.subr.mxu0 %v6835_v48 }
 0x4d9   :  { %3992 = vmatpush3.msra.mxu0 %v2910_v63 }
 0x4da   :  { %3993 = vmatprep.subr.mxu0 %v6835_v48 }
 0x4db   :  { %3994 = vmatpush3.msra.mxu0 %v2909_v44 }
 0x4dc   :  { %3995 = vmatprep.subr.mxu0 %v6835_v48 }
 0x4dd   :  { %3996 = vmatpush3.msra.mxu0 %v2908_v29 }
 0x4de   :  { %3997 = vmatprep.subr.mxu0 %v6835_v48 }
 0x4df   :  { %3998 = vmatpush3.msra.mxu0 %v2907_v10 }
 0x4e0   :  { %3999 = vmatprep.subr.mxu0 %v6835_v48 }
 0x4e1   :  { %4000 = vmatpush3.msra.mxu0 %v2906_v30 }
 0x4e2   :  { %4001 = vmatprep.subr.mxu0 %v6835_v48 }
 0x4e3   :  { %4002 = vmatpush3.msra.mxu0 %v2905_v8 }
 0x4e4   :  { %4003 = vmatprep.subr.mxu0 %v6835_v48 }
 0x4e5   :  { %4004 = vmatpush3.msra.mxu0 %v2904_v7 }
 0x4e6   :  { %4005 = vmatprep.subr.mxu0 %v6835_v48 }
 0x4e7   :  { %4006 = vmatpush3.msra.mxu0 %v2903_v14 }
 0x4e8   :  { %4007 = vmatprep.subr.mxu0 %v6835_v48 }
 0x4e9   :  { %4008 = vmatpush3.msra.mxu0 %v2902_v34 }
 0x4ea   :  { %4009 = vmatprep.subr.mxu0 %v6835_v48 }
 0x4eb   :  { %4010 = vmatpush3.msra.mxu0 %v2901_v62 }
 0x4ec   :  { %4011 = vmatprep.subr.mxu0 %v6835_v48 }
 0x4ed   :  { %4012 = vmatpush3.msra.mxu0 %v2900_v57 }
 0x4ee   :  { %4013 = vmatprep.subr.mxu0 %v6835_v48 }
 0x4ef   :  { %4014 = vmatpush3.msra.mxu0 %v2899_v12 }
 0x4f0   :  { %4015 = vmatprep.subr.mxu0 %v6835_v48 }
 0x4f1   :  { %4016 = vmatpush3.msra.mxu0 %v2898_v41 }
 0x4f2   :  { %4017 = vmatprep.subr.mxu0 %v6835_v48 }
 0x4f3   :  { %4018 = vmatpush3.msra.mxu0 %v2897_v38 }
 0x4f4   :  { %4019 = vmatprep.subr.mxu0 %v6835_v48 }
 0x4f5   :  { %4020 = vmatpush3.msra.mxu0 %v2896_v32 }
 0x4f6   :  { %4022 = vmatmul.mubr.msk.f32.vlgmr.msra.gmra.mxu0 %vm2913_vm13, %v6845_v9 }
 0x5b6   :  { %v2988_v59 = vpop.f32.mrf.mxu0 }
 0x5b7   :  { %v2989_v5 = vadd.f32 %v3090_v24, %v2988_v59 }
 0x5b8   :  { %v4023_v16 = vpop.f32.mrf.mxu0 }
 0x5b9   :  { %v2992_v31 = vmax.f32 %v2989_v5, 0.0 }
 0x5bb   :  { %v2994_v1 = vsel %vm2993_vm7, %v2992_v31, -inf }
 0x5bc   :  { %2995 = vmax.xlane.f32.xlu0 %v2994_v1 }
 0x645   :  { %v2996_v40 = vpop.xlane.xlu0 %2995 }
 0x646   :  { %v2997_v2 = vsub.f32 %v2992_v31, %v2996_v40 }
 0x648   :  { %v2998_v15 = vmul.f32 1.442695, %v2997_v2 }
 0x64a   :  { %4035 = vpow2.f32 %v2998_v15 }
 0x657   :  { %v4036_v48 = vpop.eup %4035 }
 0x658   :  { %v3000_v19 = vsel %vm2993_vm7, %v4036_v48, 0.0 }
 0x659   :  { %3001 = vadd.xlane.f32.xlu0 %v3000_v19 }
 0x6e2   :  { %v3002_v9 = vpop.xlane.xlu0 %3001 }
 0x6e3   :  { %4037 = vrcp.f32 %v3002_v9 }
 0x6f0   :  { %v4038_v33 = vpop.eup %4037 }
 0x6f1   :  { %v3004_v23 = vmul.f32 %v4038_v33, %v4036_v48 }
 0x6f3   :  { %3005 = vst.msk [vmem:[#allocation7] sm:$0x3] %vm2993_vm7, %v3004_v23 }
 0x6f4   :  { %4090 = shalt.err (!%p4087_p0)
}
 0x6f5   :  { %3015 = dma.vmem_to_hbm [thread:$0]  %s3013_s6, 32, %s6580_s7, [#allocation4]  }
 0x6f6   :  { %4103 = dma.done.wait [#allocation4], 32  }
 0x6f7   :  { %4104 = vsyncadd [#allocation4], 4294967264 }
 0x6f8   :  { %3019 = vsyncpa [#allocation3], 1 }
 0x6f9   :  { %3020 = vsyncpa [#allocation6], 1 }
 0x6fa   :  { %3021 = vsyncpa [#allocation4], 1 }

</bundles_post_ra>
